<compile_context>
chip_gen: v5e
topology: v5e:2x2
jax: 0.10.0
libtpu: 0.0.40
codegen_flags: <defaults>
</compile_context>

<pallas_src>
import functools

import jax
import jax.numpy as jnp
from jax.experimental import pallas as pl
from jax.experimental.pallas import tpu as pltpu

LEAKY_SLOPE = 0.01              # nn.LeakyReLU default negative_slope
CONV_DTYPE = jnp.bfloat16       # conv GEMM input dtype (f32 accumulation)
ACT_DTYPE = jnp.bfloat16        # intermediate-activation storage dtype
N_LANE_PAD = 128                # lane-dense output width for conv1-3
VMEM_LIMIT = 32 * 1024 * 1024   # explicit scoped-VMEM budget (v5e/v6e/v7x safe)


def _leaky(x):
    return jnp.where(x >= 0, x, LEAKY_SLOPE * x)


# ---------------------------------------------------------------------------
# Pallas kernel 1: both Linear+LeakyReLU layers fused, weights resident in VMEM
# ---------------------------------------------------------------------------
def _mlp_kernel(z_ref, w1_ref, b1_ref, w2_ref, b2_ref, o_ref):
    h = jnp.dot(z_ref[...], w1_ref[...], preferred_element_type=jnp.float32)
    h = _leaky(h + b1_ref[...])
    y = jnp.dot(h, w2_ref[...], preferred_element_type=jnp.float32)
    y = _leaky(y + b2_ref[...])
    o_ref[...] = y.astype(o_ref.dtype)


def mlp_forward(z, w1, b1, w2, b2, out_dtype=jnp.float32):
    B, K1 = z.shape
    H1 = w1.shape[1]
    H2 = w2.shape[1]
    Bp = ((max(B, 8) + 7) // 8) * 8          # sublane-align the tiny batch
    if Bp != B:
        z = jnp.pad(z, ((0, Bp - B), (0, 0)))
    out = pl.pallas_call(
        _mlp_kernel,
        out_shape=jax.ShapeDtypeStruct((Bp, H2), out_dtype),
        grid=(1,),
        in_specs=[
            pl.BlockSpec((Bp, K1), lambda i: (0, 0)),
            pl.BlockSpec((K1, H1), lambda i: (0, 0)),
            pl.BlockSpec((1, H1), lambda i: (0, 0)),
            pl.BlockSpec((H1, H2), lambda i: (0, 0)),
            pl.BlockSpec((1, H2), lambda i: (0, 0)),
        ],
        out_specs=pl.BlockSpec((Bp, H2), lambda i: (0, 0)),
        compiler_params=pltpu.CompilerParams(
            dimension_semantics=("arbitrary",),
            vmem_limit_bytes=VMEM_LIMIT),
    )(z, w1, b1.reshape(1, H1), w2, b2.reshape(1, H2))
    return out[:B]


# ---------------------------------------------------------------------------
# Pallas kernel 2: per-phase GEMM + bias + optional LeakyReLU
#   normal  orientation: a = patches (1,tm,K), b = weights  (1,K,N)  -> (1,tm,N)
#   flipped orientation: a = weights (1,Co,K), b = patches^T (1,K,tn)-> (1,Co,tn)
# ---------------------------------------------------------------------------
def _phase_gemm_kernel(a_ref, b_ref, bias_ref, o_ref, *, leaky):
    acc = jnp.dot(a_ref[0], b_ref[0], preferred_element_type=jnp.float32)
    acc = acc + bias_ref[...]
    if leaky:
        acc = _leaky(acc)
    o_ref[0] = acc.astype(o_ref.dtype)


def phase_gemm(patches, w, bias_row, *, leaky, out_dtype=jnp.float32, tm=1024):
    """patches (4,M,K) @ w (4,K,N) + bias (1,N); row-tiled; returns (4,M,N)."""
    _, M, K = patches.shape
    N = w.shape[2]
    assert M % 8 == 0 and K % 8 == 0 and N % 128 == 0
    tm = min(tm, M)
    Mp = ((M + tm - 1) // tm) * tm
    if Mp != M:
        patches = jnp.pad(patches, ((0, 0), (0, Mp - M), (0, 0)))
    kernel = functools.partial(_phase_gemm_kernel, leaky=leaky)
    out = pl.pallas_call(
        kernel,
        out_shape=jax.ShapeDtypeStruct((4, Mp, N), out_dtype),
        grid=(4, Mp // tm),
        in_specs=[
            pl.BlockSpec((1, tm, K), lambda p, i: (p, i, 0)),
            pl.BlockSpec((1, K, N), lambda p, i: (p, 0, 0)),
            pl.BlockSpec((1, N), lambda p, i: (0, 0)),
        ],
        out_specs=pl.BlockSpec((1, tm, N), lambda p, i: (p, i, 0)),
        compiler_params=pltpu.CompilerParams(
            dimension_semantics=("parallel", "parallel"),
            vmem_limit_bytes=VMEM_LIMIT),
    )(patches, w, bias_row)
    return out[:, :M, :]


def phase_gemm_flipped(w_t, patches_t, bias_col, *, leaky, out_dtype=jnp.float32,
                       tn=1024):
    """w_t (4,Co,K) @ patches_t (4,K,M) + bias (Co,1); lane-tiled; -> (4,Co,M)."""
    _, Co, K = w_t.shape
    M = patches_t.shape[2]
    assert Co % 8 == 0 and K % 8 == 0 and M % 128 == 0
    tn = min(tn, M)
    Mp = ((M + tn - 1) // tn) * tn
    if Mp != M:
        patches_t = jnp.pad(patches_t, ((0, 0), (0, 0), (0, Mp - M)))
    kernel = functools.partial(_phase_gemm_kernel, leaky=leaky)
    out = pl.pallas_call(
        kernel,
        out_shape=jax.ShapeDtypeStruct((4, Co, Mp), out_dtype),
        grid=(4, Mp // tn),
        in_specs=[
            pl.BlockSpec((1, Co, K), lambda p, j: (p, 0, 0)),
            pl.BlockSpec((1, K, tn), lambda p, j: (p, 0, j)),
            pl.BlockSpec((Co, 1), lambda p, j: (0, 0)),
        ],
        out_specs=pl.BlockSpec((1, Co, tn), lambda p, j: (p, 0, j)),
        compiler_params=pltpu.CompilerParams(
            dimension_semantics=("parallel", "parallel"),
            vmem_limit_bytes=VMEM_LIMIT),
    )(w_t, patches_t, bias_col)
    return out[:, :, :M]


# ---------------------------------------------------------------------------
# ConvTranspose2d(k=4, s=2, p=1) as 4 output-parity phase GEMMs (K = Cin*4).
# For output pixel (2*ty+py, 2*tx+px):
#   y = bias + sum_{dy,dx in {0,1}} xpad[ty+py+dy, tx+px+dx, ci] *
#                                   w[ci, co, 3-py-2*dy, 3-px-2*dx]
# with xpad = NHWC input zero-padded by 1 pixel.  No zero-inserted upsample.
# ---------------------------------------------------------------------------
def _phase_patches(x_nhwc, dtype):
    """(B,H,W,C) -> (4, B*H*W, 4*C); phase order (py,px), row order (dy,dx,ci)."""
    B, H, W, C = x_nhwc.shape
    xp = jnp.pad(x_nhwc, ((0, 0), (1, 1), (1, 1), (0, 0)))
    phases = []
    for py in range(2):
        for px in range(2):
            taps = [xp[:, py + dy:py + dy + H, px + dx:px + dx + W, :]
                    for dy in range(2) for dx in range(2)]
            phases.append(jnp.concatenate(taps, axis=-1).reshape(B * H * W, 4 * C))
    return jnp.stack(phases, axis=0).astype(dtype)


def _phase_weight_mats(w_t):
    """PyTorch ConvTranspose2d weight (Cin,Cout,4,4) -> (4, 4*Cin, Cout)."""
    mats = []
    for py in range(2):
        for px in range(2):
            rows = [w_t[:, :, 3 - py - 2 * dy, 3 - px - 2 * dx]
                    for dy in range(2) for dx in range(2)]
            mats.append(jnp.concatenate(rows, axis=0))
    return jnp.stack(mats, axis=0)


def conv_transpose_2x_nhwc(x_nhwc, w_mat, bias_row, cout, *, leaky):
    """One ConvTranspose2d(k=4,s=2,p=1) [+LeakyReLU]; NHWC in, NHWC out (bf16)."""
    B, H, W, _ = x_nhwc.shape
    patches = _phase_patches(x_nhwc, w_mat.dtype)                 # (4, M, 4*Cin)
    out = phase_gemm(patches, w_mat, bias_row, leaky=leaky,
                     out_dtype=ACT_DTYPE)                         # (4, M, Npad)
    out = out[:, :, :cout]                                        # drop lane padding first
    out = out.reshape(2, 2, B, H, W, cout).transpose(2, 3, 0, 4, 1, 5)
    return out.reshape(B, 2 * H, 2 * W, cout)                     # interleave phases


def conv_transpose_2x_final_nchw(x_nhwc, w_mat_t, bias_col, cout):
    """Final ConvTranspose2d: flipped GEMM (lane-dense output), emitted as NCHW."""
    B, H, W, _ = x_nhwc.shape
    patches_t = _phase_patches(x_nhwc, w_mat_t.dtype).transpose(0, 2, 1)  # (4, 4*Cin, M)
    out = phase_gemm_flipped(w_mat_t, patches_t, bias_col, leaky=False,
                             out_dtype=jnp.float32)               # (4, Cop, M)
    out = out[:, :cout, :]                                        # drop sublane padding
    out = out.reshape(2, 2, cout, B, H, W).transpose(3, 2, 4, 0, 5, 1)
    return out.reshape(B, cout, 2 * H, 2 * W)


# ---------------------------------------------------------------------------
# Parameter construction (deterministic, synthetic; PyTorch layouts) + prep
# ---------------------------------------------------------------------------
def init_params(latent_dim, key):
    keys = jax.random.split(key, 12)
    width, nc = 128, 3

    def dense(kw, kb, fan_in, fan_out):
        scale = 1.0 / jnp.sqrt(jnp.float32(fan_in))
        w = jax.random.normal(kw, (fan_in, fan_out), jnp.float32) * scale
        b = jax.random.normal(kb, (fan_out,), jnp.float32) * 0.01
        return w, b

    def convt(kw, kb, cin, cout):
        scale = 1.0 / jnp.sqrt(jnp.float32(cin * 16))
        w = jax.random.normal(kw, (cin, cout, 4, 4), jnp.float32) * scale
        b = jax.random.normal(kb, (cout,), jnp.float32) * 0.01
        return w, b

    p = {}
    p["lin1_w"], p["lin1_b"] = dense(keys[0], keys[1], latent_dim, width)
    p["lin2_w"], p["lin2_b"] = dense(keys[2], keys[3], width, 1024)
    p["ct1_w"], p["ct1_b"] = convt(keys[4], keys[5], 64, 64)
    p["ct2_w"], p["ct2_b"] = convt(keys[6], keys[7], 64, 32)
    p["ct3_w"], p["ct3_b"] = convt(keys[8], keys[9], 32, 32)
    p["ct4_w"], p["ct4_b"] = convt(keys[10], keys[11], 32, nc)
    return p


def prepare_params(raw):
    """PyTorch-layout params -> phase-decomposed, lane/sublane-padded GEMM mats."""
    prep = {k: raw[k] for k in ("lin1_w", "lin1_b", "lin2_w", "lin2_b")}
    # conv1-3: normal orientation, N zero-padded to 128 lanes (sliced off later)
    for name in ("ct1", "ct2", "ct3"):
        w = _phase_weight_mats(raw[name + "_w"])                  # (4, 4*Cin, Cout)
        cout = w.shape[-1]
        w = jnp.pad(w, ((0, 0), (0, 0), (0, N_LANE_PAD - cout)))
        b = jnp.pad(raw[name + "_b"], (0, N_LANE_PAD - cout))
        prep[name + "_w"] = w.astype(CONV_DTYPE)
        prep[name + "_b"] = b.reshape(1, N_LANE_PAD).astype(jnp.float32)
    # conv4 (Cout=3): flipped (Cout,K)@(K,M); pad Cout only up to 8 sublanes.
    w4 = jnp.swapaxes(_phase_weight_mats(raw["ct4_w"]), 1, 2)     # (4, Cout, 4*Cin)
    cout4 = w4.shape[1]
    co_pad = ((cout4 + 7) // 8) * 8
    w4 = jnp.pad(w4, ((0, 0), (0, co_pad - cout4), (0, 0)))
    b4 = jnp.pad(raw["ct4_b"], (0, co_pad - cout4))
    prep["ct4_w"] = w4.astype(CONV_DTYPE)
    prep["ct4_b"] = b4.reshape(co_pad, 1).astype(jnp.float32)
    return prep


# ---------------------------------------------------------------------------
# Full forward pass (matches ImageDecoder.forward)
# ---------------------------------------------------------------------------
def image_decoder_forward(z, p):
    B = z.shape[0]
    x = mlp_forward(z, p["lin1_w"], p["lin1_b"], p["lin2_w"], p["lin2_b"],
                    out_dtype=ACT_DTYPE)                                     # (B,1024)
    # view(B, 64, 4, 4) (NCHW), switch to NHWC once, stay NHWC through conv1-3
    x = x.reshape(B, 64, 4, 4).transpose(0, 2, 3, 1)                         # (B,4,4,64)
    x = conv_transpose_2x_nhwc(x, p["ct1_w"], p["ct1_b"], 64, leaky=True)    # (B,8,8,64)
    x = conv_transpose_2x_nhwc(x, p["ct2_w"], p["ct2_b"], 32, leaky=True)    # (B,16,16,32)
    x = conv_transpose_2x_nhwc(x, p["ct3_w"], p["ct3_b"], 32, leaky=True)    # (B,32,32,32)
    x = conv_transpose_2x_final_nchw(x, p["ct4_w"], p["ct4_b"], 3)           # (B,3,64,64)
    return x


if __name__ == "__main__":
    latent_dim = 16
    batch = 2

    key = jax.random.PRNGKey(0)
    k_params, k_z = jax.random.split(key)
    raw_params = init_params(latent_dim, k_params)
    params = prepare_params(raw_params)
    z = jax.random.normal(k_z, (batch, latent_dim), jnp.float32)

    fwd = jax.jit(image_decoder_forward)
    out = jax.block_until_ready(fwd(z, params))

    assert out.shape == (batch, 3, 64, 64), out.shape
    assert out.dtype == jnp.float32
    assert bool(jnp.all(jnp.isfinite(out)))
    print("KERNEL_OK")
</pallas_src>

<mosaic_0001>
module attributes {stable_mosaic.version = 11 : i64} {
  func.func @_mlp_kernel(%arg0: i32, %arg1: memref<8x16xf32, #tpu.memory_space<vmem>>, %arg2: memref<16x128xf32, #tpu.memory_space<vmem>>, %arg3: memref<1x128xf32, #tpu.memory_space<vmem>>, %arg4: memref<128x1024xf32, #tpu.memory_space<vmem>>, %arg5: memref<1x1024xf32, #tpu.memory_space<vmem>>, %arg6: memref<8x1024xbf16, #tpu.memory_space<vmem>>) attributes {dimension_semantics = [#tpu.dimension_semantics<arbitrary>], iteration_bounds = array<i64: 1>, scalar_prefetch = 0 : i64, scratch_operands = 0 : i64, tpu.core_type = #tpu.core_type<tc>, window_params = [{pipeline_mode = #tpu.pipeline_mode<synchronous>, transform_indices = @transform_0, window_bounds = array<i64: 8, 16>}, {pipeline_mode = #tpu.pipeline_mode<synchronous>, transform_indices = @transform_1, window_bounds = array<i64: 16, 128>}, {pipeline_mode = #tpu.pipeline_mode<synchronous>, transform_indices = @transform_2, window_bounds = array<i64: 1, 128>}, {pipeline_mode = #tpu.pipeline_mode<synchronous>, transform_indices = @transform_3, window_bounds = array<i64: 128, 1024>}, {pipeline_mode = #tpu.pipeline_mode<synchronous>, transform_indices = @transform_4, window_bounds = array<i64: 1, 1024>}, {pipeline_mode = #tpu.pipeline_mode<synchronous>, transform_indices = @transform_5, window_bounds = array<i64: 8, 1024>}]} {
    %c0 = arith.constant 0 : index
    %c0_0 = arith.constant 0 : index
    %0 = vector.load %arg1[%c0, %c0_0] : memref<8x16xf32, #tpu.memory_space<vmem>>, vector<8x16xf32>
    %c0_1 = arith.constant 0 : index
    %c0_2 = arith.constant 0 : index
    %1 = vector.load %arg2[%c0_1, %c0_2] : memref<16x128xf32, #tpu.memory_space<vmem>>, vector<16x128xf32>
    %cst = arith.constant dense<0.000000e+00> : vector<8x128xf32>
    %2 = tpu.matmul %0, %1, %cst {dimension_numbers = #tpu.dot_dimension_numbers<[1], [0], [0], [1], [0, 0, 1, 1], [], []>} : vector<8x16xf32>, vector<16x128xf32>, vector<8x128xf32> -> vector<8x128xf32>
    %c0_3 = arith.constant 0 : index
    %c0_4 = arith.constant 0 : index
    %3 = vector.load %arg3[%c0_3, %c0_4] : memref<1x128xf32, #tpu.memory_space<vmem>>, vector<1x128xf32>
    %4 = vector.broadcast %3 : vector<1x128xf32> to vector<8x128xf32>
    %5 = arith.addf %2, %4 : vector<8x128xf32>
    %cst_5 = arith.constant 0.000000e+00 : f32
    %6 = vector.broadcast %cst_5 : f32 to vector<8x128xf32>
    %7 = arith.cmpf oge, %5, %6 : vector<8x128xf32>
    %cst_6 = arith.constant 0.00999999977 : f32
    %8 = vector.broadcast %cst_6 : f32 to vector<8x128xf32>
    %9 = arith.mulf %8, %5 : vector<8x128xf32>
    %10 = arith.select %7, %5, %9 : vector<8x128xi1>, vector<8x128xf32>
    %c0_7 = arith.constant 0 : index
    %c0_8 = arith.constant 0 : index
    %11 = vector.load %arg4[%c0_7, %c0_8] : memref<128x1024xf32, #tpu.memory_space<vmem>>, vector<128x1024xf32>
    %cst_9 = arith.constant dense<0.000000e+00> : vector<8x1024xf32>
    %12 = tpu.matmul %10, %11, %cst_9 {dimension_numbers = #tpu.dot_dimension_numbers<[1], [0], [0], [1], [0, 0, 1, 1], [], []>} : vector<8x128xf32>, vector<128x1024xf32>, vector<8x1024xf32> -> vector<8x1024xf32>
    %c0_10 = arith.constant 0 : index
    %c0_11 = arith.constant 0 : index
    %13 = vector.load %arg5[%c0_10, %c0_11] : memref<1x1024xf32, #tpu.memory_space<vmem>>, vector<1x1024xf32>
    %14 = vector.broadcast %13 : vector<1x1024xf32> to vector<8x1024xf32>
    %15 = arith.addf %12, %14 : vector<8x1024xf32>
    %cst_12 = arith.constant 0.000000e+00 : f32
    %16 = vector.broadcast %cst_12 : f32 to vector<8x1024xf32>
    %17 = arith.cmpf oge, %15, %16 : vector<8x1024xf32>
    %cst_13 = arith.constant 0.00999999977 : f32
    %18 = vector.broadcast %cst_13 : f32 to vector<8x1024xf32>
    %19 = arith.mulf %18, %15 : vector<8x1024xf32>
    %20 = arith.select %17, %15, %19 : vector<8x1024xi1>, vector<8x1024xf32>
    %21 = arith.truncf %20 : vector<8x1024xf32> to vector<8x1024xbf16>
    %c0_14 = arith.constant 0 : index
    %c0_15 = arith.constant 0 : index
    %22 = vector.load %arg6[%c0_14, %c0_15] : memref<8x1024xbf16, #tpu.memory_space<vmem>>, vector<8x1024xbf16>
    tpu.vector_store %arg6[%c0_14, %c0_15], %21 {strides = array<i32>} : memref<8x1024xbf16, #tpu.memory_space<vmem>>, vector<8x1024xbf16>,
    return
  }
  func.func @transform_0(%arg0: i32) -> (i32, i32) {
    %c0_i32 = arith.constant 0 : i32
    %c0_i32_0 = arith.constant 0 : i32
    %c0_i32_1 = arith.constant 0 : i32
    return %c0_i32, %c0_i32_0 : i32, i32
  }
  func.func @transform_1(%arg0: i32) -> (i32, i32) {
    %c0_i32 = arith.constant 0 : i32
    %c0_i32_0 = arith.constant 0 : i32
    %c0_i32_1 = arith.constant 0 : i32
    return %c0_i32, %c0_i32_0 : i32, i32
  }
  func.func @transform_2(%arg0: i32) -> (i32, i32) {
    %c0_i32 = arith.constant 0 : i32
    %c0_i32_0 = arith.constant 0 : i32
    %c0_i32_1 = arith.constant 0 : i32
    return %c0_i32, %c0_i32_0 : i32, i32
  }
  func.func @transform_3(%arg0: i32) -> (i32, i32) {
    %c0_i32 = arith.constant 0 : i32
    %c0_i32_0 = arith.constant 0 : i32
    %c0_i32_1 = arith.constant 0 : i32
    return %c0_i32, %c0_i32_0 : i32, i32
  }
  func.func @transform_4(%arg0: i32) -> (i32, i32) {
    %c0_i32 = arith.constant 0 : i32
    %c0_i32_0 = arith.constant 0 : i32
    %c0_i32_1 = arith.constant 0 : i32
    return %c0_i32, %c0_i32_0 : i32, i32
  }
  func.func @transform_5(%arg0: i32) -> (i32, i32) {
    %c0_i32 = arith.constant 0 : i32
    %c0_i32_0 = arith.constant 0 : i32
    %c0_i32_1 = arith.constant 0 : i32
    return %c0_i32, %c0_i32_0 : i32, i32
  }
}

module attributes {stable_mosaic.version = 11 : i64} {
  func.func @_phase_gemm_kernel(%arg0: i32, %arg1: i32, %arg2: memref<1x32x256xbf16, #tpu.memory_space<vmem>>, %arg3: memref<1x256x128xbf16, #tpu.memory_space<vmem>>, %arg4: memref<1x128xf32, #tpu.memory_space<vmem>>, %arg5: memref<1x32x128xbf16, #tpu.memory_space<vmem>>) attributes {dimension_semantics = [#tpu.dimension_semantics<parallel>, #tpu.dimension_semantics<parallel>], iteration_bounds = array<i64: 4, 1>, scalar_prefetch = 0 : i64, scratch_operands = 0 : i64, tpu.core_type = #tpu.core_type<tc>, window_params = [{transform_indices = @transform_0, window_bounds = array<i64: 1, 32, 256>}, {transform_indices = @transform_1, window_bounds = array<i64: 1, 256, 128>}, {pipeline_mode = #tpu.pipeline_mode<synchronous>, transform_indices = @transform_2, window_bounds = array<i64: 1, 128>}, {transform_indices = @transform_3, window_bounds = array<i64: 1, 32, 128>}]} {
    %c0 = arith.constant 0 : index
    %c0_0 = arith.constant 0 : index
    %c0_1 = arith.constant 0 : index
    %0 = vector.load %arg2[%c0, %c0_0, %c0_1] : memref<1x32x256xbf16, #tpu.memory_space<vmem>>, vector<1x32x256xbf16>
    %1 = vector.shape_cast %0 : vector<1x32x256xbf16> to vector<32x256xbf16>
    %c0_2 = arith.constant 0 : index
    %c0_3 = arith.constant 0 : index
    %c0_4 = arith.constant 0 : index
    %2 = vector.load %arg3[%c0_2, %c0_3, %c0_4] : memref<1x256x128xbf16, #tpu.memory_space<vmem>>, vector<1x256x128xbf16>
    %3 = vector.shape_cast %2 : vector<1x256x128xbf16> to vector<256x128xbf16>
    %cst = arith.constant dense<0.000000e+00> : vector<32x128xf32>
    %4 = tpu.matmul %1, %3, %cst {dimension_numbers = #tpu.dot_dimension_numbers<[1], [0], [0], [1], [0, 0, 1, 1], [], []>} : vector<32x256xbf16>, vector<256x128xbf16>, vector<32x128xf32> -> vector<32x128xf32>
    %c0_5 = arith.constant 0 : index
    %c0_6 = arith.constant 0 : index
    %5 = vector.load %arg4[%c0_5, %c0_6] : memref<1x128xf32, #tpu.memory_space<vmem>>, vector<1x128xf32>
    %6 = vector.broadcast %5 : vector<1x128xf32> to vector<32x128xf32>
    %7 = arith.addf %4, %6 : vector<32x128xf32>
    %cst_7 = arith.constant 0.000000e+00 : f32
    %8 = vector.broadcast %cst_7 : f32 to vector<32x128xf32>
    %9 = arith.cmpf oge, %7, %8 : vector<32x128xf32>
    %cst_8 = arith.constant 0.00999999977 : f32
    %10 = vector.broadcast %cst_8 : f32 to vector<32x128xf32>
    %11 = arith.mulf %10, %7 : vector<32x128xf32>
    %12 = arith.select %9, %7, %11 : vector<32x128xi1>, vector<32x128xf32>
    %13 = arith.truncf %12 : vector<32x128xf32> to vector<32x128xbf16>
    %c0_9 = arith.constant 0 : index
    %c0_10 = arith.constant 0 : index
    %c0_11 = arith.constant 0 : index
    %14 = vector.load %arg5[%c0_9, %c0_10, %c0_11] : memref<1x32x128xbf16, #tpu.memory_space<vmem>>, vector<1x32x128xbf16>
    %15 = vector.shape_cast %14 : vector<1x32x128xbf16> to vector<32x128xbf16>
    %16 = vector.shape_cast %13 : vector<32x128xbf16> to vector<1x32x128xbf16>
    tpu.vector_store %arg5[%c0_9, %c0_10, %c0_11], %16 {strides = array<i32>} : memref<1x32x128xbf16, #tpu.memory_space<vmem>>, vector<1x32x128xbf16>,
    return
  }
  func.func @transform_0(%arg0: i32, %arg1: i32) -> (i32, i32, i32) {
    %c0_i32 = arith.constant 0 : i32
    %c0_i32_0 = arith.constant 0 : i32
    return %arg0, %arg1, %c0_i32 : i32, i32, i32
  }
  func.func @transform_1(%arg0: i32, %arg1: i32) -> (i32, i32, i32) {
    %c0_i32 = arith.constant 0 : i32
    %c0_i32_0 = arith.constant 0 : i32
    %c0_i32_1 = arith.constant 0 : i32
    return %arg0, %c0_i32, %c0_i32_0 : i32, i32, i32
  }
  func.func @transform_2(%arg0: i32, %arg1: i32) -> (i32, i32) {
    %c0_i32 = arith.constant 0 : i32
    %c0_i32_0 = arith.constant 0 : i32
    %c0_i32_1 = arith.constant 0 : i32
    return %c0_i32, %c0_i32_0 : i32, i32
  }
  func.func @transform_3(%arg0: i32, %arg1: i32) -> (i32, i32, i32) {
    %c0_i32 = arith.constant 0 : i32
    %c0_i32_0 = arith.constant 0 : i32
    return %arg0, %arg1, %c0_i32 : i32, i32, i32
  }
}

module attributes {stable_mosaic.version = 11 : i64} {
  func.func @_phase_gemm_kernel(%arg0: i32, %arg1: i32, %arg2: memref<1x128x256xbf16, #tpu.memory_space<vmem>>, %arg3: memref<1x256x128xbf16, #tpu.memory_space<vmem>>, %arg4: memref<1x128xf32, #tpu.memory_space<vmem>>, %arg5: memref<1x128x128xbf16, #tpu.memory_space<vmem>>) attributes {dimension_semantics = [#tpu.dimension_semantics<parallel>, #tpu.dimension_semantics<parallel>], iteration_bounds = array<i64: 4, 1>, scalar_prefetch = 0 : i64, scratch_operands = 0 : i64, tpu.core_type = #tpu.core_type<tc>, window_params = [{transform_indices = @transform_0, window_bounds = array<i64: 1, 128, 256>}, {transform_indices = @transform_1, window_bounds = array<i64: 1, 256, 128>}, {pipeline_mode = #tpu.pipeline_mode<synchronous>, transform_indices = @transform_2, window_bounds = array<i64: 1, 128>}, {transform_indices = @transform_3, window_bounds = array<i64: 1, 128, 128>}]} {
    %c0 = arith.constant 0 : index
    %c0_0 = arith.constant 0 : index
    %c0_1 = arith.constant 0 : index
    %0 = vector.load %arg2[%c0, %c0_0, %c0_1] : memref<1x128x256xbf16, #tpu.memory_space<vmem>>, vector<1x128x256xbf16>
    %1 = vector.shape_cast %0 : vector<1x128x256xbf16> to vector<128x256xbf16>
    %c0_2 = arith.constant 0 : index
    %c0_3 = arith.constant 0 : index
    %c0_4 = arith.constant 0 : index
    %2 = vector.load %arg3[%c0_2, %c0_3, %c0_4] : memref<1x256x128xbf16, #tpu.memory_space<vmem>>, vector<1x256x128xbf16>
    %3 = vector.shape_cast %2 : vector<1x256x128xbf16> to vector<256x128xbf16>
    %cst = arith.constant dense<0.000000e+00> : vector<128x128xf32>
    %4 = tpu.matmul %1, %3, %cst {dimension_numbers = #tpu.dot_dimension_numbers<[1], [0], [0], [1], [0, 0, 1, 1], [], []>} : vector<128x256xbf16>, vector<256x128xbf16>, vector<128x128xf32> -> vector<128x128xf32>
    %c0_5 = arith.constant 0 : index
    %c0_6 = arith.constant 0 : index
    %5 = vector.load %arg4[%c0_5, %c0_6] : memref<1x128xf32, #tpu.memory_space<vmem>>, vector<1x128xf32>
    %6 = vector.broadcast %5 : vector<1x128xf32> to vector<128x128xf32>
    %7 = arith.addf %4, %6 : vector<128x128xf32>
    %cst_7 = arith.constant 0.000000e+00 : f32
    %8 = vector.broadcast %cst_7 : f32 to vector<128x128xf32>
    %9 = arith.cmpf oge, %7, %8 : vector<128x128xf32>
    %cst_8 = arith.constant 0.00999999977 : f32
    %10 = vector.broadcast %cst_8 : f32 to vector<128x128xf32>
    %11 = arith.mulf %10, %7 : vector<128x128xf32>
    %12 = arith.select %9, %7, %11 : vector<128x128xi1>, vector<128x128xf32>
    %13 = arith.truncf %12 : vector<128x128xf32> to vector<128x128xbf16>
    %c0_9 = arith.constant 0 : index
    %c0_10 = arith.constant 0 : index
    %c0_11 = arith.constant 0 : index
    %14 = vector.load %arg5[%c0_9, %c0_10, %c0_11] : memref<1x128x128xbf16, #tpu.memory_space<vmem>>, vector<1x128x128xbf16>
    %15 = vector.shape_cast %14 : vector<1x128x128xbf16> to vector<128x128xbf16>
    %16 = vector.shape_cast %13 : vector<128x128xbf16> to vector<1x128x128xbf16>
    tpu.vector_store %arg5[%c0_9, %c0_10, %c0_11], %16 {strides = array<i32>} : memref<1x128x128xbf16, #tpu.memory_space<vmem>>, vector<1x128x128xbf16>,
    return
  }
  func.func @transform_0(%arg0: i32, %arg1: i32) -> (i32, i32, i32) {
    %c0_i32 = arith.constant 0 : i32
    %c0_i32_0 = arith.constant 0 : i32
    return %arg0, %arg1, %c0_i32 : i32, i32, i32
  }
  func.func @transform_1(%arg0: i32, %arg1: i32) -> (i32, i32, i32) {
    %c0_i32 = arith.constant 0 : i32
    %c0_i32_0 = arith.constant 0 : i32
    %c0_i32_1 = arith.constant 0 : i32
    return %arg0, %c0_i32, %c0_i32_0 : i32, i32, i32
  }
  func.func @transform_2(%arg0: i32, %arg1: i32) -> (i32, i32) {
    %c0_i32 = arith.constant 0 : i32
    %c0_i32_0 = arith.constant 0 : i32
    %c0_i32_1 = arith.constant 0 : i32
    return %c0_i32, %c0_i32_0 : i32, i32
  }
  func.func @transform_3(%arg0: i32, %arg1: i32) -> (i32, i32, i32) {
    %c0_i32 = arith.constant 0 : i32
    %c0_i32_0 = arith.constant 0 : i32
    return %arg0, %arg1, %c0_i32 : i32, i32, i32
  }
}

module attributes {stable_mosaic.version = 11 : i64} {
  func.func @_phase_gemm_kernel(%arg0: i32, %arg1: i32, %arg2: memref<1x512x128xbf16, #tpu.memory_space<vmem>>, %arg3: memref<1x128x128xbf16, #tpu.memory_space<vmem>>, %arg4: memref<1x128xf32, #tpu.memory_space<vmem>>, %arg5: memref<1x512x128xbf16, #tpu.memory_space<vmem>>) attributes {dimension_semantics = [#tpu.dimension_semantics<parallel>, #tpu.dimension_semantics<parallel>], iteration_bounds = array<i64: 4, 1>, scalar_prefetch = 0 : i64, scratch_operands = 0 : i64, tpu.core_type = #tpu.core_type<tc>, window_params = [{transform_indices = @transform_0, window_bounds = array<i64: 1, 512, 128>}, {transform_indices = @transform_1, window_bounds = array<i64: 1, 128, 128>}, {pipeline_mode = #tpu.pipeline_mode<synchronous>, transform_indices = @transform_2, window_bounds = array<i64: 1, 128>}, {transform_indices = @transform_3, window_bounds = array<i64: 1, 512, 128>}]} {
    %c0 = arith.constant 0 : index
    %c0_0 = arith.constant 0 : index
    %c0_1 = arith.constant 0 : index
    %0 = vector.load %arg2[%c0, %c0_0, %c0_1] : memref<1x512x128xbf16, #tpu.memory_space<vmem>>, vector<1x512x128xbf16>
    %1 = vector.shape_cast %0 : vector<1x512x128xbf16> to vector<512x128xbf16>
    %c0_2 = arith.constant 0 : index
    %c0_3 = arith.constant 0 : index
    %c0_4 = arith.constant 0 : index
    %2 = vector.load %arg3[%c0_2, %c0_3, %c0_4] : memref<1x128x128xbf16, #tpu.memory_space<vmem>>, vector<1x128x128xbf16>
    %3 = vector.shape_cast %2 : vector<1x128x128xbf16> to vector<128x128xbf16>
    %cst = arith.constant dense<0.000000e+00> : vector<512x128xf32>
    %4 = tpu.matmul %1, %3, %cst {dimension_numbers = #tpu.dot_dimension_numbers<[1], [0], [0], [1], [0, 0, 1, 1], [], []>} : vector<512x128xbf16>, vector<128x128xbf16>, vector<512x128xf32> -> vector<512x128xf32>
    %c0_5 = arith.constant 0 : index
    %c0_6 = arith.constant 0 : index
    %5 = vector.load %arg4[%c0_5, %c0_6] : memref<1x128xf32, #tpu.memory_space<vmem>>, vector<1x128xf32>
    %6 = vector.broadcast %5 : vector<1x128xf32> to vector<512x128xf32>
    %7 = arith.addf %4, %6 : vector<512x128xf32>
    %cst_7 = arith.constant 0.000000e+00 : f32
    %8 = vector.broadcast %cst_7 : f32 to vector<512x128xf32>
    %9 = arith.cmpf oge, %7, %8 : vector<512x128xf32>
    %cst_8 = arith.constant 0.00999999977 : f32
    %10 = vector.broadcast %cst_8 : f32 to vector<512x128xf32>
    %11 = arith.mulf %10, %7 : vector<512x128xf32>
    %12 = arith.select %9, %7, %11 : vector<512x128xi1>, vector<512x128xf32>
    %13 = arith.truncf %12 : vector<512x128xf32> to vector<512x128xbf16>
    %c0_9 = arith.constant 0 : index
    %c0_10 = arith.constant 0 : index
    %c0_11 = arith.constant 0 : index
    %14 = vector.load %arg5[%c0_9, %c0_10, %c0_11] : memref<1x512x128xbf16, #tpu.memory_space<vmem>>, vector<1x512x128xbf16>
    %15 = vector.shape_cast %14 : vector<1x512x128xbf16> to vector<512x128xbf16>
    %16 = vector.shape_cast %13 : vector<512x128xbf16> to vector<1x512x128xbf16>
    tpu.vector_store %arg5[%c0_9, %c0_10, %c0_11], %16 {strides = array<i32>} : memref<1x512x128xbf16, #tpu.memory_space<vmem>>, vector<1x512x128xbf16>,
    return
  }
  func.func @transform_0(%arg0: i32, %arg1: i32) -> (i32, i32, i32) {
    %c0_i32 = arith.constant 0 : i32
    %c0_i32_0 = arith.constant 0 : i32
    return %arg0, %arg1, %c0_i32 : i32, i32, i32
  }
  func.func @transform_1(%arg0: i32, %arg1: i32) -> (i32, i32, i32) {
    %c0_i32 = arith.constant 0 : i32
    %c0_i32_0 = arith.constant 0 : i32
    %c0_i32_1 = arith.constant 0 : i32
    return %arg0, %c0_i32, %c0_i32_0 : i32, i32, i32
  }
  func.func @transform_2(%arg0: i32, %arg1: i32) -> (i32, i32) {
    %c0_i32 = arith.constant 0 : i32
    %c0_i32_0 = arith.constant 0 : i32
    %c0_i32_1 = arith.constant 0 : i32
    return %c0_i32, %c0_i32_0 : i32, i32
  }
  func.func @transform_3(%arg0: i32, %arg1: i32) -> (i32, i32, i32) {
    %c0_i32 = arith.constant 0 : i32
    %c0_i32_0 = arith.constant 0 : i32
    return %arg0, %arg1, %c0_i32 : i32, i32, i32
  }
}

module attributes {stable_mosaic.version = 11 : i64} {
  func.func @_phase_gemm_kernel(%arg0: i32, %arg1: i32, %arg2: memref<1x8x128xbf16, #tpu.memory_space<vmem>>, %arg3: memref<1x128x1024xbf16, #tpu.memory_space<vmem>>, %arg4: memref<8x1xf32, #tpu.memory_space<vmem>>, %arg5: memref<1x8x1024xf32, #tpu.memory_space<vmem>>) attributes {dimension_semantics = [#tpu.dimension_semantics<parallel>, #tpu.dimension_semantics<parallel>], iteration_bounds = array<i64: 4, 2>, scalar_prefetch = 0 : i64, scratch_operands = 0 : i64, tpu.core_type = #tpu.core_type<tc>, window_params = [{transform_indices = @transform_0, window_bounds = array<i64: 1, 8, 128>}, {transform_indices = @transform_1, window_bounds = array<i64: 1, 128, 1024>}, {pipeline_mode = #tpu.pipeline_mode<synchronous>, transform_indices = @transform_2, window_bounds = array<i64: 8, 1>}, {transform_indices = @transform_3, window_bounds = array<i64: 1, 8, 1024>}]} {
    %c0 = arith.constant 0 : index
    %c0_0 = arith.constant 0 : index
    %c0_1 = arith.constant 0 : index
    %0 = vector.load %arg2[%c0, %c0_0, %c0_1] : memref<1x8x128xbf16, #tpu.memory_space<vmem>>, vector<1x8x128xbf16>
    %1 = vector.shape_cast %0 : vector<1x8x128xbf16> to vector<8x128xbf16>
    %c0_2 = arith.constant 0 : index
    %c0_3 = arith.constant 0 : index
    %c0_4 = arith.constant 0 : index
    %2 = vector.load %arg3[%c0_2, %c0_3, %c0_4] : memref<1x128x1024xbf16, #tpu.memory_space<vmem>>, vector<1x128x1024xbf16>
    %3 = vector.shape_cast %2 : vector<1x128x1024xbf16> to vector<128x1024xbf16>
    %cst = arith.constant dense<0.000000e+00> : vector<8x1024xf32>
    %4 = tpu.matmul %1, %3, %cst {dimension_numbers = #tpu.dot_dimension_numbers<[1], [0], [0], [1], [0, 0, 1, 1], [], []>} : vector<8x128xbf16>, vector<128x1024xbf16>, vector<8x1024xf32> -> vector<8x1024xf32>
    %c0_5 = arith.constant 0 : index
    %c0_6 = arith.constant 0 : index
    %5 = vector.load %arg4[%c0_5, %c0_6] : memref<8x1xf32, #tpu.memory_space<vmem>>, vector<8x1xf32>
    %6 = vector.broadcast %5 : vector<8x1xf32> to vector<8x1024xf32>
    %7 = arith.addf %4, %6 : vector<8x1024xf32>
    %c0_7 = arith.constant 0 : index
    %c0_8 = arith.constant 0 : index
    %c0_9 = arith.constant 0 : index
    %8 = vector.load %arg5[%c0_7, %c0_8, %c0_9] : memref<1x8x1024xf32, #tpu.memory_space<vmem>>, vector<1x8x1024xf32>
    %9 = vector.shape_cast %8 : vector<1x8x1024xf32> to vector<8x1024xf32>
    %10 = vector.shape_cast %7 : vector<8x1024xf32> to vector<1x8x1024xf32>
    tpu.vector_store %arg5[%c0_7, %c0_8, %c0_9], %10 {strides = array<i32>} : memref<1x8x1024xf32, #tpu.memory_space<vmem>>, vector<1x8x1024xf32>,
    return
  }
  func.func @transform_0(%arg0: i32, %arg1: i32) -> (i32, i32, i32) {
    %c0_i32 = arith.constant 0 : i32
    %c0_i32_0 = arith.constant 0 : i32
    %c0_i32_1 = arith.constant 0 : i32
    return %arg0, %c0_i32, %c0_i32_0 : i32, i32, i32
  }
  func.func @transform_1(%arg0: i32, %arg1: i32) -> (i32, i32, i32) {
    %c0_i32 = arith.constant 0 : i32
    %c0_i32_0 = arith.constant 0 : i32
    return %arg0, %c0_i32, %arg1 : i32, i32, i32
  }
  func.func @transform_2(%arg0: i32, %arg1: i32) -> (i32, i32) {
    %c0_i32 = arith.constant 0 : i32
    %c0_i32_0 = arith.constant 0 : i32
    %c0_i32_1 = arith.constant 0 : i32
    return %c0_i32, %c0_i32_0 : i32, i32
  }
  func.func @transform_3(%arg0: i32, %arg1: i32) -> (i32, i32, i32) {
    %c0_i32 = arith.constant 0 : i32
    %c0_i32_0 = arith.constant 0 : i32
    return %arg0, %c0_i32, %arg1 : i32, i32, i32
  }
}

</mosaic_0001>

<bundles_post_ra>
// kernel: image_decoder_forward.5
= control target key start
LH: loop header
LB: loop body
LE: loop exit
PB: predicated region body
PF: predicated region fallthrough
CT: control target
= control target key end

     0   :  { %10 = vsyncpa [#allocation3], 0  ;;  %s635_s0 = inlined_call_operand.vmem [shape: f32[8,16], index: 0, kind: input, shape index: {}]   ;;  %s636_s1 = inlined_call_operand.hbm [shape: f32[16,128], index: 1, kind: input, shape index: {}]   ;;  %s637_s2 = inlined_call_operand.hbm [shape: f32[1,128], index: 2, kind: input, shape index: {}]   ;;  %s638_s3 = inlined_call_operand.hbm [shape: f32[128,1024], index: 3, kind: input, shape index: {}]   ;;  %s639_s4 = inlined_call_operand.hbm [shape: f32[1,1024], index: 4, kind: input, shape index: {}]   ;;  %s640_s5 = inlined_call_operand.vmem [shape: bf16[8,1024], index: 5, kind: output, shape index: {}]  }
   0x1   :  { %11 = vsyncpa [#allocation5], 0  ;;  %s33_s20 = sshll.u32 %s637_s2, 4  ;;  %s34_s20 = int_to_ptr.hbm [resolvable:$true] %s33_s20 }
   0x2   :  { %12 = vsyncpa [#allocation8], 0  ;;  %s570_s21 = smov [#allocation4]   ;;  %s19_s25 = sshll.u32 %s636_s1, 4  ;;  %s20_s25 = int_to_ptr.hbm [resolvable:$true] %s19_s25 }
   0x3   :  { %s35_s22 = sshll.u32 %s570_s21, 4  ;;  %s571_s26 = smov [#allocation2]   ;;  %s36_s22 = int_to_ptr.vmem [resolvable:$true] %s35_s22 }
   0x4   :  { %38 = dma.hbm_to_vmem [thread:$0]  %s34_s20, 16, %s36_s22, [#allocation5]  }
   0x5   :  { %s21_s27 = sshll.u32 %s571_s26, 4  ;;  %s572_s28 = smov 128   ;;  %s22_s27 = int_to_ptr.vmem [resolvable:$true] %s21_s27 }
   0x6   :  { %s573_s29 = smov 8   ;;  %s43_s2 = sshll.u32 %s638_s3, 4  ;;  %s44_s2 = int_to_ptr.hbm [resolvable:$true] %s43_s2 }
   0x7   :  { %27 = dma.hbm_to_vmem [thread:$0]  %s20_s25, 256, %s22_s27, [#allocation3], %s572_s28, %s572_s28, %s573_s29  }
   0x8   :  { %s574_s7 = smov [#allocation6]   ;;  %s57_s1 = sshll.u32 %s639_s4, 4  ;;  %s58_s1 = int_to_ptr.hbm [resolvable:$true] %s57_s1 }
   0x9   :  { %s45_s8 = sshll.u32 %s574_s7, 4  ;;  %s575_s11 = smov 1024   ;;  %s46_s8 = int_to_ptr.vmem [resolvable:$true] %s45_s8 }
   0xa   :  { %s576_s12 = smov 64   ;;  %s577_s13 = smov [#allocation7]  }
   0xb   :  { %51 = dma.hbm_to_vmem [thread:$0]  %s44_s2, 16384, %s46_s8, [#allocation5], %s575_s11, %s575_s11, %s576_s12  }
   0xc   :  { %s59_s14 = sshll.u32 %s577_s13, 4  ;;  %s60_s14 = int_to_ptr.vmem [resolvable:$true] %s59_s14 }
   0xd   :  { %62 = dma.hbm_to_vmem [thread:$0]  %s58_s1, 128, %s60_s14, [#allocation8]  }
   0xe   :  { %564 = dma.done.wait [#allocation3], 256  }
   0xf   :  { %565 = vsyncadd [#allocation3], 4294967040 }
  0x10   :  { %566 = dma.done.wait [#allocation5], 16400  }
  0x11   :  { %567 = vsyncadd [#allocation5], 4294950896 }
  0x12   :  { %568 = dma.done.wait [#allocation8], 128  }
  0x13   :  { %569 = vsyncadd [#allocation8], 4294967168  ;;  %v81_v0 = vld [vmem:[#allocation2 + $0x8] sm:$0xff]  ;;  %v80_v1 = vld [vmem:[#allocation2] sm:$0xff]  ;;  %vm86_vm0 = vcmask 130048  }
  0x14   :  { %v79_v2 = vld [vmem:[%s635_s0] sm:$0xff]  ;;  %104 = vmatpush.msra.mxu0 %v81_v0  ;;  %v233_v3 = vld [vmem:[#allocation6 + $0x3c0] sm:$0xff]  ;;  %v236_v6 = vld [vmem:[#allocation6 + $0x3d8] sm:$0xff] }
  0x15   :  { %v234_v4 = vld [vmem:[#allocation6 + $0x3c8] sm:$0xff]  ;;  %v235_v5 = vld [vmem:[#allocation6 + $0x3d0] sm:$0xff]  ;;  %259 = vmatpush.msra.mxu1 %v233_v3  ;;  %v225_v7 = vld [vmem:[#allocation6 + $0x380] sm:$0xff] }
  0x16   :  { %279 = vmatpush.msra.mxu2 %v234_v4  ;;  %v226_v8 = vld [vmem:[#allocation6 + $0x388] sm:$0xff]  ;;  %105 = vmatpush.msra.mxu0 %v80_v1  ;;  %v227_v9 = vld [vmem:[#allocation6 + $0x390] sm:$0xff]  ;;  %v217_v10 = vld [vmem:[#allocation6 + $0x340] sm:$0xff] }
  0x17   :  { %299 = vmatpush.msra.mxu3 %v235_v5  ;;  %458 = vmatmul.msk.f32.vlgmr.msra.gmra.mxu0 %vm86_vm0, %v79_v2  ;;  %v228_v11 = vld [vmem:[#allocation6 + $0x398] sm:$0xff]  ;;  %v218_v12 = vld [vmem:[#allocation6 + $0x348] sm:$0xff]  ;;  %v219_v13 = vld [vmem:[#allocation6 + $0x350] sm:$0xff] }
  0x18   :  { %260 = vmatpush.msra.mxu1 %v225_v7  ;;  %319 = vmatpush.msrb.mxu0 %v236_v6  ;;  %v209_v14 = vld [vmem:[#allocation6 + $0x300] sm:$0xff]  ;;  %v220_v15 = vld [vmem:[#allocation6 + $0x358] sm:$0xff]  ;;  %v210_v16 = vld [vmem:[#allocation6 + $0x308] sm:$0xff] }
  0x19   :  { %280 = vmatpush.msra.mxu2 %v226_v8  ;;  %300 = vmatpush.msra.mxu3 %v227_v9  ;;  %v211_v17 = vld [vmem:[#allocation6 + $0x310] sm:$0xff]  ;;  %v201_v18 = vld [vmem:[#allocation6 + $0x2c0] sm:$0xff]  ;;  %v212_v19 = vld [vmem:[#allocation6 + $0x318] sm:$0xff] }
  0x1a   :  { %261 = vmatpush.msra.mxu1 %v217_v10  ;;  %320 = vmatpush.msrb.mxu0 %v228_v11  ;;  %v202_v20 = vld [vmem:[#allocation6 + $0x2c8] sm:$0xff]  ;;  %v203_v21 = vld [vmem:[#allocation6 + $0x2d0] sm:$0xff]  ;;  %v193_v22 = vld [vmem:[#allocation6 + $0x280] sm:$0xff] }
  0x1b   :  { %281 = vmatpush.msra.mxu2 %v218_v12  ;;  %301 = vmatpush.msra.mxu3 %v219_v13  ;;  %v204_v23 = vld [vmem:[#allocation6 + $0x2d8] sm:$0xff]  ;;  %v194_v24 = vld [vmem:[#allocation6 + $0x288] sm:$0xff]  ;;  %v195_v25 = vld [vmem:[#allocation6 + $0x290] sm:$0xff] }
  0x1c   :  { %262 = vmatpush.msra.mxu1 %v209_v14  ;;  %321 = vmatpush.msrb.mxu0 %v220_v15  ;;  %v185_v26 = vld [vmem:[#allocation6 + $0x240] sm:$0xff]  ;;  %v196_v27 = vld [vmem:[#allocation6 + $0x298] sm:$0xff]  ;;  %v186_v28 = vld [vmem:[#allocation6 + $0x248] sm:$0xff] }
  0x1d   :  { %282 = vmatpush.msra.mxu2 %v210_v16  ;;  %302 = vmatpush.msra.mxu3 %v211_v17  ;;  %v187_v29 = vld [vmem:[#allocation6 + $0x250] sm:$0xff]  ;;  %v177_v30 = vld [vmem:[#allocation6 + $0x200] sm:$0xff]  ;;  %v188_v31 = vld [vmem:[#allocation6 + $0x258] sm:$0xff] }
  0x1e   :  { %263 = vmatpush.msra.mxu1 %v201_v18  ;;  %322 = vmatpush.msrb.mxu0 %v212_v19  ;;  %v178_v32 = vld [vmem:[#allocation6 + $0x208] sm:$0xff]  ;;  %v179_v33 = vld [vmem:[#allocation6 + $0x210] sm:$0xff]  ;;  %v169_v34 = vld [vmem:[#allocation6 + $0x1c0] sm:$0xff] }
  0x1f   :  { %283 = vmatpush.msra.mxu2 %v202_v20  ;;  %303 = vmatpush.msra.mxu3 %v203_v21  ;;  %v180_v35 = vld [vmem:[#allocation6 + $0x218] sm:$0xff]  ;;  %v170_v36 = vld [vmem:[#allocation6 + $0x1c8] sm:$0xff]  ;;  %v171_v37 = vld [vmem:[#allocation6 + $0x1d0] sm:$0xff] }
  0x20   :  { %264 = vmatpush.msra.mxu1 %v193_v22  ;;  %323 = vmatpush.msrb.mxu0 %v204_v23  ;;  %v161_v38 = vld [vmem:[#allocation6 + $0x180] sm:$0xff]  ;;  %v172_v39 = vld [vmem:[#allocation6 + $0x1d8] sm:$0xff]  ;;  %v162_v40 = vld [vmem:[#allocation6 + $0x188] sm:$0xff] }
  0x21   :  { %284 = vmatpush.msra.mxu2 %v194_v24  ;;  %304 = vmatpush.msra.mxu3 %v195_v25  ;;  %v163_v41 = vld [vmem:[#allocation6 + $0x190] sm:$0xff]  ;;  %v153_v42 = vld [vmem:[#allocation6 + $0x140] sm:$0xff]  ;;  %v164_v43 = vld [vmem:[#allocation6 + $0x198] sm:$0xff] }
  0x22   :  { %265 = vmatpush.msra.mxu1 %v185_v26  ;;  %324 = vmatpush.msrb.mxu0 %v196_v27  ;;  %v154_v44 = vld [vmem:[#allocation6 + $0x148] sm:$0xff]  ;;  %v155_v45 = vld [vmem:[#allocation6 + $0x150] sm:$0xff]  ;;  %v145_v46 = vld [vmem:[#allocation6 + $0x100] sm:$0xff] }
  0x23   :  { %285 = vmatpush.msra.mxu2 %v186_v28  ;;  %305 = vmatpush.msra.mxu3 %v187_v29  ;;  %v156_v47 = vld [vmem:[#allocation6 + $0x158] sm:$0xff]  ;;  %v146_v48 = vld [vmem:[#allocation6 + $0x108] sm:$0xff]  ;;  %v147_v49 = vld [vmem:[#allocation6 + $0x110] sm:$0xff] }
  0x24   :  { %266 = vmatpush.msra.mxu1 %v177_v30  ;;  %325 = vmatpush.msrb.mxu0 %v188_v31  ;;  %v137_v50 = vld [vmem:[#allocation6 + $0xc0] sm:$0xff]  ;;  %v148_v51 = vld [vmem:[#allocation6 + $0x118] sm:$0xff]  ;;  %v138_v52 = vld [vmem:[#allocation6 + $0xc8] sm:$0xff] }
  0x25   :  { %286 = vmatpush.msra.mxu2 %v178_v32  ;;  %306 = vmatpush.msra.mxu3 %v179_v33  ;;  %v139_v53 = vld [vmem:[#allocation6 + $0xd0] sm:$0xff]  ;;  %v129_v54 = vld [vmem:[#allocation6 + $0x80] sm:$0xff]  ;;  %v140_v55 = vld [vmem:[#allocation6 + $0xd8] sm:$0xff] }
  0x26   :  { %267 = vmatpush.msra.mxu1 %v169_v34  ;;  %326 = vmatpush.msrb.mxu0 %v180_v35  ;;  %v130_v56 = vld [vmem:[#allocation6 + $0x88] sm:$0xff]  ;;  %v131_v57 = vld [vmem:[#allocation6 + $0x90] sm:$0xff]  ;;  %v121_v58 = vld [vmem:[#allocation6 + $0x40] sm:$0xff] }
  0x27   :  { %287 = vmatpush.msra.mxu2 %v170_v36  ;;  %307 = vmatpush.msra.mxu3 %v171_v37  ;;  %v132_v59 = vld [vmem:[#allocation6 + $0x98] sm:$0xff]  ;;  %v122_v60 = vld [vmem:[#allocation6 + $0x48] sm:$0xff]  ;;  %v123_v61 = vld [vmem:[#allocation6 + $0x50] sm:$0xff] }
  0x28   :  { %268 = vmatpush.msra.mxu1 %v161_v38  ;;  %327 = vmatpush.msrb.mxu0 %v172_v39  ;;  %v113_v62 = vld [vmem:[#allocation6] sm:$0xff]  ;;  %v124_v63 = vld [vmem:[#allocation6 + $0x58] sm:$0xff]  ;;  %v114_v0 = vld [vmem:[#allocation6 + $0x8] sm:$0xff] }
  0x29   :  { %288 = vmatpush.msra.mxu2 %v162_v40  ;;  %308 = vmatpush.msra.mxu3 %v163_v41  ;;  %v115_v1 = vld [vmem:[#allocation6 + $0x10] sm:$0xff]  ;;  %v237_v2 = vld [vmem:[#allocation6 + $0x3e0] sm:$0xff]  ;;  %v116_v3 = vld [vmem:[#allocation6 + $0x18] sm:$0xff] }
  0x2a   :  { %269 = vmatpush.msra.mxu1 %v153_v42  ;;  %328 = vmatpush.msrb.mxu0 %v164_v43  ;;  %v238_v4 = vld [vmem:[#allocation6 + $0x3e8] sm:$0xff]  ;;  %v239_v5 = vld [vmem:[#allocation6 + $0x3f0] sm:$0xff]  ;;  %v240_v6 = vld [vmem:[#allocation6 + $0x3f8] sm:$0xff] }
  0x2b   :  { %289 = vmatpush.msra.mxu2 %v154_v44  ;;  %309 = vmatpush.msra.mxu3 %v155_v45  ;;  %v229_v7 = vld [vmem:[#allocation6 + $0x3a0] sm:$0xff]  ;;  %v230_v8 = vld [vmem:[#allocation6 + $0x3a8] sm:$0xff]  ;;  %v231_v9 = vld [vmem:[#allocation6 + $0x3b0] sm:$0xff] }
  0x2c   :  { %270 = vmatpush.msra.mxu1 %v145_v46  ;;  %329 = vmatpush.msrb.mxu0 %v156_v47  ;;  %v232_v10 = vld [vmem:[#allocation6 + $0x3b8] sm:$0xff]  ;;  %v221_v11 = vld [vmem:[#allocation6 + $0x360] sm:$0xff]  ;;  %v222_v12 = vld [vmem:[#allocation6 + $0x368] sm:$0xff] }
  0x2d   :  { %290 = vmatpush.msra.mxu2 %v146_v48  ;;  %310 = vmatpush.msra.mxu3 %v147_v49  ;;  %v223_v13 = vld [vmem:[#allocation6 + $0x370] sm:$0xff]  ;;  %v224_v14 = vld [vmem:[#allocation6 + $0x378] sm:$0xff]  ;;  %v213_v15 = vld [vmem:[#allocation6 + $0x320] sm:$0xff] }
  0x2e   :  { %271 = vmatpush.msra.mxu1 %v137_v50  ;;  %330 = vmatpush.msrb.mxu0 %v148_v51  ;;  %v214_v16 = vld [vmem:[#allocation6 + $0x328] sm:$0xff]  ;;  %v215_v17 = vld [vmem:[#allocation6 + $0x330] sm:$0xff]  ;;  %v216_v18 = vld [vmem:[#allocation6 + $0x338] sm:$0xff] }
  0x2f   :  { %291 = vmatpush.msra.mxu2 %v138_v52  ;;  %311 = vmatpush.msra.mxu3 %v139_v53  ;;  %v205_v19 = vld [vmem:[#allocation6 + $0x2e0] sm:$0xff]  ;;  %v206_v20 = vld [vmem:[#allocation6 + $0x2e8] sm:$0xff]  ;;  %v207_v21 = vld [vmem:[#allocation6 + $0x2f0] sm:$0xff] }
  0x30   :  { %272 = vmatpush.msra.mxu1 %v129_v54  ;;  %331 = vmatpush.msrb.mxu0 %v140_v55  ;;  %v208_v22 = vld [vmem:[#allocation6 + $0x2f8] sm:$0xff]  ;;  %v197_v23 = vld [vmem:[#allocation6 + $0x2a0] sm:$0xff]  ;;  %v198_v24 = vld [vmem:[#allocation6 + $0x2a8] sm:$0xff] }
  0x31   :  { %292 = vmatpush.msra.mxu2 %v130_v56  ;;  %312 = vmatpush.msra.mxu3 %v131_v57  ;;  %v199_v25 = vld [vmem:[#allocation6 + $0x2b0] sm:$0xff]  ;;  %v200_v26 = vld [vmem:[#allocation6 + $0x2b8] sm:$0xff]  ;;  %v189_v27 = vld [vmem:[#allocation6 + $0x260] sm:$0xff] }
  0x32   :  { %273 = vmatpush.msra.mxu1 %v121_v58  ;;  %332 = vmatpush.msrb.mxu0 %v132_v59  ;;  %v190_v28 = vld [vmem:[#allocation6 + $0x268] sm:$0xff]  ;;  %v191_v29 = vld [vmem:[#allocation6 + $0x270] sm:$0xff]  ;;  %v192_v30 = vld [vmem:[#allocation6 + $0x278] sm:$0xff] }
  0x33   :  { %293 = vmatpush.msra.mxu2 %v122_v60  ;;  %313 = vmatpush.msra.mxu3 %v123_v61  ;;  %v181_v31 = vld [vmem:[#allocation6 + $0x220] sm:$0xff]  ;;  %v182_v32 = vld [vmem:[#allocation6 + $0x228] sm:$0xff]  ;;  %v183_v33 = vld [vmem:[#allocation6 + $0x230] sm:$0xff] }
  0x34   :  { %274 = vmatpush.msra.mxu1 %v113_v62  ;;  %333 = vmatpush.msrb.mxu0 %v124_v63  ;;  %v184_v34 = vld [vmem:[#allocation6 + $0x238] sm:$0xff]  ;;  %v173_v35 = vld [vmem:[#allocation6 + $0x1e0] sm:$0xff]  ;;  %v174_v36 = vld [vmem:[#allocation6 + $0x1e8] sm:$0xff] }
  0x35   :  { %294 = vmatpush.msra.mxu2 %v114_v0  ;;  %314 = vmatpush.msra.mxu3 %v115_v1  ;;  %v175_v37 = vld [vmem:[#allocation6 + $0x1f0] sm:$0xff]  ;;  %v176_v38 = vld [vmem:[#allocation6 + $0x1f8] sm:$0xff]  ;;  %v165_v39 = vld [vmem:[#allocation6 + $0x1a0] sm:$0xff] }
  0x36   :  { %339 = vmatpush.msrb.mxu1 %v237_v2  ;;  %334 = vmatpush.msrb.mxu0 %v116_v3  ;;  %v166_v40 = vld [vmem:[#allocation6 + $0x1a8] sm:$0xff]  ;;  %v167_v41 = vld [vmem:[#allocation6 + $0x1b0] sm:$0xff]  ;;  %v168_v42 = vld [vmem:[#allocation6 + $0x1b8] sm:$0xff] }
  0x37   :  { %359 = vmatpush.msrb.mxu2 %v238_v4  ;;  %379 = vmatpush.msrb.mxu3 %v239_v5  ;;  %v157_v43 = vld [vmem:[#allocation6 + $0x160] sm:$0xff]  ;;  %v158_v44 = vld [vmem:[#allocation6 + $0x168] sm:$0xff]  ;;  %v159_v45 = vld [vmem:[#allocation6 + $0x170] sm:$0xff] }
  0x38   :  { %399 = vmatpush.msra.mxu0 %v240_v6  ;;  %340 = vmatpush.msrb.mxu1 %v229_v7  ;;  %v160_v46 = vld [vmem:[#allocation6 + $0x178] sm:$0xff]  ;;  %v149_v47 = vld [vmem:[#allocation6 + $0x120] sm:$0xff]  ;;  %v150_v48 = vld [vmem:[#allocation6 + $0x128] sm:$0xff] }
  0x39   :  { %360 = vmatpush.msrb.mxu2 %v230_v8  ;;  %380 = vmatpush.msrb.mxu3 %v231_v9  ;;  %v151_v49 = vld [vmem:[#allocation6 + $0x130] sm:$0xff]  ;;  %v152_v50 = vld [vmem:[#allocation6 + $0x138] sm:$0xff]  ;;  %v141_v51 = vld [vmem:[#allocation6 + $0xe0] sm:$0xff] }
  0x3a   :  { %400 = vmatpush.msra.mxu0 %v232_v10  ;;  %341 = vmatpush.msrb.mxu1 %v221_v11  ;;  %v142_v52 = vld [vmem:[#allocation6 + $0xe8] sm:$0xff]  ;;  %v143_v53 = vld [vmem:[#allocation6 + $0xf0] sm:$0xff]  ;;  %v144_v54 = vld [vmem:[#allocation6 + $0xf8] sm:$0xff] }
  0x3b   :  { %361 = vmatpush.msrb.mxu2 %v222_v12  ;;  %381 = vmatpush.msrb.mxu3 %v223_v13  ;;  %v133_v55 = vld [vmem:[#allocation6 + $0xa0] sm:$0xff]  ;;  %v134_v56 = vld [vmem:[#allocation6 + $0xa8] sm:$0xff]  ;;  %v135_v57 = vld [vmem:[#allocation6 + $0xb0] sm:$0xff] }
  0x3c   :  { %401 = vmatpush.msra.mxu0 %v224_v14  ;;  %342 = vmatpush.msrb.mxu1 %v213_v15  ;;  %v136_v58 = vld [vmem:[#allocation6 + $0xb8] sm:$0xff]  ;;  %v125_v59 = vld [vmem:[#allocation6 + $0x60] sm:$0xff]  ;;  %v126_v60 = vld [vmem:[#allocation6 + $0x68] sm:$0xff] }
  0x3d   :  { %362 = vmatpush.msrb.mxu2 %v214_v16  ;;  %382 = vmatpush.msrb.mxu3 %v215_v17  ;;  %v127_v61 = vld [vmem:[#allocation6 + $0x70] sm:$0xff]  ;;  %v128_v62 = vld [vmem:[#allocation6 + $0x78] sm:$0xff]  ;;  %v117_v63 = vld [vmem:[#allocation6 + $0x20] sm:$0xff] }
  0x3e   :  { %402 = vmatpush.msra.mxu0 %v216_v18  ;;  %343 = vmatpush.msrb.mxu1 %v205_v19  ;;  %v118_v0 = vld [vmem:[#allocation6 + $0x28] sm:$0xff]  ;;  %v119_v1 = vld [vmem:[#allocation6 + $0x30] sm:$0xff]  ;;  %v120_v2 = vld [vmem:[#allocation6 + $0x38] sm:$0xff] }
  0x3f   :  { %363 = vmatpush.msrb.mxu2 %v206_v20  ;;  %383 = vmatpush.msrb.mxu3 %v207_v21  ;;  %v467_v3 = vld [vmem:[#allocation4] ss:$0 sm:$0xff]  ;;  %v241_v8 = vld [vmem:[#allocation7] sm:$0xff] }
  0x40   :  { %403 = vmatpush.msra.mxu0 %v208_v22  ;;  %344 = vmatpush.msrb.mxu1 %v197_v23  ;;  %v243_v9 = vperm.slane %v241_v8, 0  ;;  %v246_v11 = vperm.slane %v241_v8, 3  ;;  %v244_v14 = vperm.slane %v241_v8, 1  ;;  %v245_v16 = vperm.slane %v241_v8, 2 }
  0x41   :  { %364 = vmatpush.msrb.mxu2 %v198_v24  ;;  %384 = vmatpush.msrb.mxu3 %v199_v25  ;;  %v247_v21 = vperm.slane %v241_v8, 4  ;;  %v250_v25 = vperm.slane %v241_v8, 7 }
  0x42   :  { %404 = vmatpush.msra.mxu0 %v200_v26  ;;  %345 = vmatpush.msrb.mxu1 %v189_v27 }
  0x43   :  { %365 = vmatpush.msrb.mxu2 %v190_v28  ;;  %385 = vmatpush.msrb.mxu3 %v191_v29  ;;  %v248_v29 = vperm.slane %v241_v8, 5 }
  0x44   :  { %405 = vmatpush.msra.mxu0 %v192_v30  ;;  %346 = vmatpush.msrb.mxu1 %v181_v31 }
  0x45   :  { %366 = vmatpush.msrb.mxu2 %v182_v32  ;;  %386 = vmatpush.msrb.mxu3 %v183_v33  ;;  %v249_v33 = vperm.slane %v241_v8, 6 }
  0x46   :  { %406 = vmatpush.msra.mxu0 %v184_v34  ;;  %347 = vmatpush.msrb.mxu1 %v173_v35 }
  0x47   :  { %367 = vmatpush.msrb.mxu2 %v174_v36  ;;  %387 = vmatpush.msrb.mxu3 %v175_v37 }
  0x48   :  { %407 = vmatpush.msra.mxu0 %v176_v38  ;;  %348 = vmatpush.msrb.mxu1 %v165_v39 }
  0x49   :  { %368 = vmatpush.msrb.mxu2 %v166_v40  ;;  %388 = vmatpush.msrb.mxu3 %v167_v41 }
  0x4a   :  { %408 = vmatpush.msra.mxu0 %v168_v42  ;;  %349 = vmatpush.msrb.mxu1 %v157_v43 }
  0x4b   :  { %369 = vmatpush.msrb.mxu2 %v158_v44  ;;  %389 = vmatpush.msrb.mxu3 %v159_v45 }
  0x4c   :  { %409 = vmatpush.msra.mxu0 %v160_v46  ;;  %350 = vmatpush.msrb.mxu1 %v149_v47 }
  0x4d   :  { %370 = vmatpush.msrb.mxu2 %v150_v48  ;;  %390 = vmatpush.msrb.mxu3 %v151_v49 }
  0x4e   :  { %410 = vmatpush.msra.mxu0 %v152_v50  ;;  %351 = vmatpush.msrb.mxu1 %v141_v51 }
  0x4f   :  { %371 = vmatpush.msrb.mxu2 %v142_v52  ;;  %391 = vmatpush.msrb.mxu3 %v143_v53 }
  0x50   :  { %411 = vmatpush.msra.mxu0 %v144_v54  ;;  %352 = vmatpush.msrb.mxu1 %v133_v55 }
  0x51   :  { %372 = vmatpush.msrb.mxu2 %v134_v56  ;;  %392 = vmatpush.msrb.mxu3 %v135_v57 }
  0x52   :  { %412 = vmatpush.msra.mxu0 %v136_v58  ;;  %353 = vmatpush.msrb.mxu1 %v125_v59 }
  0x53   :  { %373 = vmatpush.msrb.mxu2 %v126_v60  ;;  %393 = vmatpush.msrb.mxu3 %v127_v61 }
  0x54   :  { %413 = vmatpush.msra.mxu0 %v128_v62  ;;  %354 = vmatpush.msrb.mxu1 %v117_v63 }
  0x55   :  { %374 = vmatpush.msrb.mxu2 %v118_v0  ;;  %394 = vmatpush.msrb.mxu3 %v119_v1 }
  0x56   :  { %414 = vmatpush.msra.mxu0 %v120_v2 }
  0x94   :  { %v107_v4 = vpop.f32.mrf.mxu0 }
  0x95   :  { %v108_v5 = vadd.f32 %v467_v3, %v107_v4 }
  0x97   :  { %vm110_vm1 = vcmp.ge.f32.partialorder %v108_v5, 0.0  ;;  %v111_v6 = vmul.f32 0.01, %v108_v5 }
  0x99   :  { %v112_v7 = vsel %vm110_vm1, %v108_v5, %v111_v6 }
  0x9a   :  { %275 = vmatmul.f32.vlgmr.msra.gmra.mxu1 %v112_v7  ;;  %295 = vmatmul.f32.vlgmr.msra.gmra.mxu2 %v112_v7 }
  0x9b   :  { %315 = vmatmul.f32.vlgmr.msra.gmra.mxu3 %v112_v7  ;;  %335 = vmatmul.f32.vlgmr.msrb.gmra.mxu0 %v112_v7 }
  0xa2   :  { %355 = vmatmul.f32.vlgmr.msrb.gmra.mxu1 %v112_v7  ;;  %375 = vmatmul.f32.vlgmr.msrb.gmra.mxu2 %v112_v7 }
  0xa3   :  { %395 = vmatmul.f32.vlgmr.msrb.gmra.mxu3 %v112_v7  ;;  %415 = vmatmul.f32.vlgmr.msra.gmra.mxu0 %v112_v7 }
 0x117   :  { %v276_v10 = vpop.f32.mrf.mxu1 }
 0x118   :  { %v336_v12 = vpop.f32.mrf.mxu0  ;;  %v277_v13 = vadd.f32 %v276_v10, %v243_v9 }
 0x119   :  { %v337_v15 = vadd.f32 %v336_v12, %v246_v11 }
 0x11a   :  { %v427_v18 = vmul.f32 0.01, %v277_v13  ;;  %vm419_vm2 = vcmp.ge.f32.partialorder %v277_v13, 0.0 }
 0x11b   :  { %v430_v22 = vmul.f32 0.01, %v337_v15  ;;  %vm422_vm3 = vcmp.ge.f32.partialorder %v337_v15, 0.0 }
 0x11c   :  { %v435_v30 = vsel %vm419_vm2, %v277_v13, %v427_v18 }
 0x11d   :  { %v296_v17 = vpop.f32.mrf.mxu2  ;;  %v438_v34 = vsel %vm422_vm3, %v337_v15, %v430_v22 }
 0x11e   :  { %v297_v19 = vadd.f32 %v296_v17, %v244_v14  ;;  %v316_v20 = vpop.f32.mrf.mxu3 }
 0x11f   :  { %v317_v23 = vadd.f32 %v316_v20, %v245_v16  ;;  %v356_v24 = vpop.f32.mrf.mxu1 }
 0x120   :  { %vm420_vm4 = vcmp.ge.f32.partialorder %v297_v19, 0.0  ;;  %v428_v26 = vmul.f32 0.01, %v297_v19  ;;  %v416_v27 = vpop.f32.mrf.mxu0  ;;  %v357_v32 = vadd.f32 %v356_v24, %v247_v21 }
 0x121   :  { %vm421_vm5 = vcmp.ge.f32.partialorder %v317_v23, 0.0  ;;  %v429_v28 = vmul.f32 0.01, %v317_v23  ;;  %v417_v37 = vadd.f32 %v416_v27, %v250_v25 }
 0x122   :  { %v436_v31 = vsel %vm420_vm4, %v297_v19, %v428_v26  ;;  %v431_v40 = vmul.f32 0.01, %v357_v32  ;;  %vm423_vm6 = vcmp.ge.f32.partialorder %v357_v32, 0.0 }
 0x123   :  { %v443_v35 = vpack.c.bf16 %v436_v31, %v435_v30  ;;  %v437_v36 = vsel %vm421_vm5, %v317_v23, %v429_v28  ;;  %v434_v43 = vmul.f32 0.01, %v417_v37  ;;  %vm426_vm7 = vcmp.ge.f32.partialorder %v417_v37, 0.0 }
 0x124   :  { %v444_v38 = vpack.c.bf16 %v438_v34, %v437_v36  ;;  %v439_v47 = vsel %vm423_vm6, %v357_v32, %v431_v40 }
 0x125   :  { %447 = vst [vmem:[%s640_s5] sm:$0xff] %v443_v35  ;;  %v376_v39 = vpop.f32.mrf.mxu2  ;;  %v442_v49 = vsel %vm426_vm7, %v417_v37, %v434_v43 }
 0x126   :  { %448 = vst [vmem:[%s640_s5 + $0x8] sm:$0xff] %v444_v38  ;;  %v377_v41 = vadd.f32 %v376_v39, %v248_v29  ;;  %v396_v42 = vpop.f32.mrf.mxu3 }
 0x127   :  { %v397_v44 = vadd.f32 %v396_v42, %v249_v33 }
 0x128   :  { %vm424_vm8 = vcmp.ge.f32.partialorder %v377_v41, 0.0  ;;  %v432_v45 = vmul.f32 0.01, %v377_v41 }
 0x129   :  { %vm425_vm9 = vcmp.ge.f32.partialorder %v397_v44, 0.0  ;;  %v433_v46 = vmul.f32 0.01, %v397_v44 }
 0x12a   :  { %v440_v48 = vsel %vm424_vm8, %v377_v41, %v432_v45 }
 0x12b   :  { %v445_v50 = vpack.c.bf16 %v440_v48, %v439_v47  ;;  %v441_v51 = vsel %vm425_vm9, %v397_v44, %v433_v46 }
 0x12c   :  { %v446_v52 = vpack.c.bf16 %v442_v49, %v441_v51 }
 0x12d   :  { %449 = vst [vmem:[%s640_s5 + $0x10] sm:$0xff] %v445_v50 }
 0x12e   :  { %450 = vst [vmem:[%s640_s5 + $0x18] sm:$0xff] %v446_v52 }
 0x12f   :  { %455 = vsyncpa [#allocation3], 1 }
 0x130   :  { %456 = vsyncpa [#allocation5], 1 }
 0x131   :  { %457 = vsyncpa [#allocation8], 1 }

// kernel: image_decoder_forward.6
= control target key start
LH: loop header
LB: loop body
LE: loop exit
PB: predicated region body
PF: predicated region fallthrough
CT: control target
= control target key end

     0   :  { %s761_s12 = smov 0   ;;  %s763_s13 = smov 0   ;;  %s823_s0 = inlined_call_operand.vmem [shape: bf16[4,32,256], index: 0, kind: input, shape index: {}]   ;;  %s824_s1 = inlined_call_operand.vmem [shape: bf16[4,256,128], index: 1, kind: input, shape index: {}]   ;;  %s825_s2 = inlined_call_operand.vmem [shape: f32[1,128], index: 2, kind: input, shape index: {}]   ;;  %s826_s3 = inlined_call_operand.vmem [shape: bf16[4,32,128], index: 3, kind: output, shape index: {}]  }
   0x1   :  { %s765_s14 = smov 0  }
   0x2 LB: > { %s25_s15 = sadd.s32 1, %s735_s13  ;;  %p553_p0 = scmp.ge.s32.totalorder %s739_s14, 1  ;;  %s739_s14 = sphi %s765_s14, %s13_s14   ;;  %s735_s13 = sphi %s763_s13, %s828_s13   ;;  %s731_s12 = sphi %s761_s12, %s827_s12  }
   0x3   : > { %p27_p1 = scmp.ge.s32.totalorder %s25_s15, 4  ;;  %p169_p2 = scmp.lt.s32.totalorder %s739_s14, 5 }
   0x5   : > { %s830_s15 = smov (%p27_p1, %s25_s15), 0  ;;  %p170_p3 = pnand %p553_p0, %p169_p2 }
   0x6   : > { %p208_p4 = scmp.lt.s32.totalorder (!%p170_p3), %s731_s12, 3 }
   0x7   : > { %173 = sbr.rel (%p170_p3) target bundleno = 197 (0xc5), region = 32 }
   0xc   : > { %s832_s12 = smov (!%p208_p4, %s731_s12), 3  ;;  %v716_v28 = vld [vmem:[%s825_s2] ss:$0 sm:$0xff] }
   0xd   : > { %s643_s16 = sshll.u32 %s832_s12, 7  ;;  %s642_s20 = sshll.u32 %s832_s12, 5 }
   0xe   : > { %s785_s19 = scalar_lea.vmem %s824_s1, %s643_s16  ;;  %s216_s23 = scalar_lea.vmem %s823_s0, %s642_s20 }
   0xf   : > { %v656_v0 = vld [vmem:[%s785_s19 + $0x38] sm:$0xff]  ;;  %v655_v2 = vld [vmem:[%s785_s19 + $0x30] sm:$0xff]  ;;  %v654_v4 = vld [vmem:[%s785_s19 + $0x28] sm:$0xff]  ;;  %s644_s26 = sshll.u32 %s832_s12, 4 }
  0x10   : > { %v664_v1 = vld [vmem:[%s785_s19 + $0x78] sm:$0xff]  ;;  %389 = vmatpush.bf16.msra.mxu0 %v656_v0  ;;  %676 = vmatpush.bf16.msra.mxu2 %v656_v0  ;;  %v663_v3 = vld [vmem:[%s785_s19 + $0x70] sm:$0xff]  ;;  %v662_v5 = vld [vmem:[%s785_s19 + $0x68] sm:$0xff]  ;;  %s231_s29 = scalar_lea.vmem %s826_s3, %s644_s26 }
  0x11   : > { %408 = vmatpush.bf16.msra.mxu1 %v664_v1  ;;  %684 = vmatpush.bf16.msra.mxu3 %v664_v1  ;;  %v653_v6 = vld [vmem:[%s785_s19 + $0x20] sm:$0xff]  ;;  %v652_v8 = vld [vmem:[%s785_s19 + $0x18] sm:$0xff]  ;;  %v651_v10 = vld [vmem:[%s785_s19 + $0x10] sm:$0xff] }
  0x12   : > { %v661_v7 = vld [vmem:[%s785_s19 + $0x60] sm:$0xff]  ;;  %v660_v9 = vld [vmem:[%s785_s19 + $0x58] sm:$0xff]  ;;  %v659_v11 = vld [vmem:[%s785_s19 + $0x50] sm:$0xff] }
  0x13   : > { %v650_v12 = vld [vmem:[%s785_s19 + $0x8] sm:$0xff]  ;;  %v649_v14 = vld [vmem:[%s785_s19] sm:$0xff]  ;;  %v570_v18 = vld [vmem:[%s216_s23 + $0x10] sm:$0xf] }
  0x14   : > { %390 = vmatpush.bf16.msra.mxu0 %v655_v2  ;;  %677 = vmatpush.bf16.msra.mxu2 %v655_v2  ;;  %v658_v13 = vld [vmem:[%s785_s19 + $0x48] sm:$0xff]  ;;  %v657_v15 = vld [vmem:[%s785_s19 + $0x40] sm:$0xff]  ;;  %v648_v19 = vld [vmem:[%s216_s23 + $0x14] sm:$0xf0] }
  0x15   : > { %409 = vmatpush.bf16.msra.mxu1 %v663_v3  ;;  %685 = vmatpush.bf16.msra.mxu3 %v663_v3  ;;  %v562_v16 = vld [vmem:[%s216_s23] sm:$0xf]  ;;  %v646_v17 = vld [vmem:[%s216_s23 + $0x4] sm:$0xf0]  ;;  %v645_v20 = vld [vmem:[%s216_s23 + $0x4] sm:$0xf]  ;;  %v571_v25 = vor.u32 %v648_v19, %v570_v18 }
  0x16   : > { %v564_v21 = vld [vmem:[%s216_s23 + $0x8] sm:$0xf0]  ;;  %v647_v22 = vld [vmem:[%s216_s23 + $0x14] sm:$0xf]  ;;  %v572_v23 = vld [vmem:[%s216_s23 + $0x18] sm:$0xf0]  ;;  %v563_v24 = vor.u32 %v646_v17, %v562_v16 }
  0x17   : > { %v567_v26 = vor.u32 %v645_v20, %v564_v21  ;;  %v575_v27 = vor.u32 %v647_v22, %v572_v23 }
  0x18   : > { %391 = vmatpush.bf16.msra.mxu0 %v654_v4  ;;  %678 = vmatpush.bf16.msra.mxu2 %v654_v4 }
  0x19   : > { %410 = vmatpush.bf16.msra.mxu1 %v662_v5  ;;  %686 = vmatpush.bf16.msra.mxu3 %v662_v5 }
  0x1c   : > { %392 = vmatpush.bf16.msra.mxu0 %v653_v6  ;;  %679 = vmatpush.bf16.msra.mxu2 %v653_v6 }
  0x1d   : > { %411 = vmatpush.bf16.msra.mxu1 %v661_v7  ;;  %687 = vmatpush.bf16.msra.mxu3 %v661_v7 }
  0x20   : > { %393 = vmatpush.bf16.msra.mxu0 %v652_v8  ;;  %680 = vmatpush.bf16.msra.mxu2 %v652_v8 }
  0x21   : > { %412 = vmatpush.bf16.msra.mxu1 %v660_v9  ;;  %688 = vmatpush.bf16.msra.mxu3 %v660_v9 }
  0x24   : > { %394 = vmatpush.bf16.msra.mxu0 %v651_v10  ;;  %681 = vmatpush.bf16.msra.mxu2 %v651_v10 }
  0x25   : > { %413 = vmatpush.bf16.msra.mxu1 %v659_v11  ;;  %689 = vmatpush.bf16.msra.mxu3 %v659_v11 }
  0x28   : > { %395 = vmatpush.bf16.msra.mxu0 %v650_v12  ;;  %682 = vmatpush.bf16.msra.mxu2 %v650_v12 }
  0x29   : > { %414 = vmatpush.bf16.msra.mxu1 %v658_v13  ;;  %690 = vmatpush.bf16.msra.mxu3 %v658_v13 }
  0x2c   : > { %396 = vmatpush.bf16.msra.mxu0 %v649_v14  ;;  %683 = vmatpush.bf16.msra.mxu2 %v649_v14 }
  0x2d   : > { %415 = vmatpush.bf16.msra.mxu1 %v657_v15  ;;  %691 = vmatpush.bf16.msra.mxu3 %v657_v15 }
  0x2f   : > { %397 = vmatmul.bf16.vlgmr.msra.gmra.mxu0 %v563_v24  ;;  %402 = vmatmul.bf16.vlgmr.msra.gmra.mxu2 %v571_v25 }
  0x30   : > { %416 = vmatmul.bf16.vlgmr.msra.gmra.mxu1 %v567_v26  ;;  %421 = vmatmul.bf16.vlgmr.msra.gmra.mxu3 %v575_v27 }
  0xac   : > { %v398_v29 = vpop.f32.mrf.mxu0 }
  0xad   : > { %v417_v30 = vpop.f32.mrf.mxu1  ;;  %v399_v31 = vadd.f32 %v716_v28, %v398_v29 }
  0xaf   : > { %v418_v33 = vadd.f32 %v417_v30, %v399_v31 }
  0xb1   : > { %v431_v39 = vmul.f32 0.01, %v418_v33  ;;  %vm427_vm0 = vcmp.ge.f32.partialorder %v418_v33, 0.0 }
  0xb2   : > { %v403_v32 = vpop.f32.mrf.mxu2 }
  0xb3   : > { %v422_v34 = vpop.f32.mrf.mxu3  ;;  %v404_v36 = vadd.f32 %v716_v28, %v403_v32  ;;  %v435_v44 = vsel %vm427_vm0, %v418_v33, %v431_v39 }
  0xb4   : > { %v400_v35 = vpop.f32.mrf.mxu0 }
  0xb5   : > { %v401_v37 = vadd.f32 %v716_v28, %v400_v35  ;;  %v419_v38 = vpop.f32.mrf.mxu1  ;;  %v423_v41 = vadd.f32 %v422_v34, %v404_v36 }
  0xb7   : > { %v420_v40 = vadd.f32 %v419_v38, %v401_v37  ;;  %v433_v49 = vmul.f32 0.01, %v423_v41  ;;  %vm429_vm2 = vcmp.ge.f32.partialorder %v423_v41, 0.0 }
  0xb9   : > { %vm428_vm1 = vcmp.ge.f32.partialorder %v420_v40, 0.0  ;;  %v432_v42 = vmul.f32 0.01, %v420_v40  ;;  %v437_v52 = vsel %vm429_vm2, %v423_v41, %v433_v49 }
  0xba   : > { %v405_v43 = vpop.f32.mrf.mxu2 }
  0xbb   : > { %v436_v45 = vsel %vm428_vm1, %v420_v40, %v432_v42  ;;  %v406_v46 = vadd.f32 %v716_v28, %v405_v43  ;;  %v424_v48 = vpop.f32.mrf.mxu3 }
  0xbc   : > { %v668_v47 = vpack.c.bf16 %v436_v45, %v435_v44 }
  0xbd   : > { %v425_v50 = vadd.f32 %v424_v48, %v406_v46 }
  0xbe   : > { %669 = vst [vmem:[%s231_s29] sm:$0xff] %v668_v47  }
  0xbf   : > { %vm430_vm3 = vcmp.ge.f32.partialorder %v425_v50, 0.0  ;;  %v434_v51 = vmul.f32 0.01, %v425_v50 }
  0xc1   : > { %v438_v53 = vsel %vm430_vm3, %v425_v50, %v434_v51 }
  0xc2   : > { %v673_v54 = vpack.c.bf16 %v438_v53, %v437_v52 }
  0xc4   : > { %675 = vst [vmem:[%s231_s29 + $0x8] sm:$0xff] %v673_v54  }
  0xc5 PF: > { %s13_s14 = sadd.s32 1, %s739_s14   ;;  %s827_s12 = smov %s735_s13 }
  0xc6   : > { %p10_p5 = scmp.ge.s32.totalorder %s13_s14, 6   ;;  %s828_s13 = smov %s830_s15 }
  0xc8   :  { %12 = sbr.rel (!%p10_p5) target bundleno = 2 (0x2), region = 65 }

// kernel: image_decoder_forward.7
= control target key start
LH: loop header
LB: loop body
LE: loop exit
PB: predicated region body
PF: predicated region fallthrough
CT: control target
= control target key end

     0   :  { %s1049_s12 = smov 0   ;;  %s1051_s13 = smov 0   ;;  %s1176_s0 = inlined_call_operand.vmem [shape: bf16[4,128,256], index: 0, kind: input, shape index: {}]   ;;  %s1177_s1 = inlined_call_operand.vmem [shape: bf16[4,256,128], index: 1, kind: input, shape index: {}]   ;;  %s1178_s2 = inlined_call_operand.vmem [shape: f32[1,128], index: 2, kind: input, shape index: {}]   ;;  %s1179_s3 = inlined_call_operand.vmem [shape: bf16[4,128,128], index: 3, kind: output, shape index: {}]  }
   0x1   :  { %s1053_s14 = smov 0  }
   0x2 LB: > { %s25_s15 = sadd.s32 1, %s1023_s13  ;;  %p745_p0 = scmp.ge.s32.totalorder %s1027_s14, 1  ;;  %s1027_s14 = sphi %s1053_s14, %s13_s14   ;;  %s1023_s13 = sphi %s1051_s13, %s1181_s13   ;;  %s1019_s12 = sphi %s1049_s12, %s1180_s12  }
   0x3   : > { %p27_p1 = scmp.ge.s32.totalorder %s25_s15, 4  ;;  %p169_p2 = scmp.lt.s32.totalorder %s1027_s14, 5 }
   0x5   : > { %s1183_s15 = smov (%p27_p1, %s25_s15), 0  ;;  %p170_p3 = pnand %p745_p0, %p169_p2 }
   0x6   : > { %p208_p4 = scmp.lt.s32.totalorder (!%p170_p3), %s1019_s12, 3 }
   0x7   : > { %173 = sbr.rel (%p170_p3) target bundleno = 245 (0xf5), region = 32 }
   0xc   : > { %s1185_s12 = smov (!%p208_p4, %s1019_s12), 3 }
   0xd   : > { %s882_s16 = sshll.u32 %s1185_s12, 7  ;;  %s884_s25 = sshll.u32 %s1185_s12, 6 }
   0xe   : > { %s1075_s19 = scalar_lea.vmem %s1177_s1, %s882_s16  ;;  %s1095_s22 = scalar_lea.vmem %s1176_s0, %s882_s16 }
   0xf   : > { %v908_v0 = vld [vmem:[%s1075_s19 + $0x38] sm:$0xff]  ;;  %v907_v2 = vld [vmem:[%s1075_s19 + $0x30] sm:$0xff]  ;;  %v906_v4 = vld [vmem:[%s1075_s19 + $0x28] sm:$0xff]  ;;  %s1144_s28 = scalar_lea.vmem %s1179_s3, %s884_s25 }
  0x10   : > { %v916_v1 = vld [vmem:[%s1075_s19 + $0x78] sm:$0xff]  ;;  %461 = vmatpush.bf16.msra.mxu0 %v908_v0  ;;  %964 = vmatpush.bf16.msra.mxu2 %v908_v0  ;;  %v915_v3 = vld [vmem:[%s1075_s19 + $0x70] sm:$0xff]  ;;  %v914_v5 = vld [vmem:[%s1075_s19 + $0x68] sm:$0xff] }
  0x11   : > { %510 = vmatpush.bf16.msra.mxu1 %v916_v1  ;;  %972 = vmatpush.bf16.msra.mxu3 %v916_v1  ;;  %v905_v6 = vld [vmem:[%s1075_s19 + $0x20] sm:$0xff]  ;;  %v904_v8 = vld [vmem:[%s1075_s19 + $0x18] sm:$0xff]  ;;  %v903_v10 = vld [vmem:[%s1075_s19 + $0x10] sm:$0xff] }
  0x12   : > { %v913_v7 = vld [vmem:[%s1075_s19 + $0x60] sm:$0xff]  ;;  %v912_v9 = vld [vmem:[%s1075_s19 + $0x58] sm:$0xff]  ;;  %v911_v11 = vld [vmem:[%s1075_s19 + $0x50] sm:$0xff] }
  0x13   : > { %v902_v12 = vld [vmem:[%s1075_s19 + $0x8] sm:$0xff]  ;;  %v901_v14 = vld [vmem:[%s1075_s19] sm:$0xff]  ;;  %v762_v28 = vld [vmem:[%s1095_s22 + $0x10] sm:$0xf] }
  0x14   : > { %462 = vmatpush.bf16.msra.mxu0 %v907_v2  ;;  %965 = vmatpush.bf16.msra.mxu2 %v907_v2  ;;  %v910_v13 = vld [vmem:[%s1075_s19 + $0x48] sm:$0xff]  ;;  %v909_v15 = vld [vmem:[%s1075_s19 + $0x40] sm:$0xff]  ;;  %v888_v29 = vld [vmem:[%s1095_s22 + $0x14] sm:$0xf0] }
  0x15   : > { %511 = vmatpush.bf16.msra.mxu1 %v915_v3  ;;  %973 = vmatpush.bf16.msra.mxu3 %v915_v3  ;;  %v754_v16 = vld [vmem:[%s1095_s22] sm:$0xf]  ;;  %v886_v17 = vld [vmem:[%s1095_s22 + $0x4] sm:$0xf0]  ;;  %v885_v20 = vld [vmem:[%s1095_s22 + $0x4] sm:$0xf]  ;;  %v763_v36 = vor.u32 %v888_v29, %v762_v28 }
  0x16   : > { %v786_v18 = vld [vmem:[%s1095_s22 + $0x40] sm:$0xf]  ;;  %v894_v19 = vld [vmem:[%s1095_s22 + $0x44] sm:$0xf0]  ;;  %v756_v21 = vld [vmem:[%s1095_s22 + $0x8] sm:$0xf0]  ;;  %v755_v24 = vor.u32 %v886_v17, %v754_v16 }
  0x17   : > { %v893_v22 = vld [vmem:[%s1095_s22 + $0x44] sm:$0xf]  ;;  %v788_v23 = vld [vmem:[%s1095_s22 + $0x48] sm:$0xf0]  ;;  %v787_v25 = vor.u32 %v894_v19, %v786_v18  ;;  %v759_v26 = vor.u32 %v885_v20, %v756_v21  ;;  %v794_v30 = vld [vmem:[%s1095_s22 + $0x50] sm:$0xf] }
  0x18   : > { %463 = vmatpush.bf16.msra.mxu0 %v906_v4  ;;  %966 = vmatpush.bf16.msra.mxu2 %v906_v4  ;;  %v791_v27 = vor.u32 %v893_v22, %v788_v23  ;;  %v896_v31 = vld [vmem:[%s1095_s22 + $0x54] sm:$0xf0]  ;;  %v887_v32 = vld [vmem:[%s1095_s22 + $0x14] sm:$0xf]  ;;  %v764_v33 = vld [vmem:[%s1095_s22 + $0x18] sm:$0xf0] }
  0x19   : > { %512 = vmatpush.bf16.msra.mxu1 %v914_v5  ;;  %974 = vmatpush.bf16.msra.mxu3 %v914_v5  ;;  %v895_v34 = vld [vmem:[%s1095_s22 + $0x54] sm:$0xf]  ;;  %v796_v35 = vld [vmem:[%s1095_s22 + $0x58] sm:$0xf0]  ;;  %v795_v37 = vor.u32 %v896_v31, %v794_v30  ;;  %v767_v38 = vor.u32 %v887_v32, %v764_v33  ;;  %v770_v40 = vld [vmem:[%s1095_s22 + $0x20] sm:$0xf] }
  0x1a   : > { %v799_v39 = vor.u32 %v895_v34, %v796_v35  ;;  %v890_v41 = vld [vmem:[%s1095_s22 + $0x24] sm:$0xf0]  ;;  %v802_v42 = vld [vmem:[%s1095_s22 + $0x60] sm:$0xf]  ;;  %v889_v44 = vld [vmem:[%s1095_s22 + $0x24] sm:$0xf] }
  0x1b   : > { %v898_v43 = vld [vmem:[%s1095_s22 + $0x64] sm:$0xf0]  ;;  %v772_v45 = vld [vmem:[%s1095_s22 + $0x28] sm:$0xf0]  ;;  %v897_v46 = vld [vmem:[%s1095_s22 + $0x64] sm:$0xf]  ;;  %v771_v48 = vor.u32 %v890_v41, %v770_v40 }
  0x1c   : > { %464 = vmatpush.bf16.msra.mxu0 %v905_v6  ;;  %967 = vmatpush.bf16.msra.mxu2 %v905_v6  ;;  %v804_v47 = vld [vmem:[%s1095_s22 + $0x68] sm:$0xf0]  ;;  %v803_v49 = vor.u32 %v898_v43, %v802_v42  ;;  %v775_v50 = vor.u32 %v889_v44, %v772_v45  ;;  %v778_v52 = vld [vmem:[%s1095_s22 + $0x30] sm:$0xf]  ;;  %v892_v53 = vld [vmem:[%s1095_s22 + $0x34] sm:$0xf0] }
  0x1d   : > { %513 = vmatpush.bf16.msra.mxu1 %v913_v7  ;;  %975 = vmatpush.bf16.msra.mxu3 %v913_v7  ;;  %v807_v51 = vor.u32 %v897_v46, %v804_v47  ;;  %v810_v54 = vld [vmem:[%s1095_s22 + $0x70] sm:$0xf]  ;;  %v900_v55 = vld [vmem:[%s1095_s22 + $0x74] sm:$0xf0]  ;;  %v891_v56 = vld [vmem:[%s1095_s22 + $0x34] sm:$0xf]  ;;  %v779_v60 = vor.u32 %v892_v53, %v778_v52 }
  0x1e   : > { %v780_v57 = vld [vmem:[%s1095_s22 + $0x38] sm:$0xf0]  ;;  %v899_v58 = vld [vmem:[%s1095_s22 + $0x74] sm:$0xf]  ;;  %v811_v61 = vor.u32 %v900_v55, %v810_v54  ;;  %v1135_v0 = vld [vmem:[%s1178_s2] ss:$0 sm:$0xff] }
  0x1f   : > { %v812_v59 = vld [vmem:[%s1095_s22 + $0x78] sm:$0xf0]  ;;  %v783_v62 = vor.u32 %v891_v56, %v780_v57 }
  0x20   : > { %465 = vmatpush.bf16.msra.mxu0 %v904_v8  ;;  %968 = vmatpush.bf16.msra.mxu2 %v904_v8  ;;  %v815_v63 = vor.u32 %v899_v58, %v812_v59 }
  0x21   : > { %514 = vmatpush.bf16.msra.mxu1 %v912_v9  ;;  %976 = vmatpush.bf16.msra.mxu3 %v912_v9 }
  0x24   : > { %466 = vmatpush.bf16.msra.mxu0 %v903_v10  ;;  %969 = vmatpush.bf16.msra.mxu2 %v903_v10 }
  0x25   : > { %515 = vmatpush.bf16.msra.mxu1 %v911_v11  ;;  %977 = vmatpush.bf16.msra.mxu3 %v911_v11 }
  0x28   : > { %467 = vmatpush.bf16.msra.mxu0 %v902_v12  ;;  %970 = vmatpush.bf16.msra.mxu2 %v902_v12 }
  0x29   : > { %516 = vmatpush.bf16.msra.mxu1 %v910_v13  ;;  %978 = vmatpush.bf16.msra.mxu3 %v910_v13 }
  0x2c   : > { %468 = vmatpush.bf16.msra.mxu0 %v901_v14  ;;  %971 = vmatpush.bf16.msra.mxu2 %v901_v14 }
  0x2d   : > { %517 = vmatpush.bf16.msra.mxu1 %v909_v15  ;;  %979 = vmatpush.bf16.msra.mxu3 %v909_v15 }
  0x2f   : > { %469 = vmatmul.bf16.vlgmr.msra.gmra.mxu0 %v755_v24  ;;  %489 = vmatmul.bf16.vlgmr.msra.gmra.mxu2 %v787_v25 }
  0x30   : > { %518 = vmatmul.bf16.vlgmr.msra.gmra.mxu1 %v759_v26  ;;  %538 = vmatmul.bf16.vlgmr.msra.gmra.mxu3 %v791_v27 }
  0x3f   : > { %474 = vmatmul.bf16.gmra.mxu0 %v763_v36  ;;  %494 = vmatmul.bf16.gmra.mxu2 %v795_v37 }
  0x40   : > { %523 = vmatmul.bf16.gmra.mxu1 %v767_v38  ;;  %543 = vmatmul.bf16.gmra.mxu3 %v799_v39 }
  0x4f   : > { %479 = vmatmul.bf16.gmra.mxu0 %v771_v48  ;;  %499 = vmatmul.bf16.gmra.mxu2 %v803_v49 }
  0x50   : > { %528 = vmatmul.bf16.gmra.mxu1 %v775_v50  ;;  %548 = vmatmul.bf16.gmra.mxu3 %v807_v51 }
  0x5f   : > { %484 = vmatmul.bf16.gmra.mxu0 %v779_v60  ;;  %504 = vmatmul.bf16.gmra.mxu2 %v811_v61 }
  0x60   : > { %533 = vmatmul.bf16.gmra.mxu1 %v783_v62  ;;  %553 = vmatmul.bf16.gmra.mxu3 %v815_v63 }
  0xac   : > { %v470_v1 = vpop.f32.mrf.mxu0 }
  0xad   : > { %v519_v2 = vpop.f32.mrf.mxu1  ;;  %v471_v3 = vadd.f32 %v1135_v0, %v470_v1 }
  0xaf   : > { %v520_v5 = vadd.f32 %v519_v2, %v471_v3 }
  0xb1   : > { %v575_v11 = vmul.f32 0.01, %v520_v5  ;;  %vm559_vm0 = vcmp.ge.f32.partialorder %v520_v5, 0.0 }
  0xb2   : > { %v490_v4 = vpop.f32.mrf.mxu2 }
  0xb3   : > { %v539_v6 = vpop.f32.mrf.mxu3  ;;  %v491_v8 = vadd.f32 %v1135_v0, %v490_v4  ;;  %v591_v16 = vsel %vm559_vm0, %v520_v5, %v575_v11 }
  0xb4   : > { %v472_v7 = vpop.f32.mrf.mxu0 }
  0xb5   : > { %v473_v9 = vadd.f32 %v1135_v0, %v472_v7  ;;  %v521_v10 = vpop.f32.mrf.mxu1  ;;  %v540_v13 = vadd.f32 %v539_v6, %v491_v8 }
  0xb7   : > { %v522_v12 = vadd.f32 %v521_v10, %v473_v9  ;;  %v583_v22 = vmul.f32 0.01, %v540_v13  ;;  %vm567_vm2 = vcmp.ge.f32.partialorder %v540_v13, 0.0 }
  0xb9   : > { %vm560_vm1 = vcmp.ge.f32.partialorder %v522_v12, 0.0  ;;  %v576_v14 = vmul.f32 0.01, %v522_v12  ;;  %v599_v27 = vsel %vm567_vm2, %v540_v13, %v583_v22 }
  0xba   : > { %v492_v15 = vpop.f32.mrf.mxu2 }
  0xbb   : > { %v592_v17 = vsel %vm560_vm1, %v522_v12, %v576_v14  ;;  %v493_v18 = vadd.f32 %v1135_v0, %v492_v15  ;;  %v541_v19 = vpop.f32.mrf.mxu3 }
  0xbc   : > { %v920_v20 = vpack.c.bf16 %v592_v17, %v591_v16  ;;  %v475_v21 = vpop.f32.mrf.mxu0 }
  0xbd   : > { %v542_v23 = vadd.f32 %v541_v19, %v493_v18  ;;  %v524_v24 = vpop.f32.mrf.mxu1  ;;  %v476_v26 = vadd.f32 %v1135_v0, %v475_v21 }
  0xbe   : > { %921 = vst [vmem:[%s1144_s28] sm:$0xff] %v920_v20  }
  0xbf   : > { %vm568_vm3 = vcmp.ge.f32.partialorder %v542_v23, 0.0  ;;  %v584_v25 = vmul.f32 0.01, %v542_v23  ;;  %v525_v31 = vadd.f32 %v524_v24, %v476_v26 }
  0xc1   : > { %v600_v28 = vsel %vm568_vm3, %v542_v23, %v584_v25  ;;  %v577_v37 = vmul.f32 0.01, %v525_v31  ;;  %vm561_vm4 = vcmp.ge.f32.partialorder %v525_v31, 0.0 }
  0xc2   : > { %v940_v29 = vpack.c.bf16 %v600_v28, %v599_v27  ;;  %v495_v30 = vpop.f32.mrf.mxu2 }
  0xc3   : > { %v544_v32 = vpop.f32.mrf.mxu3  ;;  %v496_v34 = vadd.f32 %v1135_v0, %v495_v30  ;;  %v593_v42 = vsel %vm561_vm4, %v525_v31, %v577_v37 }
  0xc4   : > { %960 = vst [vmem:[%s1144_s28 + $0x20] sm:$0xff] %v940_v29   ;;  %v477_v33 = vpop.f32.mrf.mxu0 }
  0xc5   : > { %v478_v35 = vadd.f32 %v1135_v0, %v477_v33  ;;  %v526_v36 = vpop.f32.mrf.mxu1  ;;  %v545_v39 = vadd.f32 %v544_v32, %v496_v34 }
  0xc7   : > { %v527_v38 = vadd.f32 %v526_v36, %v478_v35  ;;  %v585_v48 = vmul.f32 0.01, %v545_v39  ;;  %vm569_vm6 = vcmp.ge.f32.partialorder %v545_v39, 0.0 }
  0xc9   : > { %vm562_vm5 = vcmp.ge.f32.partialorder %v527_v38, 0.0  ;;  %v578_v40 = vmul.f32 0.01, %v527_v38  ;;  %v601_v53 = vsel %vm569_vm6, %v545_v39, %v585_v48 }
  0xca   : > { %v497_v41 = vpop.f32.mrf.mxu2 }
  0xcb   : > { %v594_v43 = vsel %vm562_vm5, %v527_v38, %v578_v40  ;;  %v498_v44 = vadd.f32 %v1135_v0, %v497_v41  ;;  %v546_v45 = vpop.f32.mrf.mxu3 }
  0xcc   : > { %v925_v46 = vpack.c.bf16 %v594_v43, %v593_v42  ;;  %v480_v47 = vpop.f32.mrf.mxu0 }
  0xcd   : > { %v547_v49 = vadd.f32 %v546_v45, %v498_v44  ;;  %v529_v50 = vpop.f32.mrf.mxu1  ;;  %v481_v52 = vadd.f32 %v1135_v0, %v480_v47 }
  0xce   : > { %957 = vst [vmem:[%s1144_s28 + $0x8] sm:$0xff] %v925_v46  }
  0xcf   : > { %vm570_vm7 = vcmp.ge.f32.partialorder %v547_v49, 0.0  ;;  %v586_v51 = vmul.f32 0.01, %v547_v49  ;;  %v530_v57 = vadd.f32 %v529_v50, %v481_v52 }
  0xd1   : > { %v602_v54 = vsel %vm570_vm7, %v547_v49, %v586_v51  ;;  %v579_v63 = vmul.f32 0.01, %v530_v57  ;;  %vm563_vm8 = vcmp.ge.f32.partialorder %v530_v57, 0.0 }
  0xd2   : > { %v945_v55 = vpack.c.bf16 %v602_v54, %v601_v53  ;;  %v500_v56 = vpop.f32.mrf.mxu2 }
  0xd3   : > { %v549_v58 = vpop.f32.mrf.mxu3  ;;  %v501_v60 = vadd.f32 %v1135_v0, %v500_v56  ;;  %v595_v5 = vsel %vm563_vm8, %v530_v57, %v579_v63 }
  0xd4   : > { %961 = vst [vmem:[%s1144_s28 + $0x28] sm:$0xff] %v945_v55   ;;  %v482_v59 = vpop.f32.mrf.mxu0 }
  0xd5   : > { %v483_v61 = vadd.f32 %v1135_v0, %v482_v59  ;;  %v531_v62 = vpop.f32.mrf.mxu1  ;;  %v550_v2 = vadd.f32 %v549_v58, %v501_v60 }
  0xd7   : > { %v532_v1 = vadd.f32 %v531_v62, %v483_v61  ;;  %v587_v11 = vmul.f32 0.01, %v550_v2  ;;  %vm571_vm10 = vcmp.ge.f32.partialorder %v550_v2, 0.0 }
  0xd9   : > { %vm564_vm9 = vcmp.ge.f32.partialorder %v532_v1, 0.0  ;;  %v580_v3 = vmul.f32 0.01, %v532_v1  ;;  %v603_v16 = vsel %vm571_vm10, %v550_v2, %v587_v11 }
  0xda   : > { %v502_v4 = vpop.f32.mrf.mxu2 }
  0xdb   : > { %v596_v6 = vsel %vm564_vm9, %v532_v1, %v580_v3  ;;  %v503_v7 = vadd.f32 %v1135_v0, %v502_v4  ;;  %v551_v8 = vpop.f32.mrf.mxu3 }
  0xdc   : > { %v930_v9 = vpack.c.bf16 %v596_v6, %v595_v5  ;;  %v485_v10 = vpop.f32.mrf.mxu0 }
  0xdd   : > { %v552_v12 = vadd.f32 %v551_v8, %v503_v7  ;;  %v534_v13 = vpop.f32.mrf.mxu1  ;;  %v486_v15 = vadd.f32 %v1135_v0, %v485_v10 }
  0xde   : > { %958 = vst [vmem:[%s1144_s28 + $0x10] sm:$0xff] %v930_v9  }
  0xdf   : > { %vm572_vm11 = vcmp.ge.f32.partialorder %v552_v12, 0.0  ;;  %v588_v14 = vmul.f32 0.01, %v552_v12  ;;  %v535_v20 = vadd.f32 %v534_v13, %v486_v15 }
  0xe1   : > { %v604_v17 = vsel %vm572_vm11, %v552_v12, %v588_v14  ;;  %v581_v26 = vmul.f32 0.01, %v535_v20  ;;  %vm565_vm12 = vcmp.ge.f32.partialorder %v535_v20, 0.0 }
  0xe2   : > { %v950_v18 = vpack.c.bf16 %v604_v17, %v603_v16  ;;  %v505_v19 = vpop.f32.mrf.mxu2 }
  0xe3   : > { %v554_v21 = vpop.f32.mrf.mxu3  ;;  %v506_v23 = vadd.f32 %v1135_v0, %v505_v19  ;;  %v597_v31 = vsel %vm565_vm12, %v535_v20, %v581_v26 }
  0xe4   : > { %962 = vst [vmem:[%s1144_s28 + $0x30] sm:$0xff] %v950_v18   ;;  %v487_v22 = vpop.f32.mrf.mxu0 }
  0xe5   : > { %v488_v24 = vadd.f32 %v1135_v0, %v487_v22  ;;  %v536_v25 = vpop.f32.mrf.mxu1  ;;  %v555_v28 = vadd.f32 %v554_v21, %v506_v23 }
  0xe7   : > { %v537_v27 = vadd.f32 %v536_v25, %v488_v24  ;;  %v589_v36 = vmul.f32 0.01, %v555_v28  ;;  %vm573_vm14 = vcmp.ge.f32.partialorder %v555_v28, 0.0 }
  0xe9   : > { %vm566_vm13 = vcmp.ge.f32.partialorder %v537_v27, 0.0  ;;  %v582_v29 = vmul.f32 0.01, %v537_v27  ;;  %v605_v39 = vsel %vm573_vm14, %v555_v28, %v589_v36 }
  0xea   : > { %v507_v30 = vpop.f32.mrf.mxu2 }
  0xeb   : > { %v598_v32 = vsel %vm566_vm13, %v537_v27, %v582_v29  ;;  %v508_v33 = vadd.f32 %v1135_v0, %v507_v30  ;;  %v556_v35 = vpop.f32.mrf.mxu3 }
  0xec   : > { %v935_v34 = vpack.c.bf16 %v598_v32, %v597_v31 }
  0xed   : > { %v557_v37 = vadd.f32 %v556_v35, %v508_v33 }
  0xee   : > { %959 = vst [vmem:[%s1144_s28 + $0x18] sm:$0xff] %v935_v34  }
  0xef   : > { %vm574_vm15 = vcmp.ge.f32.partialorder %v557_v37, 0.0  ;;  %v590_v38 = vmul.f32 0.01, %v557_v37 }
  0xf1   : > { %v606_v40 = vsel %vm574_vm15, %v557_v37, %v590_v38 }
  0xf2   : > { %v955_v41 = vpack.c.bf16 %v606_v40, %v605_v39 }
  0xf4   : > { %963 = vst [vmem:[%s1144_s28 + $0x38] sm:$0xff] %v955_v41  }
  0xf5 PF: > { %s13_s14 = sadd.s32 1, %s1027_s14   ;;  %s1180_s12 = smov %s1023_s13 }
  0xf6   : > { %p10_p5 = scmp.ge.s32.totalorder %s13_s14, 6   ;;  %s1181_s13 = smov %s1183_s15 }
  0xf8   :  { %12 = sbr.rel (!%p10_p5) target bundleno = 2 (0x2), region = 65 }

// kernel: image_decoder_forward.8
= control target key start
LH: loop header
LB: loop body
LE: loop exit
PB: predicated region body
PF: predicated region fallthrough
CT: control target
= control target key end

     0   :  { %s1642_s12 = smov 0   ;;  %s1644_s13 = smov 0   ;;  %s1833_s0 = inlined_call_operand.vmem [shape: bf16[4,512,128], index: 0, kind: input, shape index: {}]   ;;  %s1834_s1 = inlined_call_operand.vmem [shape: bf16[4,128,128], index: 1, kind: input, shape index: {}]   ;;  %s1835_s2 = inlined_call_operand.vmem [shape: f32[1,128], index: 2, kind: input, shape index: {}]   ;;  %s1836_s3 = inlined_call_operand.vmem [shape: bf16[4,512,128], index: 3, kind: output, shape index: {}]  }
   0x1   :  { %s1646_s14 = smov 0  }
   0x2 LB: > { %s25_s15 = sadd.s32 1, %s1616_s13  ;;  %p1146_p0 = scmp.ge.s32.totalorder %s1620_s14, 1  ;;  %s1620_s14 = sphi %s1646_s14, %s13_s14   ;;  %s1616_s13 = sphi %s1644_s13, %s1838_s13   ;;  %s1612_s12 = sphi %s1642_s12, %s1837_s12  }
   0x3   : > { %p27_p1 = scmp.ge.s32.totalorder %s25_s15, 4  ;;  %p168_p2 = scmp.lt.s32.totalorder %s1620_s14, 5 }
   0x5   : > { %s1840_s15 = smov (%p27_p1, %s25_s15), 0  ;;  %p169_p3 = pnand %p1146_p0, %p168_p2 }
   0x6   : > { %p206_p4 = scmp.lt.s32.totalorder (!%p169_p3), %s1612_s12, 3 }
   0x7   : > { %172 = sbr.rel (%p169_p3) target bundleno = 309 (0x135), region = 32 }
   0xc   : > { %s1842_s12 = smov (!%p206_p4, %s1612_s12), 3  ;;  %v1719_v42 = vld [vmem:[%s1835_s2] ss:$0 sm:$0xff] }
   0xd   : > { %s1316_s16 = sshll.u32 %s1842_s12, 6  ;;  %s1315_s20 = sshll.u32 %s1842_s12, 8 }
   0xe   : > { %s1666_s19 = scalar_lea.vmem %s1834_s1, %s1316_s16  ;;  %s1681_s23 = scalar_lea.vmem %s1833_s0, %s1315_s20 }
   0xf   : > { %v1357_v0 = vld [vmem:[%s1666_s19 + $0x38] sm:$0xff]  ;;  %v1356_v1 = vld [vmem:[%s1666_s19 + $0x30] sm:$0xff]  ;;  %v1355_v2 = vld [vmem:[%s1666_s19 + $0x28] sm:$0xff]  ;;  %s1732_s28 = scalar_lea.vmem %s1836_s3, %s1315_s20 }
  0x10   : > { %554 = vmatpush.bf16.msra.mxu0 %v1357_v0  ;;  %1549 = vmatpush.bf16.msra.mxu1 %v1357_v0  ;;  %v1354_v3 = vld [vmem:[%s1666_s19 + $0x20] sm:$0xff]  ;;  %v1353_v4 = vld [vmem:[%s1666_s19 + $0x18] sm:$0xff]  ;;  %v1352_v5 = vld [vmem:[%s1666_s19 + $0x10] sm:$0xff] }
  0x11   : > { %1550 = vmatpush.bf16.msra.mxu2 %v1357_v0  ;;  %1551 = vmatpush.bf16.msra.mxu3 %v1357_v0  ;;  %v1351_v6 = vld [vmem:[%s1666_s19 + $0x8] sm:$0xff]  ;;  %v1350_v7 = vld [vmem:[%s1666_s19] sm:$0xff]  ;;  %v1320_v16 = vld [vmem:[%s1681_s23 + $0x10] sm:$0xff] }
  0x12   : > { %v1318_v8 = vld [vmem:[%s1681_s23] sm:$0xff]  ;;  %v1319_v12 = vld [vmem:[%s1681_s23 + $0x8] sm:$0xff]  ;;  %v1328_v17 = vld [vmem:[%s1681_s23 + $0x50] sm:$0xff] }
  0x13   : > { %v1326_v9 = vld [vmem:[%s1681_s23 + $0x40] sm:$0xff]  ;;  %v1327_v13 = vld [vmem:[%s1681_s23 + $0x48] sm:$0xff]  ;;  %v1336_v18 = vld [vmem:[%s1681_s23 + $0x90] sm:$0xff] }
  0x14   : > { %555 = vmatpush.bf16.msra.mxu0 %v1356_v1  ;;  %1552 = vmatpush.bf16.msra.mxu1 %v1356_v1  ;;  %v1334_v10 = vld [vmem:[%s1681_s23 + $0x80] sm:$0xff]  ;;  %v1335_v14 = vld [vmem:[%s1681_s23 + $0x88] sm:$0xff]  ;;  %v1344_v19 = vld [vmem:[%s1681_s23 + $0xd0] sm:$0xff] }
  0x15   : > { %1553 = vmatpush.bf16.msra.mxu2 %v1356_v1  ;;  %1554 = vmatpush.bf16.msra.mxu3 %v1356_v1  ;;  %v1342_v11 = vld [vmem:[%s1681_s23 + $0xc0] sm:$0xff]  ;;  %v1343_v15 = vld [vmem:[%s1681_s23 + $0xc8] sm:$0xff]  ;;  %v1321_v20 = vld [vmem:[%s1681_s23 + $0x18] sm:$0xff] }
  0x16   : > { %v1329_v21 = vld [vmem:[%s1681_s23 + $0x58] sm:$0xff]  ;;  %v1322_v24 = vld [vmem:[%s1681_s23 + $0x20] sm:$0xff]  ;;  %v1323_v28 = vld [vmem:[%s1681_s23 + $0x28] sm:$0xff] }
  0x17   : > { %v1337_v22 = vld [vmem:[%s1681_s23 + $0x98] sm:$0xff]  ;;  %v1330_v25 = vld [vmem:[%s1681_s23 + $0x60] sm:$0xff]  ;;  %v1331_v29 = vld [vmem:[%s1681_s23 + $0x68] sm:$0xff] }
  0x18   : > { %556 = vmatpush.bf16.msra.mxu0 %v1355_v2  ;;  %1555 = vmatpush.bf16.msra.mxu1 %v1355_v2  ;;  %v1345_v23 = vld [vmem:[%s1681_s23 + $0xd8] sm:$0xff]  ;;  %v1338_v26 = vld [vmem:[%s1681_s23 + $0xa0] sm:$0xff]  ;;  %v1339_v30 = vld [vmem:[%s1681_s23 + $0xa8] sm:$0xff] }
  0x19   : > { %1556 = vmatpush.bf16.msra.mxu2 %v1355_v2  ;;  %1557 = vmatpush.bf16.msra.mxu3 %v1355_v2  ;;  %v1346_v27 = vld [vmem:[%s1681_s23 + $0xe0] sm:$0xff]  ;;  %v1347_v31 = vld [vmem:[%s1681_s23 + $0xe8] sm:$0xff]  ;;  %v1324_v32 = vld [vmem:[%s1681_s23 + $0x30] sm:$0xff] }
  0x1a   : > { %v1332_v33 = vld [vmem:[%s1681_s23 + $0x70] sm:$0xff]  ;;  %v1325_v36 = vld [vmem:[%s1681_s23 + $0x38] sm:$0xff] }
  0x1b   : > { %v1340_v34 = vld [vmem:[%s1681_s23 + $0xb0] sm:$0xff]  ;;  %v1333_v37 = vld [vmem:[%s1681_s23 + $0x78] sm:$0xff] }
  0x1c   : > { %557 = vmatpush.bf16.msra.mxu0 %v1354_v3  ;;  %1558 = vmatpush.bf16.msra.mxu1 %v1354_v3  ;;  %v1348_v35 = vld [vmem:[%s1681_s23 + $0xf0] sm:$0xff]  ;;  %v1341_v38 = vld [vmem:[%s1681_s23 + $0xb8] sm:$0xff] }
  0x1d   : > { %1559 = vmatpush.bf16.msra.mxu2 %v1354_v3  ;;  %1560 = vmatpush.bf16.msra.mxu3 %v1354_v3  ;;  %v1349_v39 = vld [vmem:[%s1681_s23 + $0xf8] sm:$0xff] }
  0x20   : > { %558 = vmatpush.bf16.msra.mxu0 %v1353_v4  ;;  %1561 = vmatpush.bf16.msra.mxu1 %v1353_v4 }
  0x21   : > { %1562 = vmatpush.bf16.msra.mxu2 %v1353_v4  ;;  %1563 = vmatpush.bf16.msra.mxu3 %v1353_v4 }
  0x24   : > { %559 = vmatpush.bf16.msra.mxu0 %v1352_v5  ;;  %1564 = vmatpush.bf16.msra.mxu1 %v1352_v5 }
  0x25   : > { %1565 = vmatpush.bf16.msra.mxu2 %v1352_v5  ;;  %1566 = vmatpush.bf16.msra.mxu3 %v1352_v5 }
  0x28   : > { %560 = vmatpush.bf16.msra.mxu0 %v1351_v6  ;;  %1567 = vmatpush.bf16.msra.mxu1 %v1351_v6 }
  0x29   : > { %1568 = vmatpush.bf16.msra.mxu2 %v1351_v6  ;;  %1569 = vmatpush.bf16.msra.mxu3 %v1351_v6 }
  0x2c   : > { %561 = vmatpush.bf16.msra.mxu0 %v1350_v7  ;;  %1570 = vmatpush.bf16.msra.mxu1 %v1350_v7 }
  0x2d   : > { %1571 = vmatpush.bf16.msra.mxu2 %v1350_v7  ;;  %1572 = vmatpush.bf16.msra.mxu3 %v1350_v7 }
  0x2f   : > { %562 = vmatmul.bf16.vlgmr.msra.gmra.mxu0 %v1318_v8  ;;  %602 = vmatmul.bf16.vlgmr.msra.gmra.mxu1 %v1326_v9 }
  0x30   : > { %642 = vmatmul.bf16.vlgmr.msra.gmra.mxu2 %v1334_v10  ;;  %682 = vmatmul.bf16.vlgmr.msra.gmra.mxu3 %v1342_v11 }
  0x3f   : > { %567 = vmatmul.bf16.gmra.mxu0 %v1319_v12  ;;  %607 = vmatmul.bf16.gmra.mxu1 %v1327_v13 }
  0x40   : > { %647 = vmatmul.bf16.gmra.mxu2 %v1335_v14  ;;  %687 = vmatmul.bf16.gmra.mxu3 %v1343_v15 }
  0x4f   : > { %572 = vmatmul.bf16.gmra.mxu0 %v1320_v16  ;;  %612 = vmatmul.bf16.gmra.mxu1 %v1328_v17 }
  0x50   : > { %652 = vmatmul.bf16.gmra.mxu2 %v1336_v18  ;;  %692 = vmatmul.bf16.gmra.mxu3 %v1344_v19 }
  0x5f   : > { %577 = vmatmul.bf16.gmra.mxu0 %v1321_v20  ;;  %617 = vmatmul.bf16.gmra.mxu1 %v1329_v21 }
  0x60   : > { %657 = vmatmul.bf16.gmra.mxu2 %v1337_v22  ;;  %697 = vmatmul.bf16.gmra.mxu3 %v1345_v23 }
  0x6f   : > { %582 = vmatmul.bf16.gmra.mxu0 %v1322_v24  ;;  %622 = vmatmul.bf16.gmra.mxu1 %v1330_v25 }
  0x70   : > { %662 = vmatmul.bf16.gmra.mxu2 %v1338_v26  ;;  %702 = vmatmul.bf16.gmra.mxu3 %v1346_v27 }
  0x7f   : > { %587 = vmatmul.bf16.gmra.mxu0 %v1323_v28  ;;  %627 = vmatmul.bf16.gmra.mxu1 %v1331_v29 }
  0x80   : > { %667 = vmatmul.bf16.gmra.mxu2 %v1339_v30  ;;  %707 = vmatmul.bf16.gmra.mxu3 %v1347_v31 }
  0x8f   : > { %592 = vmatmul.bf16.gmra.mxu0 %v1324_v32  ;;  %632 = vmatmul.bf16.gmra.mxu1 %v1332_v33 }
  0x90   : > { %672 = vmatmul.bf16.gmra.mxu2 %v1340_v34  ;;  %712 = vmatmul.bf16.gmra.mxu3 %v1348_v35 }
  0x9f   : > { %597 = vmatmul.bf16.gmra.mxu0 %v1325_v36  ;;  %637 = vmatmul.bf16.gmra.mxu1 %v1333_v37 }
  0xa0   : > { %677 = vmatmul.bf16.gmra.mxu2 %v1341_v38  ;;  %717 = vmatmul.bf16.gmra.mxu3 %v1349_v39 }
  0xac   : > { %v563_v40 = vpop.f32.mrf.mxu0  ;;  %v603_v41 = vpop.f32.mrf.mxu1 }
  0xad   : > { %v564_v43 = vadd.f32 %v1719_v42, %v563_v40  ;;  %v604_v44 = vadd.f32 %v1719_v42, %v603_v41 }
  0xaf   : > { %v787_v49 = vmul.f32 0.01, %v564_v43  ;;  %v803_v50 = vmul.f32 0.01, %v604_v44  ;;  %vm723_vm0 = vcmp.ge.f32.partialorder %v564_v43, 0.0  ;;  %vm739_vm1 = vcmp.ge.f32.partialorder %v604_v44, 0.0 }
  0xb1   : > { %v851_v57 = vsel %vm723_vm0, %v564_v43, %v787_v49  ;;  %v867_v58 = vsel %vm739_vm1, %v604_v44, %v803_v50 }
  0xb3   : > { %v643_v45 = vpop.f32.mrf.mxu2  ;;  %v683_v46 = vpop.f32.mrf.mxu3 }
  0xb4   : > { %v565_v47 = vpop.f32.mrf.mxu0  ;;  %v605_v48 = vpop.f32.mrf.mxu1  ;;  %v644_v55 = vadd.f32 %v1719_v42, %v643_v45  ;;  %v684_v56 = vadd.f32 %v1719_v42, %v683_v46 }
  0xb5   : > { %v566_v51 = vadd.f32 %v1719_v42, %v565_v47  ;;  %v606_v52 = vadd.f32 %v1719_v42, %v605_v48 }
  0xb6   : > { %v819_v1 = vmul.f32 0.01, %v644_v55  ;;  %v835_v2 = vmul.f32 0.01, %v684_v56  ;;  %vm755_vm4 = vcmp.ge.f32.partialorder %v644_v55, 0.0  ;;  %vm771_vm5 = vcmp.ge.f32.partialorder %v684_v56, 0.0 }
  0xb7   : > { %vm724_vm2 = vcmp.ge.f32.partialorder %v566_v51, 0.0  ;;  %v788_v53 = vmul.f32 0.01, %v566_v51  ;;  %vm740_vm3 = vcmp.ge.f32.partialorder %v606_v52, 0.0  ;;  %v804_v54 = vmul.f32 0.01, %v606_v52 }
  0xb8   : > { %v883_v9 = vsel %vm755_vm4, %v644_v55, %v819_v1  ;;  %v899_v10 = vsel %vm771_vm5, %v684_v56, %v835_v2 }
  0xb9   : > { %v852_v59 = vsel %vm724_vm2, %v566_v51, %v788_v53  ;;  %v868_v60 = vsel %vm740_vm3, %v606_v52, %v804_v54 }
  0xba   : > { %v1361_v61 = vpack.c.bf16 %v852_v59, %v851_v57  ;;  %v1401_v62 = vpack.c.bf16 %v868_v60, %v867_v58 }
  0xbb   : > { %v645_v63 = vpop.f32.mrf.mxu2  ;;  %v685_v0 = vpop.f32.mrf.mxu3 }
  0xbc   : > { %1362 = vst [vmem:[%s1732_s28] sm:$0xff] %v1361_v61   ;;  %v646_v3 = vadd.f32 %v1719_v42, %v645_v63  ;;  %v686_v4 = vadd.f32 %v1719_v42, %v685_v0  ;;  %v568_v5 = vpop.f32.mrf.mxu0  ;;  %v608_v6 = vpop.f32.mrf.mxu1 }
  0xbd   : > { %1525 = vst [vmem:[%s1732_s28 + $0x40] sm:$0xff] %v1401_v62   ;;  %v569_v15 = vadd.f32 %v1719_v42, %v568_v5  ;;  %v609_v16 = vadd.f32 %v1719_v42, %v608_v6 }
  0xbe   : > { %vm756_vm6 = vcmp.ge.f32.partialorder %v646_v3, 0.0  ;;  %v820_v7 = vmul.f32 0.01, %v646_v3  ;;  %vm772_vm7 = vcmp.ge.f32.partialorder %v686_v4, 0.0  ;;  %v836_v8 = vmul.f32 0.01, %v686_v4 }
  0xbf   : > { %v789_v21 = vmul.f32 0.01, %v569_v15  ;;  %v805_v22 = vmul.f32 0.01, %v609_v16  ;;  %vm725_vm8 = vcmp.ge.f32.partialorder %v569_v15, 0.0  ;;  %vm741_vm9 = vcmp.ge.f32.partialorder %v609_v16, 0.0 }
  0xc0   : > { %v884_v11 = vsel %vm756_vm6, %v646_v3, %v820_v7  ;;  %v900_v12 = vsel %vm772_vm7, %v686_v4, %v836_v8 }
  0xc1   : > { %v1441_v13 = vpack.c.bf16 %v884_v11, %v883_v9  ;;  %v1481_v14 = vpack.c.bf16 %v900_v12, %v899_v10  ;;  %v853_v29 = vsel %vm725_vm8, %v569_v15, %v789_v21  ;;  %v869_v30 = vsel %vm741_vm9, %v609_v16, %v805_v22 }
  0xc3   : > { %1533 = vst [vmem:[%s1732_s28 + $0x80] sm:$0xff] %v1441_v13   ;;  %v648_v17 = vpop.f32.mrf.mxu2  ;;  %v688_v18 = vpop.f32.mrf.mxu3 }
  0xc4   : > { %1541 = vst [vmem:[%s1732_s28 + $0xc0] sm:$0xff] %v1481_v14   ;;  %v570_v19 = vpop.f32.mrf.mxu0  ;;  %v610_v20 = vpop.f32.mrf.mxu1  ;;  %v649_v27 = vadd.f32 %v1719_v42, %v648_v17  ;;  %v689_v28 = vadd.f32 %v1719_v42, %v688_v18 }
  0xc5   : > { %v571_v23 = vadd.f32 %v1719_v42, %v570_v19  ;;  %v611_v24 = vadd.f32 %v1719_v42, %v610_v20 }
  0xc6   : > { %v821_v37 = vmul.f32 0.01, %v649_v27  ;;  %v837_v38 = vmul.f32 0.01, %v689_v28  ;;  %vm757_vm12 = vcmp.ge.f32.partialorder %v649_v27, 0.0  ;;  %vm773_vm13 = vcmp.ge.f32.partialorder %v689_v28, 0.0 }
  0xc7   : > { %vm726_vm10 = vcmp.ge.f32.partialorder %v571_v23, 0.0  ;;  %v790_v25 = vmul.f32 0.01, %v571_v23  ;;  %vm742_vm11 = vcmp.ge.f32.partialorder %v611_v24, 0.0  ;;  %v806_v26 = vmul.f32 0.01, %v611_v24 }
  0xc8   : > { %v885_v46 = vsel %vm757_vm12, %v649_v27, %v821_v37  ;;  %v901_v47 = vsel %vm773_vm13, %v689_v28, %v837_v38 }
  0xc9   : > { %v854_v31 = vsel %vm726_vm10, %v571_v23, %v790_v25  ;;  %v870_v32 = vsel %vm742_vm11, %v611_v24, %v806_v26 }
  0xca   : > { %v1366_v33 = vpack.c.bf16 %v854_v31, %v853_v29  ;;  %v1406_v34 = vpack.c.bf16 %v870_v32, %v869_v30 }
  0xcb   : > { %v650_v35 = vpop.f32.mrf.mxu2  ;;  %v690_v36 = vpop.f32.mrf.mxu3 }
  0xcc   : > { %1518 = vst [vmem:[%s1732_s28 + $0x8] sm:$0xff] %v1366_v33   ;;  %v651_v39 = vadd.f32 %v1719_v42, %v650_v35  ;;  %v691_v40 = vadd.f32 %v1719_v42, %v690_v36  ;;  %v573_v41 = vpop.f32.mrf.mxu0  ;;  %v613_v43 = vpop.f32.mrf.mxu1 }
  0xcd   : > { %1526 = vst [vmem:[%s1732_s28 + $0x48] sm:$0xff] %v1406_v34   ;;  %v574_v52 = vadd.f32 %v1719_v42, %v573_v41  ;;  %v614_v53 = vadd.f32 %v1719_v42, %v613_v43 }
  0xce   : > { %vm758_vm14 = vcmp.ge.f32.partialorder %v651_v39, 0.0  ;;  %v822_v44 = vmul.f32 0.01, %v651_v39  ;;  %vm774_vm15 = vcmp.ge.f32.partialorder %v691_v40, 0.0  ;;  %v838_v45 = vmul.f32 0.01, %v691_v40 }
  0xcf   : > { %v791_v58 = vmul.f32 0.01, %v574_v52  ;;  %v807_v59 = vmul.f32 0.01, %v614_v53  ;;  %vm727_vm0 = vcmp.ge.f32.partialorder %v574_v52, 0.0  ;;  %vm743_vm1 = vcmp.ge.f32.partialorder %v614_v53, 0.0 }
  0xd0   : > { %v886_v48 = vsel %vm758_vm14, %v651_v39, %v822_v44  ;;  %v902_v49 = vsel %vm774_vm15, %v691_v40, %v838_v45 }
  0xd1   : > { %v1446_v50 = vpack.c.bf16 %v886_v48, %v885_v46  ;;  %v1486_v51 = vpack.c.bf16 %v902_v49, %v901_v47  ;;  %v855_v2 = vsel %vm727_vm0, %v574_v52, %v791_v58  ;;  %v871_v3 = vsel %vm743_vm1, %v614_v53, %v807_v59 }
  0xd3   : > { %1534 = vst [vmem:[%s1732_s28 + $0x88] sm:$0xff] %v1446_v50   ;;  %v653_v54 = vpop.f32.mrf.mxu2  ;;  %v693_v55 = vpop.f32.mrf.mxu3 }
  0xd4   : > { %1542 = vst [vmem:[%s1732_s28 + $0xc8] sm:$0xff] %v1486_v51   ;;  %v575_v56 = vpop.f32.mrf.mxu0  ;;  %v615_v57 = vpop.f32.mrf.mxu1  ;;  %v654_v0 = vadd.f32 %v1719_v42, %v653_v54  ;;  %v694_v1 = vadd.f32 %v1719_v42, %v693_v55 }
  0xd5   : > { %v576_v60 = vadd.f32 %v1719_v42, %v575_v56  ;;  %v616_v61 = vadd.f32 %v1719_v42, %v615_v57 }
  0xd6   : > { %v823_v10 = vmul.f32 0.01, %v654_v0  ;;  %v839_v11 = vmul.f32 0.01, %v694_v1  ;;  %vm759_vm4 = vcmp.ge.f32.partialorder %v654_v0, 0.0  ;;  %vm775_vm5 = vcmp.ge.f32.partialorder %v694_v1, 0.0 }
  0xd7   : > { %vm728_vm2 = vcmp.ge.f32.partialorder %v576_v60, 0.0  ;;  %v792_v62 = vmul.f32 0.01, %v576_v60  ;;  %vm744_vm3 = vcmp.ge.f32.partialorder %v616_v61, 0.0  ;;  %v808_v63 = vmul.f32 0.01, %v616_v61 }
  0xd8   : > { %v887_v18 = vsel %vm759_vm4, %v654_v0, %v823_v10  ;;  %v903_v19 = vsel %vm775_vm5, %v694_v1, %v839_v11 }
  0xd9   : > { %v856_v4 = vsel %vm728_vm2, %v576_v60, %v792_v62  ;;  %v872_v5 = vsel %vm744_vm3, %v616_v61, %v808_v63 }
  0xda   : > { %v1371_v6 = vpack.c.bf16 %v856_v4, %v855_v2  ;;  %v1411_v7 = vpack.c.bf16 %v872_v5, %v871_v3 }
  0xdb   : > { %v655_v8 = vpop.f32.mrf.mxu2  ;;  %v695_v9 = vpop.f32.mrf.mxu3 }
  0xdc   : > { %1519 = vst [vmem:[%s1732_s28 + $0x10] sm:$0xff] %v1371_v6   ;;  %v656_v12 = vadd.f32 %v1719_v42, %v655_v8  ;;  %v696_v13 = vadd.f32 %v1719_v42, %v695_v9  ;;  %v578_v14 = vpop.f32.mrf.mxu0  ;;  %v618_v15 = vpop.f32.mrf.mxu1 }
  0xdd   : > { %1527 = vst [vmem:[%s1732_s28 + $0x50] sm:$0xff] %v1411_v7   ;;  %v579_v24 = vadd.f32 %v1719_v42, %v578_v14  ;;  %v619_v25 = vadd.f32 %v1719_v42, %v618_v15 }
  0xde   : > { %vm760_vm6 = vcmp.ge.f32.partialorder %v656_v12, 0.0  ;;  %v824_v16 = vmul.f32 0.01, %v656_v12  ;;  %vm776_vm7 = vcmp.ge.f32.partialorder %v696_v13, 0.0  ;;  %v840_v17 = vmul.f32 0.01, %v696_v13 }
  0xdf   : > { %v793_v30 = vmul.f32 0.01, %v579_v24  ;;  %v809_v31 = vmul.f32 0.01, %v619_v25  ;;  %vm729_vm8 = vcmp.ge.f32.partialorder %v579_v24, 0.0  ;;  %vm745_vm9 = vcmp.ge.f32.partialorder %v619_v25, 0.0 }
  0xe0   : > { %v888_v20 = vsel %vm760_vm6, %v656_v12, %v824_v16  ;;  %v904_v21 = vsel %vm776_vm7, %v696_v13, %v840_v17 }
  0xe1   : > { %v1451_v22 = vpack.c.bf16 %v888_v20, %v887_v18  ;;  %v1491_v23 = vpack.c.bf16 %v904_v21, %v903_v19  ;;  %v857_v38 = vsel %vm729_vm8, %v579_v24, %v793_v30  ;;  %v873_v39 = vsel %vm745_vm9, %v619_v25, %v809_v31 }
  0xe3   : > { %1535 = vst [vmem:[%s1732_s28 + $0x90] sm:$0xff] %v1451_v22   ;;  %v658_v26 = vpop.f32.mrf.mxu2  ;;  %v698_v27 = vpop.f32.mrf.mxu3 }
  0xe4   : > { %1543 = vst [vmem:[%s1732_s28 + $0xd0] sm:$0xff] %v1491_v23   ;;  %v580_v28 = vpop.f32.mrf.mxu0  ;;  %v620_v29 = vpop.f32.mrf.mxu1  ;;  %v659_v36 = vadd.f32 %v1719_v42, %v658_v26  ;;  %v699_v37 = vadd.f32 %v1719_v42, %v698_v27 }
  0xe5   : > { %v581_v32 = vadd.f32 %v1719_v42, %v580_v28  ;;  %v621_v33 = vadd.f32 %v1719_v42, %v620_v29 }
  0xe6   : > { %v825_v47 = vmul.f32 0.01, %v659_v36  ;;  %v841_v48 = vmul.f32 0.01, %v699_v37  ;;  %vm761_vm12 = vcmp.ge.f32.partialorder %v659_v36, 0.0  ;;  %vm777_vm13 = vcmp.ge.f32.partialorder %v699_v37, 0.0 }
  0xe7   : > { %vm730_vm10 = vcmp.ge.f32.partialorder %v581_v32, 0.0  ;;  %v794_v34 = vmul.f32 0.01, %v581_v32  ;;  %vm746_vm11 = vcmp.ge.f32.partialorder %v621_v33, 0.0  ;;  %v810_v35 = vmul.f32 0.01, %v621_v33 }
  0xe8   : > { %v889_v55 = vsel %vm761_vm12, %v659_v36, %v825_v47  ;;  %v905_v56 = vsel %vm777_vm13, %v699_v37, %v841_v48 }
  0xe9   : > { %v858_v40 = vsel %vm730_vm10, %v581_v32, %v794_v34  ;;  %v874_v41 = vsel %vm746_vm11, %v621_v33, %v810_v35 }
  0xea   : > { %v1376_v43 = vpack.c.bf16 %v858_v40, %v857_v38  ;;  %v1416_v44 = vpack.c.bf16 %v874_v41, %v873_v39 }
  0xeb   : > { %v660_v45 = vpop.f32.mrf.mxu2  ;;  %v700_v46 = vpop.f32.mrf.mxu3 }
  0xec   : > { %1520 = vst [vmem:[%s1732_s28 + $0x18] sm:$0xff] %v1376_v43   ;;  %v661_v49 = vadd.f32 %v1719_v42, %v660_v45  ;;  %v701_v50 = vadd.f32 %v1719_v42, %v700_v46  ;;  %v583_v51 = vpop.f32.mrf.mxu0  ;;  %v623_v52 = vpop.f32.mrf.mxu1 }
  0xed   : > { %1528 = vst [vmem:[%s1732_s28 + $0x58] sm:$0xff] %v1416_v44   ;;  %v584_v61 = vadd.f32 %v1719_v42, %v583_v51  ;;  %v624_v62 = vadd.f32 %v1719_v42, %v623_v52 }
  0xee   : > { %vm762_vm14 = vcmp.ge.f32.partialorder %v661_v49, 0.0  ;;  %v826_v53 = vmul.f32 0.01, %v661_v49  ;;  %vm778_vm15 = vcmp.ge.f32.partialorder %v701_v50, 0.0  ;;  %v842_v54 = vmul.f32 0.01, %v701_v50 }
  0xef   : > { %v795_v3 = vmul.f32 0.01, %v584_v61  ;;  %v811_v4 = vmul.f32 0.01, %v624_v62  ;;  %vm731_vm0 = vcmp.ge.f32.partialorder %v584_v61, 0.0  ;;  %vm747_vm1 = vcmp.ge.f32.partialorder %v624_v62, 0.0 }
  0xf0   : > { %v890_v57 = vsel %vm762_vm14, %v661_v49, %v826_v53  ;;  %v906_v58 = vsel %vm778_vm15, %v701_v50, %v842_v54 }
  0xf1   : > { %v1456_v59 = vpack.c.bf16 %v890_v57, %v889_v55  ;;  %v1496_v60 = vpack.c.bf16 %v906_v58, %v905_v56  ;;  %v859_v11 = vsel %vm731_vm0, %v584_v61, %v795_v3  ;;  %v875_v12 = vsel %vm747_vm1, %v624_v62, %v811_v4 }
  0xf3   : > { %1536 = vst [vmem:[%s1732_s28 + $0x98] sm:$0xff] %v1456_v59   ;;  %v663_v63 = vpop.f32.mrf.mxu2  ;;  %v703_v0 = vpop.f32.mrf.mxu3 }
  0xf4   : > { %1544 = vst [vmem:[%s1732_s28 + $0xd8] sm:$0xff] %v1496_v60   ;;  %v585_v1 = vpop.f32.mrf.mxu0  ;;  %v625_v2 = vpop.f32.mrf.mxu1  ;;  %v664_v9 = vadd.f32 %v1719_v42, %v663_v63  ;;  %v704_v10 = vadd.f32 %v1719_v42, %v703_v0 }
  0xf5   : > { %v586_v5 = vadd.f32 %v1719_v42, %v585_v1  ;;  %v626_v6 = vadd.f32 %v1719_v42, %v625_v2 }
  0xf6   : > { %v827_v19 = vmul.f32 0.01, %v664_v9  ;;  %v843_v20 = vmul.f32 0.01, %v704_v10  ;;  %vm763_vm4 = vcmp.ge.f32.partialorder %v664_v9, 0.0  ;;  %vm779_vm5 = vcmp.ge.f32.partialorder %v704_v10, 0.0 }
  0xf7   : > { %vm732_vm2 = vcmp.ge.f32.partialorder %v586_v5, 0.0  ;;  %v796_v7 = vmul.f32 0.01, %v586_v5  ;;  %vm748_vm3 = vcmp.ge.f32.partialorder %v626_v6, 0.0  ;;  %v812_v8 = vmul.f32 0.01, %v626_v6 }
  0xf8   : > { %v891_v27 = vsel %vm763_vm4, %v664_v9, %v827_v19  ;;  %v907_v28 = vsel %vm779_vm5, %v704_v10, %v843_v20 }
  0xf9   : > { %v860_v13 = vsel %vm732_vm2, %v586_v5, %v796_v7  ;;  %v876_v14 = vsel %vm748_vm3, %v626_v6, %v812_v8 }
  0xfa   : > { %v1381_v15 = vpack.c.bf16 %v860_v13, %v859_v11  ;;  %v1421_v16 = vpack.c.bf16 %v876_v14, %v875_v12 }
  0xfb   : > { %v665_v17 = vpop.f32.mrf.mxu2  ;;  %v705_v18 = vpop.f32.mrf.mxu3 }
  0xfc   : > { %1521 = vst [vmem:[%s1732_s28 + $0x20] sm:$0xff] %v1381_v15   ;;  %v666_v21 = vadd.f32 %v1719_v42, %v665_v17  ;;  %v706_v22 = vadd.f32 %v1719_v42, %v705_v18  ;;  %v588_v23 = vpop.f32.mrf.mxu0  ;;  %v628_v24 = vpop.f32.mrf.mxu1 }
  0xfd   : > { %1529 = vst [vmem:[%s1732_s28 + $0x60] sm:$0xff] %v1421_v16   ;;  %v589_v33 = vadd.f32 %v1719_v42, %v588_v23  ;;  %v629_v34 = vadd.f32 %v1719_v42, %v628_v24 }
  0xfe   : > { %vm764_vm6 = vcmp.ge.f32.partialorder %v666_v21, 0.0  ;;  %v828_v25 = vmul.f32 0.01, %v666_v21  ;;  %vm780_vm7 = vcmp.ge.f32.partialorder %v706_v22, 0.0  ;;  %v844_v26 = vmul.f32 0.01, %v706_v22 }
  0xff   : > { %v797_v39 = vmul.f32 0.01, %v589_v33  ;;  %v813_v40 = vmul.f32 0.01, %v629_v34  ;;  %vm733_vm8 = vcmp.ge.f32.partialorder %v589_v33, 0.0  ;;  %vm749_vm9 = vcmp.ge.f32.partialorder %v629_v34, 0.0 }
 0x100   : > { %v892_v29 = vsel %vm764_vm6, %v666_v21, %v828_v25  ;;  %v908_v30 = vsel %vm780_vm7, %v706_v22, %v844_v26 }
 0x101   : > { %v1461_v31 = vpack.c.bf16 %v892_v29, %v891_v27  ;;  %v1501_v32 = vpack.c.bf16 %v908_v30, %v907_v28  ;;  %v861_v48 = vsel %vm733_vm8, %v589_v33, %v797_v39  ;;  %v877_v49 = vsel %vm749_vm9, %v629_v34, %v813_v40 }
 0x103   : > { %1537 = vst [vmem:[%s1732_s28 + $0xa0] sm:$0xff] %v1461_v31   ;;  %v668_v35 = vpop.f32.mrf.mxu2  ;;  %v708_v36 = vpop.f32.mrf.mxu3 }
 0x104   : > { %1545 = vst [vmem:[%s1732_s28 + $0xe0] sm:$0xff] %v1501_v32   ;;  %v590_v37 = vpop.f32.mrf.mxu0  ;;  %v630_v38 = vpop.f32.mrf.mxu1  ;;  %v669_v46 = vadd.f32 %v1719_v42, %v668_v35  ;;  %v709_v47 = vadd.f32 %v1719_v42, %v708_v36 }
 0x105   : > { %v591_v41 = vadd.f32 %v1719_v42, %v590_v37  ;;  %v631_v43 = vadd.f32 %v1719_v42, %v630_v38 }
 0x106   : > { %v829_v56 = vmul.f32 0.01, %v669_v46  ;;  %v845_v57 = vmul.f32 0.01, %v709_v47  ;;  %vm765_vm12 = vcmp.ge.f32.partialorder %v669_v46, 0.0  ;;  %vm781_vm13 = vcmp.ge.f32.partialorder %v709_v47, 0.0 }
 0x107   : > { %vm734_vm10 = vcmp.ge.f32.partialorder %v591_v41, 0.0  ;;  %v798_v44 = vmul.f32 0.01, %v591_v41  ;;  %vm750_vm11 = vcmp.ge.f32.partialorder %v631_v43, 0.0  ;;  %v814_v45 = vmul.f32 0.01, %v631_v43 }
 0x108   : > { %v893_v0 = vsel %vm765_vm12, %v669_v46, %v829_v56  ;;  %v909_v1 = vsel %vm781_vm13, %v709_v47, %v845_v57 }
 0x109   : > { %v862_v50 = vsel %vm734_vm10, %v591_v41, %v798_v44  ;;  %v878_v51 = vsel %vm750_vm11, %v631_v43, %v814_v45 }
 0x10a   : > { %v1386_v52 = vpack.c.bf16 %v862_v50, %v861_v48  ;;  %v1426_v53 = vpack.c.bf16 %v878_v51, %v877_v49 }
 0x10b   : > { %v670_v54 = vpop.f32.mrf.mxu2  ;;  %v710_v55 = vpop.f32.mrf.mxu3 }
 0x10c   : > { %1522 = vst [vmem:[%s1732_s28 + $0x28] sm:$0xff] %v1386_v52   ;;  %v671_v58 = vadd.f32 %v1719_v42, %v670_v54  ;;  %v711_v59 = vadd.f32 %v1719_v42, %v710_v55  ;;  %v593_v60 = vpop.f32.mrf.mxu0  ;;  %v633_v61 = vpop.f32.mrf.mxu1 }
 0x10d   : > { %1530 = vst [vmem:[%s1732_s28 + $0x68] sm:$0xff] %v1426_v53   ;;  %v594_v6 = vadd.f32 %v1719_v42, %v593_v60  ;;  %v634_v7 = vadd.f32 %v1719_v42, %v633_v61 }
 0x10e   : > { %vm766_vm14 = vcmp.ge.f32.partialorder %v671_v58, 0.0  ;;  %v830_v62 = vmul.f32 0.01, %v671_v58  ;;  %vm782_vm15 = vcmp.ge.f32.partialorder %v711_v59, 0.0  ;;  %v846_v63 = vmul.f32 0.01, %v711_v59 }
 0x10f   : > { %v799_v12 = vmul.f32 0.01, %v594_v6  ;;  %v815_v13 = vmul.f32 0.01, %v634_v7  ;;  %vm735_vm0 = vcmp.ge.f32.partialorder %v594_v6, 0.0  ;;  %vm751_vm1 = vcmp.ge.f32.partialorder %v634_v7, 0.0 }
 0x110   : > { %v894_v2 = vsel %vm766_vm14, %v671_v58, %v830_v62  ;;  %v910_v3 = vsel %vm782_vm15, %v711_v59, %v846_v63 }
 0x111   : > { %v1466_v4 = vpack.c.bf16 %v894_v2, %v893_v0  ;;  %v1506_v5 = vpack.c.bf16 %v910_v3, %v909_v1  ;;  %v863_v20 = vsel %vm735_vm0, %v594_v6, %v799_v12  ;;  %v879_v21 = vsel %vm751_vm1, %v634_v7, %v815_v13 }
 0x113   : > { %1538 = vst [vmem:[%s1732_s28 + $0xa8] sm:$0xff] %v1466_v4   ;;  %v673_v8 = vpop.f32.mrf.mxu2  ;;  %v713_v9 = vpop.f32.mrf.mxu3 }
 0x114   : > { %1546 = vst [vmem:[%s1732_s28 + $0xe8] sm:$0xff] %v1506_v5   ;;  %v595_v10 = vpop.f32.mrf.mxu0  ;;  %v635_v11 = vpop.f32.mrf.mxu1  ;;  %v674_v18 = vadd.f32 %v1719_v42, %v673_v8  ;;  %v714_v19 = vadd.f32 %v1719_v42, %v713_v9 }
 0x115   : > { %v596_v14 = vadd.f32 %v1719_v42, %v595_v10  ;;  %v636_v15 = vadd.f32 %v1719_v42, %v635_v11 }
 0x116   : > { %v831_v28 = vmul.f32 0.01, %v674_v18  ;;  %v847_v29 = vmul.f32 0.01, %v714_v19  ;;  %vm767_vm4 = vcmp.ge.f32.partialorder %v674_v18, 0.0  ;;  %vm783_vm5 = vcmp.ge.f32.partialorder %v714_v19, 0.0 }
 0x117   : > { %vm736_vm2 = vcmp.ge.f32.partialorder %v596_v14, 0.0  ;;  %v800_v16 = vmul.f32 0.01, %v596_v14  ;;  %vm752_vm3 = vcmp.ge.f32.partialorder %v636_v15, 0.0  ;;  %v816_v17 = vmul.f32 0.01, %v636_v15 }
 0x118   : > { %v895_v36 = vsel %vm767_vm4, %v674_v18, %v831_v28  ;;  %v911_v37 = vsel %vm783_vm5, %v714_v19, %v847_v29 }
 0x119   : > { %v864_v22 = vsel %vm736_vm2, %v596_v14, %v800_v16  ;;  %v880_v23 = vsel %vm752_vm3, %v636_v15, %v816_v17 }
 0x11a   : > { %v1391_v24 = vpack.c.bf16 %v864_v22, %v863_v20  ;;  %v1431_v25 = vpack.c.bf16 %v880_v23, %v879_v21 }
 0x11b   : > { %v675_v26 = vpop.f32.mrf.mxu2  ;;  %v715_v27 = vpop.f32.mrf.mxu3 }
 0x11c   : > { %1523 = vst [vmem:[%s1732_s28 + $0x30] sm:$0xff] %v1391_v24   ;;  %v676_v30 = vadd.f32 %v1719_v42, %v675_v26  ;;  %v716_v31 = vadd.f32 %v1719_v42, %v715_v27  ;;  %v598_v32 = vpop.f32.mrf.mxu0  ;;  %v638_v33 = vpop.f32.mrf.mxu1 }
 0x11d   : > { %1531 = vst [vmem:[%s1732_s28 + $0x70] sm:$0xff] %v1431_v25   ;;  %v599_v43 = vadd.f32 %v1719_v42, %v598_v32  ;;  %v639_v44 = vadd.f32 %v1719_v42, %v638_v33 }
 0x11e   : > { %vm768_vm6 = vcmp.ge.f32.partialorder %v676_v30, 0.0  ;;  %v832_v34 = vmul.f32 0.01, %v676_v30  ;;  %vm784_vm7 = vcmp.ge.f32.partialorder %v716_v31, 0.0  ;;  %v848_v35 = vmul.f32 0.01, %v716_v31 }
 0x11f   : > { %v801_v49 = vmul.f32 0.01, %v599_v43  ;;  %v817_v50 = vmul.f32 0.01, %v639_v44  ;;  %vm737_vm8 = vcmp.ge.f32.partialorder %v599_v43, 0.0  ;;  %vm753_vm9 = vcmp.ge.f32.partialorder %v639_v44, 0.0 }
 0x120   : > { %v896_v38 = vsel %vm768_vm6, %v676_v30, %v832_v34  ;;  %v912_v39 = vsel %vm784_vm7, %v716_v31, %v848_v35 }
 0x121   : > { %v1471_v40 = vpack.c.bf16 %v896_v38, %v895_v36  ;;  %v1511_v41 = vpack.c.bf16 %v912_v39, %v911_v37  ;;  %v865_v57 = vsel %vm737_vm8, %v599_v43, %v801_v49  ;;  %v881_v58 = vsel %vm753_vm9, %v639_v44, %v817_v50 }
 0x123   : > { %1539 = vst [vmem:[%s1732_s28 + $0xb0] sm:$0xff] %v1471_v40   ;;  %v678_v45 = vpop.f32.mrf.mxu2  ;;  %v718_v46 = vpop.f32.mrf.mxu3 }
 0x124   : > { %1547 = vst [vmem:[%s1732_s28 + $0xf0] sm:$0xff] %v1511_v41   ;;  %v600_v47 = vpop.f32.mrf.mxu0  ;;  %v640_v48 = vpop.f32.mrf.mxu1  ;;  %v679_v55 = vadd.f32 %v1719_v42, %v678_v45  ;;  %v719_v56 = vadd.f32 %v1719_v42, %v718_v46 }
 0x125   : > { %v601_v51 = vadd.f32 %v1719_v42, %v600_v47  ;;  %v641_v52 = vadd.f32 %v1719_v42, %v640_v48 }
 0x126   : > { %v833_v1 = vmul.f32 0.01, %v679_v55  ;;  %v849_v2 = vmul.f32 0.01, %v719_v56  ;;  %vm769_vm12 = vcmp.ge.f32.partialorder %v679_v55, 0.0  ;;  %vm785_vm13 = vcmp.ge.f32.partialorder %v719_v56, 0.0 }
 0x127   : > { %vm738_vm10 = vcmp.ge.f32.partialorder %v601_v51, 0.0  ;;  %v802_v53 = vmul.f32 0.01, %v601_v51  ;;  %vm754_vm11 = vcmp.ge.f32.partialorder %v641_v52, 0.0  ;;  %v818_v54 = vmul.f32 0.01, %v641_v52 }
 0x128   : > { %v897_v7 = vsel %vm769_vm12, %v679_v55, %v833_v1  ;;  %v913_v8 = vsel %vm785_vm13, %v719_v56, %v849_v2 }
 0x129   : > { %v866_v59 = vsel %vm738_vm10, %v601_v51, %v802_v53  ;;  %v882_v60 = vsel %vm754_vm11, %v641_v52, %v818_v54 }
 0x12a   : > { %v1396_v61 = vpack.c.bf16 %v866_v59, %v865_v57  ;;  %v1436_v62 = vpack.c.bf16 %v882_v60, %v881_v58 }
 0x12b   : > { %v680_v63 = vpop.f32.mrf.mxu2  ;;  %v720_v0 = vpop.f32.mrf.mxu3 }
 0x12c   : > { %1524 = vst [vmem:[%s1732_s28 + $0x38] sm:$0xff] %v1396_v61   ;;  %v681_v3 = vadd.f32 %v1719_v42, %v680_v63  ;;  %v721_v4 = vadd.f32 %v1719_v42, %v720_v0 }
 0x12d   : > { %1532 = vst [vmem:[%s1732_s28 + $0x78] sm:$0xff] %v1436_v62  }
 0x12e   : > { %vm770_vm14 = vcmp.ge.f32.partialorder %v681_v3, 0.0  ;;  %v834_v5 = vmul.f32 0.01, %v681_v3  ;;  %vm786_vm15 = vcmp.ge.f32.partialorder %v721_v4, 0.0  ;;  %v850_v6 = vmul.f32 0.01, %v721_v4 }
 0x130   : > { %v898_v9 = vsel %vm770_vm14, %v681_v3, %v834_v5  ;;  %v914_v10 = vsel %vm786_vm15, %v721_v4, %v850_v6 }
 0x131   : > { %v1476_v11 = vpack.c.bf16 %v898_v9, %v897_v7  ;;  %v1516_v12 = vpack.c.bf16 %v914_v10, %v913_v8 }
 0x133   : > { %1540 = vst [vmem:[%s1732_s28 + $0xb8] sm:$0xff] %v1476_v11  }
 0x134   : > { %1548 = vst [vmem:[%s1732_s28 + $0xf8] sm:$0xff] %v1516_v12  }
 0x135 PF: > { %s13_s14 = sadd.s32 1, %s1620_s14   ;;  %s1837_s12 = smov %s1616_s13 }
 0x136   : > { %p10_p5 = scmp.ge.s32.totalorder %s13_s14, 6   ;;  %s1838_s13 = smov %s1840_s15 }
 0x138   :  { %12 = sbr.rel (!%p10_p5) target bundleno = 2 (0x2), region = 65 }

// kernel: image_decoder_forward.9
= control target key start
LH: loop header
LB: loop body
LE: loop exit
PB: predicated region body
PF: predicated region fallthrough
CT: control target
= control target key end

     0   :  { %s1441_s12 = smov 0   ;;  %s1443_s13 = smov 0   ;;  %s1825_s0 = inlined_call_operand.vmem [shape: bf16[4,8,128], index: 0, kind: input, shape index: {}]   ;;  %s1826_s1 = inlined_call_operand.vmem [shape: bf16[4,128,2048], index: 1, kind: input, shape index: {}]   ;;  %s1827_s2 = inlined_call_operand.vmem [shape: f32[8,1], index: 2, kind: input, shape index: {}]   ;;  %s1828_s3 = inlined_call_operand.vmem [shape: f32[4,8,2048], index: 3, kind: output, shape index: {}]  }
   0x1   :  { %s1445_s14 = smov 0   ;;  %s1447_s15 = smov 0  }
   0x2   :  { %s1449_s16 = smov 0   ;;  %s1451_s17 = smov 0  }
   0x3   :  { %s1453_s18 = smov 0  }
   0x4 LB: > { %s22_s19 = sadd.s32 1, %s1410_s16  ;;  %s25_s20 = sadd.s32 1, %s1414_s17  ;;  %s1418_s18 = sphi %s1453_s18, %s13_s18   ;;  %s1414_s17 = sphi %s1451_s17, %s1834_s17   ;;  %s1410_s16 = sphi %s1449_s16, %s1833_s16   ;;  %s1406_s15 = sphi %s1447_s15, %s1832_s15   ;;  %s1402_s14 = sphi %s1445_s14, %s1831_s14   ;;  %s1398_s13 = sphi %s1443_s13, %s1830_s13   ;;  %s1394_s12 = sphi %s1441_s12, %s1829_s12  }
   0x5   : > { %p23_p0 = scmp.ge.s32.totalorder %s22_s19, 2  ;;  %p67_p1 = scmp.ne.s32.totalorder %s1398_s13, %s1394_s12 }
   0x6   : > { %p68_p2 = scmp.eq.s32.totalorder %s1418_s18, 0  ;;  %s60_s24 = sadd.s32 1, %s1398_s13 }
   0x7   : > { %s1836_s19 = smov (%p23_p0, %s22_s19), 0  ;;  %s1838_s20 = smov (!%p23_p0, %s25_s20), %s1414_s17 }
   0x8   : > { %p69_p3 = por %p68_p2, %p67_p1  ;;  %p27_p4 = scmp.ge.s32.totalorder %s1838_s20, 4 }
   0x9   : > { %s56_s21 = ssub.s32 %s1410_s16, %s1836_s19  ;;  %p973_p6 = scmp.ge.s32.totalorder %s1418_s18, 8 }
   0xa   : > { %s1840_s20 = smov (%p27_p4, %s1838_s20), 0 }
   0xb   : > { %s55_s22 = ssub.s32 %s1414_s17, %s1840_s20  ;;  %145 = sbr.rel (%p973_p6) target bundleno = 87 (0x57), region = 20 }
   0xc   : > { %s57_s23 = sor.u32 %s56_s21, %s55_s22 }
   0xd   : > { %p58_p5 = scmp.eq.s32.totalorder %s57_s23, 0 }
   0xf   : > { %s1492_s25 = scalar_select %p58_p5, %s1398_s13, %s60_s24  }
  0x10   : > { %155 = sbr.rel (!%p69_p3) target bundleno = 87 (0x57), region = 28  ;;  %s157_s26 = sand.u32 (%p69_p3), 1, %s1398_s13  }
  0x11   : > { %s975_s27 = sshll.u32 (%p69_p3), %s1410_s16, 3  ;;  %s974_s28 = sshll.u32 (%p69_p3), %s157_s26, 9 }
  0x12   : > { %s976_s29 = sshll.u32 (%p69_p3), %s1414_s17, 8  ;;  %s1506_s8 = scalar_lea.vmem (%p69_p3), [#allocation2], %s974_s28 }
  0x13   : > { %s162_s30 = sadd.s32 (%p69_p3), %s976_s29, %s975_s27 }
  0x14   : > { %s977_s4 = sshll.u32 (%p69_p3), %s162_s30, 2 }
  0x15   : > { %s1501_s7 = scalar_lea.vmem %s1826_s1, %s977_s4 }
  0x16   : > { %v177_v0 = vld [vmem:[%s1501_s7] sm:$0xff]  ;;  %v179_v1 = vld [vmem:[%s1501_s7 + $0x8] sm:$0xff]  ;;  %v181_v2 = vld [vmem:[%s1501_s7 + $0x10] sm:$0xff] }
  0x17   : > { %178 = vst [vmem:[%s1506_s8] sm:$0xff] %v177_v0  ;;  %v183_v3 = vld [vmem:[%s1501_s7 + $0x18] sm:$0xff]  ;;  %v185_v4 = vld [vmem:[%s1501_s7 + $0x40] sm:$0xff]  ;;  %v187_v5 = vld [vmem:[%s1501_s7 + $0x48] sm:$0xff] }
  0x18   : > { %180 = vst [vmem:[%s1506_s8 + $0x8] sm:$0xff] %v179_v1  ;;  %v189_v6 = vld [vmem:[%s1501_s7 + $0x50] sm:$0xff]  ;;  %v191_v7 = vld [vmem:[%s1501_s7 + $0x58] sm:$0xff]  ;;  %v193_v8 = vld [vmem:[%s1501_s7 + $0x80] sm:$0xff] }
  0x19   : > { %182 = vst [vmem:[%s1506_s8 + $0x10] sm:$0xff] %v181_v2  ;;  %v195_v9 = vld [vmem:[%s1501_s7 + $0x88] sm:$0xff]  ;;  %v197_v10 = vld [vmem:[%s1501_s7 + $0x90] sm:$0xff]  ;;  %v199_v11 = vld [vmem:[%s1501_s7 + $0x98] sm:$0xff] }
  0x1a   : > { %184 = vst [vmem:[%s1506_s8 + $0x18] sm:$0xff] %v183_v3  ;;  %v201_v12 = vld [vmem:[%s1501_s7 + $0xc0] sm:$0xff]  ;;  %v203_v13 = vld [vmem:[%s1501_s7 + $0xc8] sm:$0xff]  ;;  %v205_v14 = vld [vmem:[%s1501_s7 + $0xd0] sm:$0xff] }
  0x1b   : > { %186 = vst [vmem:[%s1506_s8 + $0x20] sm:$0xff] %v185_v4  ;;  %v207_v15 = vld [vmem:[%s1501_s7 + $0xd8] sm:$0xff]  ;;  %v209_v16 = vld [vmem:[%s1501_s7 + $0x100] sm:$0xff]  ;;  %v211_v17 = vld [vmem:[%s1501_s7 + $0x108] sm:$0xff] }
  0x1c   : > { %188 = vst [vmem:[%s1506_s8 + $0x28] sm:$0xff] %v187_v5  ;;  %v213_v18 = vld [vmem:[%s1501_s7 + $0x110] sm:$0xff]  ;;  %v215_v19 = vld [vmem:[%s1501_s7 + $0x118] sm:$0xff]  ;;  %v217_v20 = vld [vmem:[%s1501_s7 + $0x140] sm:$0xff] }
  0x1d   : > { %190 = vst [vmem:[%s1506_s8 + $0x30] sm:$0xff] %v189_v6  ;;  %v219_v21 = vld [vmem:[%s1501_s7 + $0x148] sm:$0xff]  ;;  %v221_v22 = vld [vmem:[%s1501_s7 + $0x150] sm:$0xff]  ;;  %v223_v23 = vld [vmem:[%s1501_s7 + $0x158] sm:$0xff] }
  0x1e   : > { %192 = vst [vmem:[%s1506_s8 + $0x38] sm:$0xff] %v191_v7  ;;  %v225_v24 = vld [vmem:[%s1501_s7 + $0x180] sm:$0xff]  ;;  %v227_v25 = vld [vmem:[%s1501_s7 + $0x188] sm:$0xff]  ;;  %v229_v26 = vld [vmem:[%s1501_s7 + $0x190] sm:$0xff] }
  0x1f   : > { %194 = vst [vmem:[%s1506_s8 + $0x40] sm:$0xff] %v193_v8  ;;  %v231_v27 = vld [vmem:[%s1501_s7 + $0x198] sm:$0xff]  ;;  %v233_v28 = vld [vmem:[%s1501_s7 + $0x1c0] sm:$0xff]  ;;  %v235_v29 = vld [vmem:[%s1501_s7 + $0x1c8] sm:$0xff] }
  0x20   : > { %196 = vst [vmem:[%s1506_s8 + $0x48] sm:$0xff] %v195_v9  ;;  %v237_v30 = vld [vmem:[%s1501_s7 + $0x1d0] sm:$0xff]  ;;  %v239_v31 = vld [vmem:[%s1501_s7 + $0x1d8] sm:$0xff]  ;;  %v241_v32 = vld [vmem:[%s1501_s7 + $0x200] sm:$0xff] }
  0x21   : > { %198 = vst [vmem:[%s1506_s8 + $0x50] sm:$0xff] %v197_v10  ;;  %v243_v33 = vld [vmem:[%s1501_s7 + $0x208] sm:$0xff]  ;;  %v245_v34 = vld [vmem:[%s1501_s7 + $0x210] sm:$0xff]  ;;  %v247_v35 = vld [vmem:[%s1501_s7 + $0x218] sm:$0xff] }
  0x22   : > { %200 = vst [vmem:[%s1506_s8 + $0x58] sm:$0xff] %v199_v11  ;;  %v249_v36 = vld [vmem:[%s1501_s7 + $0x240] sm:$0xff]  ;;  %v251_v37 = vld [vmem:[%s1501_s7 + $0x248] sm:$0xff]  ;;  %v253_v38 = vld [vmem:[%s1501_s7 + $0x250] sm:$0xff] }
  0x23   : > { %202 = vst [vmem:[%s1506_s8 + $0x60] sm:$0xff] %v201_v12  ;;  %v255_v39 = vld [vmem:[%s1501_s7 + $0x258] sm:$0xff]  ;;  %v257_v40 = vld [vmem:[%s1501_s7 + $0x280] sm:$0xff]  ;;  %v259_v41 = vld [vmem:[%s1501_s7 + $0x288] sm:$0xff] }
  0x24   : > { %204 = vst [vmem:[%s1506_s8 + $0x68] sm:$0xff] %v203_v13  ;;  %v261_v42 = vld [vmem:[%s1501_s7 + $0x290] sm:$0xff]  ;;  %v263_v43 = vld [vmem:[%s1501_s7 + $0x298] sm:$0xff]  ;;  %v265_v44 = vld [vmem:[%s1501_s7 + $0x2c0] sm:$0xff] }
  0x25   : > { %206 = vst [vmem:[%s1506_s8 + $0x70] sm:$0xff] %v205_v14  ;;  %v267_v45 = vld [vmem:[%s1501_s7 + $0x2c8] sm:$0xff]  ;;  %v269_v46 = vld [vmem:[%s1501_s7 + $0x2d0] sm:$0xff]  ;;  %v271_v47 = vld [vmem:[%s1501_s7 + $0x2d8] sm:$0xff] }
  0x26   : > { %208 = vst [vmem:[%s1506_s8 + $0x78] sm:$0xff] %v207_v15  ;;  %v273_v48 = vld [vmem:[%s1501_s7 + $0x300] sm:$0xff]  ;;  %v275_v49 = vld [vmem:[%s1501_s7 + $0x308] sm:$0xff]  ;;  %v277_v50 = vld [vmem:[%s1501_s7 + $0x310] sm:$0xff] }
  0x27   : > { %210 = vst [vmem:[%s1506_s8 + $0x80] sm:$0xff] %v209_v16  ;;  %v279_v51 = vld [vmem:[%s1501_s7 + $0x318] sm:$0xff]  ;;  %v281_v52 = vld [vmem:[%s1501_s7 + $0x340] sm:$0xff]  ;;  %v283_v53 = vld [vmem:[%s1501_s7 + $0x348] sm:$0xff] }
  0x28   : > { %212 = vst [vmem:[%s1506_s8 + $0x88] sm:$0xff] %v211_v17  ;;  %v285_v54 = vld [vmem:[%s1501_s7 + $0x350] sm:$0xff]  ;;  %v287_v55 = vld [vmem:[%s1501_s7 + $0x358] sm:$0xff]  ;;  %v289_v56 = vld [vmem:[%s1501_s7 + $0x380] sm:$0xff] }
  0x29   : > { %214 = vst [vmem:[%s1506_s8 + $0x90] sm:$0xff] %v213_v18  ;;  %v291_v57 = vld [vmem:[%s1501_s7 + $0x388] sm:$0xff]  ;;  %v293_v58 = vld [vmem:[%s1501_s7 + $0x390] sm:$0xff]  ;;  %v295_v59 = vld [vmem:[%s1501_s7 + $0x398] sm:$0xff] }
  0x2a   : > { %216 = vst [vmem:[%s1506_s8 + $0x98] sm:$0xff] %v215_v19  ;;  %v297_v60 = vld [vmem:[%s1501_s7 + $0x3c0] sm:$0xff]  ;;  %v299_v61 = vld [vmem:[%s1501_s7 + $0x3c8] sm:$0xff]  ;;  %v301_v62 = vld [vmem:[%s1501_s7 + $0x3d0] sm:$0xff] }
  0x2b   : > { %218 = vst [vmem:[%s1506_s8 + $0xa0] sm:$0xff] %v217_v20  ;;  %v303_v63 = vld [vmem:[%s1501_s7 + $0x3d8] sm:$0xff] }
  0x2c   : > { %220 = vst [vmem:[%s1506_s8 + $0xa8] sm:$0xff] %v219_v21 }
  0x2d   : > { %222 = vst [vmem:[%s1506_s8 + $0xb0] sm:$0xff] %v221_v22 }
  0x2e   : > { %224 = vst [vmem:[%s1506_s8 + $0xb8] sm:$0xff] %v223_v23 }
  0x2f   : > { %226 = vst [vmem:[%s1506_s8 + $0xc0] sm:$0xff] %v225_v24 }
  0x30   : > { %228 = vst [vmem:[%s1506_s8 + $0xc8] sm:$0xff] %v227_v25 }
  0x31   : > { %230 = vst [vmem:[%s1506_s8 + $0xd0] sm:$0xff] %v229_v26 }
  0x32   : > { %232 = vst [vmem:[%s1506_s8 + $0xd8] sm:$0xff] %v231_v27 }
  0x33   : > { %234 = vst [vmem:[%s1506_s8 + $0xe0] sm:$0xff] %v233_v28 }
  0x34   : > { %236 = vst [vmem:[%s1506_s8 + $0xe8] sm:$0xff] %v235_v29 }
  0x35   : > { %238 = vst [vmem:[%s1506_s8 + $0xf0] sm:$0xff] %v237_v30 }
  0x36   : > { %240 = vst [vmem:[%s1506_s8 + $0xf8] sm:$0xff] %v239_v31 }
  0x37   : > { %242 = vst [vmem:[%s1506_s8 + $0x100] sm:$0xff] %v241_v32 }
  0x38   : > { %244 = vst [vmem:[%s1506_s8 + $0x108] sm:$0xff] %v243_v33 }
  0x39   : > { %246 = vst [vmem:[%s1506_s8 + $0x110] sm:$0xff] %v245_v34 }
  0x3a   : > { %248 = vst [vmem:[%s1506_s8 + $0x118] sm:$0xff] %v247_v35 }
  0x3b   : > { %250 = vst [vmem:[%s1506_s8 + $0x120] sm:$0xff] %v249_v36 }
  0x3c   : > { %252 = vst [vmem:[%s1506_s8 + $0x128] sm:$0xff] %v251_v37 }
  0x3d   : > { %254 = vst [vmem:[%s1506_s8 + $0x130] sm:$0xff] %v253_v38 }
  0x3e   : > { %256 = vst [vmem:[%s1506_s8 + $0x138] sm:$0xff] %v255_v39 }
  0x3f   : > { %258 = vst [vmem:[%s1506_s8 + $0x140] sm:$0xff] %v257_v40 }
  0x40   : > { %260 = vst [vmem:[%s1506_s8 + $0x148] sm:$0xff] %v259_v41 }
  0x41   : > { %262 = vst [vmem:[%s1506_s8 + $0x150] sm:$0xff] %v261_v42 }
  0x42   : > { %264 = vst [vmem:[%s1506_s8 + $0x158] sm:$0xff] %v263_v43 }
  0x43   : > { %266 = vst [vmem:[%s1506_s8 + $0x160] sm:$0xff] %v265_v44 }
  0x44   : > { %268 = vst [vmem:[%s1506_s8 + $0x168] sm:$0xff] %v267_v45 }
  0x45   : > { %270 = vst [vmem:[%s1506_s8 + $0x170] sm:$0xff] %v269_v46 }
  0x46   : > { %272 = vst [vmem:[%s1506_s8 + $0x178] sm:$0xff] %v271_v47 }
  0x47   : > { %274 = vst [vmem:[%s1506_s8 + $0x180] sm:$0xff] %v273_v48 }
  0x48   : > { %276 = vst [vmem:[%s1506_s8 + $0x188] sm:$0xff] %v275_v49 }
  0x49   : > { %278 = vst [vmem:[%s1506_s8 + $0x190] sm:$0xff] %v277_v50 }
  0x4a   : > { %280 = vst [vmem:[%s1506_s8 + $0x198] sm:$0xff] %v279_v51 }
  0x4b   : > { %282 = vst [vmem:[%s1506_s8 + $0x1a0] sm:$0xff] %v281_v52 }
  0x4c   : > { %284 = vst [vmem:[%s1506_s8 + $0x1a8] sm:$0xff] %v283_v53 }
  0x4d   : > { %286 = vst [vmem:[%s1506_s8 + $0x1b0] sm:$0xff] %v285_v54 }
  0x4e   : > { %288 = vst [vmem:[%s1506_s8 + $0x1b8] sm:$0xff] %v287_v55 }
  0x4f   : > { %290 = vst [vmem:[%s1506_s8 + $0x1c0] sm:$0xff] %v289_v56 }
  0x50   : > { %292 = vst [vmem:[%s1506_s8 + $0x1c8] sm:$0xff] %v291_v57 }
  0x51   : > { %294 = vst [vmem:[%s1506_s8 + $0x1d0] sm:$0xff] %v293_v58 }
  0x52   : > { %296 = vst [vmem:[%s1506_s8 + $0x1d8] sm:$0xff] %v295_v59 }
  0x53   : > { %298 = vst [vmem:[%s1506_s8 + $0x1e0] sm:$0xff] %v297_v60 }
  0x54   : > { %300 = vst [vmem:[%s1506_s8 + $0x1e8] sm:$0xff] %v299_v61 }
  0x55   : > { %302 = vst [vmem:[%s1506_s8 + $0x1f0] sm:$0xff] %v301_v62 }
  0x56   : > { %304 = vst [vmem:[%s1506_s8 + $0x1f8] sm:$0xff] %v303_v63 }
  0x57 PF: > { %p978_p7 = scmp.ge.s32.totalorder %s1418_s18, 1  ;;  %p309_p8 = scmp.lt.s32.totalorder %s1418_s18, 9 }
  0x59   : > { %p310_p9 = pnand %p978_p7, %p309_p8 }
  0x5a   : > { %s316_s9 = sand.u32 (!%p310_p9), 1, %s1394_s12   ;;  %p347_p10 = scmp.lt.s32.totalorder (!%p310_p9), %s1406_s15, 3 }
  0x5b   : > { %313 = sbr.rel (%p310_p9) target bundleno = 305 (0x131), region = 51  ;;  %s979_s10 = sshll.u32 (!%p310_p9), %s316_s9, 9 }
  0x5c   : > { %s1636_s11 = scalar_lea.vmem (!%p310_p9), [#allocation2], %s979_s10  ;;  %s981_s27 = sshll.u32 (!%p310_p9), %s1402_s14, 3 }
  0x5d   : > { %p355_p11 = scmp.lt.s32.totalorder (!%p310_p9), %s981_s27, 15 }
  0x60   : > { %v1210_v0 = vld [vmem:[%s1636_s11 + $0x1c0] sm:$0xf]  ;;  %v1298_v2 = vld [vmem:[%s1636_s11 + $0x1c4] sm:$0xf]  ;;  %v1218_v5 = vld [vmem:[%s1636_s11 + $0x1c8] sm:$0xf] }
  0x61   : > { %v1302_v1 = vld [vmem:[%s1636_s11 + $0x1dc] sm:$0xf0]  ;;  %v1212_v4 = vld [vmem:[%s1636_s11 + $0x1e0] sm:$0xf0]  ;;  %v1303_v6 = vld [vmem:[%s1636_s11 + $0x1e4] sm:$0xf0] }
  0x62   : > { %v1211_v3 = vor.u32 %v1302_v1, %v1210_v0  ;;  %v1215_v7 = vor.u32 %v1298_v2, %v1212_v4  ;;  %v1219_v8 = vor.u32 %v1303_v6, %v1218_v5  ;;  %v1299_v9 = vld [vmem:[%s1636_s11 + $0x1cc] sm:$0xf]  ;;  %v1178_v11 = vld [vmem:[%s1636_s11 + $0x180] sm:$0xf]  ;;  %v1290_v14 = vld [vmem:[%s1636_s11 + $0x184] sm:$0xf] }
  0x63   : > { %v1220_v10 = vld [vmem:[%s1636_s11 + $0x1e8] sm:$0xf0]  ;;  %v1294_v13 = vld [vmem:[%s1636_s11 + $0x19c] sm:$0xf0]  ;;  %v1180_v15 = vld [vmem:[%s1636_s11 + $0x1a0] sm:$0xf0] }
  0x64   : > { %753 = vmatpush.bf16.msra.mxu0 %v1211_v3  ;;  %v1223_v12 = vor.u32 %v1299_v9, %v1220_v10  ;;  %766 = vmatpush.bf16.msra.mxu1 %v1215_v7  ;;  %v1179_v16 = vor.u32 %v1294_v13, %v1178_v11  ;;  %v1183_v17 = vor.u32 %v1290_v14, %v1180_v15  ;;  %v1186_v18 = vld [vmem:[%s1636_s11 + $0x188] sm:$0xf]  ;;  %v1291_v20 = vld [vmem:[%s1636_s11 + $0x18c] sm:$0xf]  ;;  %v1146_v23 = vld [vmem:[%s1636_s11 + $0x140] sm:$0xf] }
  0x65   : > { %779 = vmatpush.bf16.msra.mxu2 %v1219_v8  ;;  %v1295_v19 = vld [vmem:[%s1636_s11 + $0x1a4] sm:$0xf0]  ;;  %v1188_v22 = vld [vmem:[%s1636_s11 + $0x1a8] sm:$0xf0]  ;;  %v1286_v24 = vld [vmem:[%s1636_s11 + $0x15c] sm:$0xf0] }
  0x66   : > { %792 = vmatpush.bf16.msra.mxu3 %v1223_v12  ;;  %v1187_v21 = vor.u32 %v1295_v19, %v1186_v18  ;;  %v1191_v25 = vor.u32 %v1291_v20, %v1188_v22  ;;  %v1282_v26 = vld [vmem:[%s1636_s11 + $0x144] sm:$0xf]  ;;  %v1154_v28 = vld [vmem:[%s1636_s11 + $0x148] sm:$0xf]  ;;  %v1147_v29 = vor.u32 %v1286_v24, %v1146_v23  ;;  %v1283_v31 = vld [vmem:[%s1636_s11 + $0x14c] sm:$0xf] }
  0x67   : > { %v1148_v27 = vld [vmem:[%s1636_s11 + $0x160] sm:$0xf0]  ;;  %v1287_v30 = vld [vmem:[%s1636_s11 + $0x164] sm:$0xf0]  ;;  %v1156_v32 = vld [vmem:[%s1636_s11 + $0x168] sm:$0xf0] }
  0x68   : > { %754 = vmatpush.bf16.msra.mxu0 %v1179_v16  ;;  %767 = vmatpush.bf16.msra.mxu1 %v1183_v17  ;;  %v1151_v33 = vor.u32 %v1282_v26, %v1148_v27  ;;  %v1155_v34 = vor.u32 %v1287_v30, %v1154_v28  ;;  %v1114_v35 = vld [vmem:[%s1636_s11 + $0x100] sm:$0xf]  ;;  %v1274_v37 = vld [vmem:[%s1636_s11 + $0x104] sm:$0xf]  ;;  %v1159_v38 = vor.u32 %v1283_v31, %v1156_v32  ;;  %v1122_v40 = vld [vmem:[%s1636_s11 + $0x108] sm:$0xf] }
  0x69   : > { %780 = vmatpush.bf16.msra.mxu2 %v1187_v21  ;;  %v1278_v36 = vld [vmem:[%s1636_s11 + $0x11c] sm:$0xf0]  ;;  %v1116_v39 = vld [vmem:[%s1636_s11 + $0x120] sm:$0xf0]  ;;  %v1279_v41 = vld [vmem:[%s1636_s11 + $0x124] sm:$0xf0] }
  0x6a   : > { %793 = vmatpush.bf16.msra.mxu3 %v1191_v25  ;;  %v1275_v42 = vld [vmem:[%s1636_s11 + $0x10c] sm:$0xf]  ;;  %v1115_v44 = vor.u32 %v1278_v36, %v1114_v35  ;;  %v1119_v45 = vor.u32 %v1274_v37, %v1116_v39  ;;  %v1123_v46 = vor.u32 %v1279_v41, %v1122_v40  ;;  %v1082_v47 = vld [vmem:[%s1636_s11 + $0xc0] sm:$0xf]  ;;  %v1266_v49 = vld [vmem:[%s1636_s11 + $0xc4] sm:$0xf] }
  0x6b   : > { %v1124_v43 = vld [vmem:[%s1636_s11 + $0x128] sm:$0xf0]  ;;  %v1270_v48 = vld [vmem:[%s1636_s11 + $0xdc] sm:$0xf0]  ;;  %v1084_v51 = vld [vmem:[%s1636_s11 + $0xe0] sm:$0xf0] }
  0x6c   : > { %755 = vmatpush.bf16.msra.mxu0 %v1147_v29  ;;  %768 = vmatpush.bf16.msra.mxu1 %v1151_v33  ;;  %v1127_v50 = vor.u32 %v1275_v42, %v1124_v43  ;;  %v1090_v52 = vld [vmem:[%s1636_s11 + $0xc8] sm:$0xf]  ;;  %v1267_v54 = vld [vmem:[%s1636_s11 + $0xcc] sm:$0xf]  ;;  %v1083_v56 = vor.u32 %v1270_v48, %v1082_v47  ;;  %v1087_v57 = vor.u32 %v1266_v49, %v1084_v51  ;;  %v1050_v59 = vld [vmem:[%s1636_s11 + $0x80] sm:$0xf] }
  0x6d   : > { %781 = vmatpush.bf16.msra.mxu2 %v1155_v34  ;;  %v1271_v53 = vld [vmem:[%s1636_s11 + $0xe4] sm:$0xf0]  ;;  %v1092_v55 = vld [vmem:[%s1636_s11 + $0xe8] sm:$0xf0]  ;;  %v1262_v60 = vld [vmem:[%s1636_s11 + $0x9c] sm:$0xf0] }
  0x6e   : > { %794 = vmatpush.bf16.msra.mxu3 %v1159_v38  ;;  %v1091_v58 = vor.u32 %v1271_v53, %v1090_v52  ;;  %v1258_v61 = vld [vmem:[%s1636_s11 + $0x84] sm:$0xf]  ;;  %v1095_v62 = vor.u32 %v1267_v54, %v1092_v55  ;;  %v1058_v0 = vld [vmem:[%s1636_s11 + $0x88] sm:$0xf]  ;;  %v1259_v2 = vld [vmem:[%s1636_s11 + $0x8c] sm:$0xf]  ;;  %v1051_v4 = vor.u32 %v1262_v60, %v1050_v59 }
  0x6f   : > { %v1052_v63 = vld [vmem:[%s1636_s11 + $0xa0] sm:$0xf0]  ;;  %v1263_v1 = vld [vmem:[%s1636_s11 + $0xa4] sm:$0xf0]  ;;  %v1060_v3 = vld [vmem:[%s1636_s11 + $0xa8] sm:$0xf0] }
  0x70   : > { %756 = vmatpush.bf16.msra.mxu0 %v1115_v44  ;;  %769 = vmatpush.bf16.msra.mxu1 %v1119_v45  ;;  %v1055_v5 = vor.u32 %v1258_v61, %v1052_v63  ;;  %v1059_v6 = vor.u32 %v1263_v1, %v1058_v0  ;;  %v1018_v7 = vld [vmem:[%s1636_s11 + $0x40] sm:$0xf]  ;;  %v1250_v9 = vld [vmem:[%s1636_s11 + $0x44] sm:$0xf]  ;;  %v1063_v10 = vor.u32 %v1259_v2, %v1060_v3  ;;  %v1026_v12 = vld [vmem:[%s1636_s11 + $0x48] sm:$0xf] }
  0x71   : > { %782 = vmatpush.bf16.msra.mxu2 %v1123_v46  ;;  %v1254_v8 = vld [vmem:[%s1636_s11 + $0x5c] sm:$0xf0]  ;;  %v1020_v11 = vld [vmem:[%s1636_s11 + $0x60] sm:$0xf0]  ;;  %v1255_v13 = vld [vmem:[%s1636_s11 + $0x64] sm:$0xf0] }
  0x72   : > { %795 = vmatpush.bf16.msra.mxu3 %v1127_v50  ;;  %v1251_v14 = vld [vmem:[%s1636_s11 + $0x4c] sm:$0xf]  ;;  %v1019_v16 = vor.u32 %v1254_v8, %v1018_v7  ;;  %v986_v17 = vld [vmem:[%s1636_s11] sm:$0xf]  ;;  %v1242_v19 = vld [vmem:[%s1636_s11 + $0x4] sm:$0xf]  ;;  %v1023_v20 = vor.u32 %v1250_v9, %v1020_v11  ;;  %v1027_v21 = vor.u32 %v1255_v13, %v1026_v12 }
  0x73   : > { %v1028_v15 = vld [vmem:[%s1636_s11 + $0x68] sm:$0xf0]  ;;  %v1246_v18 = vld [vmem:[%s1636_s11 + $0x1c] sm:$0xf0]  ;;  %v988_v22 = vld [vmem:[%s1636_s11 + $0x20] sm:$0xf0] }
  0x74   : > { %757 = vmatpush.bf16.msra.mxu0 %v1083_v56  ;;  %770 = vmatpush.bf16.msra.mxu1 %v1087_v57  ;;  %v994_v23 = vld [vmem:[%s1636_s11 + $0x8] sm:$0xf]  ;;  %v1031_v25 = vor.u32 %v1251_v14, %v1028_v15  ;;  %v1243_v26 = vld [vmem:[%s1636_s11 + $0xc] sm:$0xf]  ;;  %v1226_v28 = vld [vmem:[%s1636_s11 + $0x1d0] sm:$0xf]  ;;  %v987_v31 = vor.u32 %v1246_v18, %v986_v17  ;;  %v991_v35 = vor.u32 %v1242_v19, %v988_v22 }
  0x75   : > { %783 = vmatpush.bf16.msra.mxu2 %v1091_v58  ;;  %v1247_v24 = vld [vmem:[%s1636_s11 + $0x24] sm:$0xf0]  ;;  %v996_v27 = vld [vmem:[%s1636_s11 + $0x28] sm:$0xf0]  ;;  %v1304_v29 = vld [vmem:[%s1636_s11 + $0x1ec] sm:$0xf0] }
  0x76   : > { %796 = vmatpush.bf16.msra.mxu3 %v1095_v62  ;;  %v1300_v30 = vld [vmem:[%s1636_s11 + $0x1d4] sm:$0xf]  ;;  %s1842_s15 = smov (!%p347_p10, %s1406_s15), 3  ;;  %v1234_v33 = vld [vmem:[%s1636_s11 + $0x1d8] sm:$0xf]  ;;  %v995_v36 = vor.u32 %v1247_v24, %v994_v23  ;;  %v999_v39 = vor.u32 %v1243_v26, %v996_v27  ;;  %v1227_v40 = vor.u32 %v1304_v29, %v1226_v28  ;;  %v1420_v27 = vmov 0  }
  0x77   : > { %v1228_v32 = vld [vmem:[%s1636_s11 + $0x1f0] sm:$0xf0]  ;;  %v1305_v34 = vld [vmem:[%s1636_s11 + $0x1f4] sm:$0xf0]  ;;  %v1301_v37 = vld [vmem:[%s1636_s11 + $0x1dc] sm:$0xf]  ;;  %1363 = vset.pattern.permute.xlu0 %v1420_v27 }
  0x78   : > { %758 = vmatpush.bf16.msra.mxu0 %v1051_v4  ;;  %771 = vmatpush.bf16.msra.mxu1 %v1055_v5  ;;  %v1236_v38 = vld [vmem:[%s1636_s11 + $0x1f8] sm:$0xf0]  ;;  %s980_s12 = sshll.u32 %s1842_s15, 2  ;;  %v1231_v41 = vor.u32 %v1300_v30, %v1228_v32  ;;  %v1235_v42 = vor.u32 %v1305_v34, %v1234_v33  ;;  %v1194_v43 = vld [vmem:[%s1636_s11 + $0x190] sm:$0xf]  ;;  %s1844_s27 = smov (!%p355_p11, %s981_s27), 15 }
  0x79   : > { %784 = vmatpush.bf16.msra.mxu2 %v1059_v6  ;;  %s350_s23 = scalar_lea.vmem %s1825_s0, %s980_s12  ;;  %v1296_v44 = vld [vmem:[%s1636_s11 + $0x1ac] sm:$0xf0]  ;;  %v1292_v45 = vld [vmem:[%s1636_s11 + $0x194] sm:$0xf]  ;;  %v1239_v46 = vor.u32 %v1301_v37, %v1236_v38  ;;  %v1202_v48 = vld [vmem:[%s1636_s11 + $0x198] sm:$0xf] }
  0x7a   : > { %797 = vmatpush.bf16.msra.mxu3 %v1063_v10  ;;  %v1196_v47 = vld [vmem:[%s1636_s11 + $0x1b0] sm:$0xf0]  ;;  %v1297_v49 = vld [vmem:[%s1636_s11 + $0x1b4] sm:$0xf0]  ;;  %v1293_v50 = vld [vmem:[%s1636_s11 + $0x19c] sm:$0xf]  ;;  %v1195_v53 = vor.u32 %v1296_v44, %v1194_v43 }
  0x7b   : > { %v1204_v51 = vld [vmem:[%s1636_s11 + $0x1b8] sm:$0xf0]  ;;  %v1728_v52 = vld [vmem:[%s350_s23] sm:$0xf]  ;;  %v1199_v54 = vor.u32 %v1292_v45, %v1196_v47  ;;  %v1203_v55 = vor.u32 %v1297_v49, %v1202_v48  ;;  %v1162_v56 = vld [vmem:[%s1636_s11 + $0x150] sm:$0xf] }
  0x7c   : > { %759 = vmatpush.bf16.msra.mxu0 %v1019_v16  ;;  %772 = vmatpush.bf16.msra.mxu1 %v1023_v20  ;;  %v1288_v57 = vld [vmem:[%s1636_s11 + $0x16c] sm:$0xf0]  ;;  %v1284_v58 = vld [vmem:[%s1636_s11 + $0x154] sm:$0xf]  ;;  %v1207_v59 = vor.u32 %v1293_v50, %v1204_v51  ;;  %v1170_v61 = vld [vmem:[%s1636_s11 + $0x158] sm:$0xf] }
  0x7d   : > { %785 = vmatpush.bf16.msra.mxu2 %v1027_v21  ;;  %v1164_v60 = vld [vmem:[%s1636_s11 + $0x170] sm:$0xf0]  ;;  %v1289_v62 = vld [vmem:[%s1636_s11 + $0x174] sm:$0xf0]  ;;  %v1285_v63 = vld [vmem:[%s1636_s11 + $0x15c] sm:$0xf]  ;;  %v1163_v1 = vor.u32 %v1288_v57, %v1162_v56 }
  0x7e   : > { %798 = vmatpush.bf16.msra.mxu3 %v1031_v25  ;;  %v1172_v0 = vld [vmem:[%s1636_s11 + $0x178] sm:$0xf0]  ;;  %v1167_v2 = vor.u32 %v1284_v58, %v1164_v60  ;;  %v1171_v3 = vor.u32 %v1289_v62, %v1170_v61  ;;  %v1130_v4 = vld [vmem:[%s1636_s11 + $0x110] sm:$0xf]  ;;  %v1276_v6 = vld [vmem:[%s1636_s11 + $0x114] sm:$0xf] }
  0x7f   : > { %v1280_v5 = vld [vmem:[%s1636_s11 + $0x12c] sm:$0xf0]  ;;  %v1175_v7 = vor.u32 %v1285_v63, %v1172_v0  ;;  %v1132_v8 = vld [vmem:[%s1636_s11 + $0x130] sm:$0xf0]  ;;  %v1138_v9 = vld [vmem:[%s1636_s11 + $0x118] sm:$0xf] }
  0x80   : > { %760 = vmatpush.bf16.msra.mxu0 %v987_v31  ;;  %773 = vmatpush.bf16.msra.mxu1 %v991_v35  ;;  %v1281_v10 = vld [vmem:[%s1636_s11 + $0x134] sm:$0xf0]  ;;  %v1277_v11 = vld [vmem:[%s1636_s11 + $0x11c] sm:$0xf]  ;;  %v1131_v13 = vor.u32 %v1280_v5, %v1130_v4  ;;  %v1135_v14 = vor.u32 %v1276_v6, %v1132_v8  ;;  %v1098_v16 = vld [vmem:[%s1636_s11 + $0xd0] sm:$0xf] }
  0x81   : > { %786 = vmatpush.bf16.msra.mxu2 %v995_v36  ;;  %v1140_v12 = vld [vmem:[%s1636_s11 + $0x138] sm:$0xf0]  ;;  %v1139_v15 = vor.u32 %v1281_v10, %v1138_v9  ;;  %v1272_v17 = vld [vmem:[%s1636_s11 + $0xec] sm:$0xf0]  ;;  %v1268_v18 = vld [vmem:[%s1636_s11 + $0xd4] sm:$0xf] }
  0x82   : > { %799 = vmatpush.bf16.msra.mxu3 %v999_v39  ;;  %v1143_v19 = vor.u32 %v1277_v11, %v1140_v12  ;;  %v1100_v20 = vld [vmem:[%s1636_s11 + $0xf0] sm:$0xf0]  ;;  %v1106_v21 = vld [vmem:[%s1636_s11 + $0xd8] sm:$0xf]  ;;  %v1269_v23 = vld [vmem:[%s1636_s11 + $0xdc] sm:$0xf]  ;;  %v1099_v26 = vor.u32 %v1272_v17, %v1098_v16 }
  0x83   : > { %761 = vmatmul.bf16.vlgmr.msra.gmra.mxu0 %v1728_v52  ;;  %774 = vmatmul.bf16.vlgmr.msra.gmra.mxu1 %v1728_v52  ;;  %v1273_v22 = vld [vmem:[%s1636_s11 + $0xf4] sm:$0xf0]  ;;  %v1108_v24 = vld [vmem:[%s1636_s11 + $0xf8] sm:$0xf0]  ;;  %v427_v25 = vld [vmem:[%s1827_s2] sm:$0xff]  ;;  %v1103_v28 = vor.u32 %v1268_v18, %v1100_v20  ;;  %s982_s28 = sshll.u32 %s1842_s15, 4 }
  0x84   : > { %805 = vmatpush.bf16.msrb.mxu0 %v1227_v40  ;;  %818 = vmatpush.bf16.msrb.mxu1 %v1231_v41  ;;  %v1107_v29 = vor.u32 %v1273_v22, %v1106_v21  ;;  %v1066_v30 = vld [vmem:[%s1636_s11 + $0x90] sm:$0xf]  ;;  %v1260_v32 = vld [vmem:[%s1636_s11 + $0x94] sm:$0xf]  ;;  %v1111_v33 = vor.u32 %v1269_v23, %v1108_v24  ;;  %v1074_v35 = vld [vmem:[%s1636_s11 + $0x98] sm:$0xf]  ;;  %s358_s29 = sadd.s32 %s982_s28, %s1844_s27 }
  0x85   : > { %831 = vmatpush.bf16.msrb.mxu2 %v1235_v42  ;;  %800 = vmatmul.bf16.vlgmr.msra.gmra.mxu3 %v1728_v52  ;;  %v1264_v31 = vld [vmem:[%s1636_s11 + $0xac] sm:$0xf0]  ;;  %v1068_v34 = vld [vmem:[%s1636_s11 + $0xb0] sm:$0xf0]  ;;  %v1265_v36 = vld [vmem:[%s1636_s11 + $0xb4] sm:$0xf0] }
  0x86   : > { %844 = vmatpush.bf16.msrb.mxu3 %v1239_v46  ;;  %787 = vmatmul.bf16.vlgmr.msra.gmra.mxu2 %v1728_v52  ;;  %v1261_v37 = vld [vmem:[%s1636_s11 + $0x9c] sm:$0xf]  ;;  %v1067_v39 = vor.u32 %v1264_v31, %v1066_v30  ;;  %v1071_v40 = vor.u32 %v1260_v32, %v1068_v34  ;;  %v1075_v41 = vor.u32 %v1265_v36, %v1074_v35  ;;  %v1034_v42 = vld [vmem:[%s1636_s11 + $0x50] sm:$0xf]  ;;  %v1252_v44 = vld [vmem:[%s1636_s11 + $0x54] sm:$0xf] }
  0x87   : > { %430 = vperm.xlu0 %1363, %v427_v25   ;;  %v1076_v38 = vld [vmem:[%s1636_s11 + $0xb8] sm:$0xf0]  ;;  %v1256_v43 = vld [vmem:[%s1636_s11 + $0x6c] sm:$0xf0]  ;;  %v1036_v46 = vld [vmem:[%s1636_s11 + $0x70] sm:$0xf0] }
  0x88   : > { %806 = vmatpush.bf16.msrb.mxu0 %v1195_v53  ;;  %819 = vmatpush.bf16.msrb.mxu1 %v1199_v54  ;;  %v1079_v45 = vor.u32 %v1261_v37, %v1076_v38  ;;  %v1042_v47 = vld [vmem:[%s1636_s11 + $0x58] sm:$0xf]  ;;  %v1253_v49 = vld [vmem:[%s1636_s11 + $0x5c] sm:$0xf]  ;;  %v1035_v51 = vor.u32 %v1256_v43, %v1034_v42  ;;  %v1039_v53 = vor.u32 %v1252_v44, %v1036_v46  ;;  %v1248_v56 = vld [vmem:[%s1636_s11 + $0x2c] sm:$0xf0] }
  0x89   : > { %832 = vmatpush.bf16.msrb.mxu2 %v1203_v55  ;;  %v1257_v48 = vld [vmem:[%s1636_s11 + $0x74] sm:$0xf0]  ;;  %v1044_v50 = vld [vmem:[%s1636_s11 + $0x78] sm:$0xf0]  ;;  %v1002_v55 = vld [vmem:[%s1636_s11 + $0x10] sm:$0xf] }
  0x8a   : > { %845 = vmatpush.bf16.msrb.mxu3 %v1207_v59  ;;  %v1043_v54 = vor.u32 %v1257_v48, %v1042_v47  ;;  %v1244_v57 = vld [vmem:[%s1636_s11 + $0x14] sm:$0xf]  ;;  %v1047_v58 = vor.u32 %v1253_v49, %v1044_v50  ;;  %v1010_v60 = vld [vmem:[%s1636_s11 + $0x18] sm:$0xf]  ;;  %v1245_v62 = vld [vmem:[%s1636_s11 + $0x1c] sm:$0xf]  ;;  %v1003_v0 = vor.u32 %v1248_v56, %v1002_v55 }
  0x8b   : > { %v1004_v59 = vld [vmem:[%s1636_s11 + $0x30] sm:$0xf0]  ;;  %v1249_v61 = vld [vmem:[%s1636_s11 + $0x34] sm:$0xf0]  ;;  %v1012_v63 = vld [vmem:[%s1636_s11 + $0x38] sm:$0xf0] }
  0x8c   : > { %807 = vmatpush.bf16.msrb.mxu0 %v1163_v1  ;;  %820 = vmatpush.bf16.msrb.mxu1 %v1167_v2  ;;  %v1007_v1 = vor.u32 %v1244_v57, %v1004_v59  ;;  %v1011_v2 = vor.u32 %v1249_v61, %v1010_v60  ;;  %s983_s30 = sshll.u32 %s358_s29, 3 }
  0x8d   : > { %833 = vmatpush.bf16.msrb.mxu2 %v1171_v3  ;;  %v1015_v3 = vor.u32 %v1245_v62, %v1012_v63  ;;  %s1794_s6 = scalar_lea.vmem %s1828_s3, %s983_s30 }
  0x8e   : > { %846 = vmatpush.bf16.msrb.mxu3 %v1175_v7 }
  0x90   : > { %808 = vmatpush.bf16.msrb.mxu0 %v1131_v13  ;;  %821 = vmatpush.bf16.msrb.mxu1 %v1135_v14 }
  0x91   : > { %834 = vmatpush.bf16.msrb.mxu2 %v1139_v15 }
  0x92   : > { %847 = vmatpush.bf16.msrb.mxu3 %v1143_v19 }
  0x94   : > { %809 = vmatpush.bf16.msrb.mxu0 %v1099_v26  ;;  %822 = vmatpush.bf16.msrb.mxu1 %v1103_v28 }
  0x95   : > { %835 = vmatpush.bf16.msrb.mxu2 %v1107_v29 }
  0x96   : > { %848 = vmatpush.bf16.msrb.mxu3 %v1111_v33 }
  0x98   : > { %810 = vmatpush.bf16.msrb.mxu0 %v1067_v39  ;;  %823 = vmatpush.bf16.msrb.mxu1 %v1071_v40 }
  0x99   : > { %836 = vmatpush.bf16.msrb.mxu2 %v1075_v41 }
  0x9a   : > { %849 = vmatpush.bf16.msrb.mxu3 %v1079_v45 }
  0x9c   : > { %811 = vmatpush.bf16.msrb.mxu0 %v1035_v51  ;;  %824 = vmatpush.bf16.msrb.mxu1 %v1039_v53 }
  0x9d   : > { %837 = vmatpush.bf16.msrb.mxu2 %v1043_v54 }
  0x9e   : > { %850 = vmatpush.bf16.msrb.mxu3 %v1047_v58 }
  0xa0   : > { %812 = vmatpush.bf16.msrb.mxu0 %v1003_v0  ;;  %825 = vmatpush.bf16.msrb.mxu1 %v1007_v1 }
  0xa1   : > { %838 = vmatpush.bf16.msrb.mxu2 %v1011_v2 }
  0xa2   : > { %851 = vmatpush.bf16.msrb.mxu3 %v1015_v3 }
  0xa3   : > { %813 = vmatmul.bf16.vlgmr.msrb.gmra.mxu0 %v1728_v52  ;;  %826 = vmatmul.bf16.vlgmr.msrb.gmra.mxu1 %v1728_v52 }
  0xa4   : > { %839 = vmatmul.bf16.vlgmr.msrb.gmra.mxu2 %v1728_v52 }
  0xa5   : > { %852 = vmatmul.bf16.vlgmr.msrb.gmra.mxu3 %v1728_v52 }
  0xf9   : > { %v431_v5 = vpop.permute.xlu0 %430 }
 0x100   : > { %v762_v4 = vpop.f32.mrf.mxu0  ;;  %v775_v6 = vpop.f32.mrf.mxu1 }
 0x101   : > { %v763_v7 = vadd.f32 %v762_v4, %v431_v5  ;;  %v776_v52 = vadd.f32 %v775_v6, %v431_v5 }
 0x103   : > { %857 = vst [vmem:[%s1794_s6] sm:$0xff] %v763_v7 }
 0x104   : > { %858 = vst [vmem:[%s1794_s6 + $0x8] sm:$0xff] %v776_v52 }
 0x108   : > { %v801_v9 = vpop.f32.mrf.mxu3  ;;  %v764_v12 = vpop.f32.mrf.mxu0 }
 0x109   : > { %v788_v8 = vpop.f32.mrf.mxu2  ;;  %v802_v11 = vadd.f32 %v801_v9, %v431_v5  ;;  %v777_v13 = vpop.f32.mrf.mxu1 }
 0x10a   : > { %v789_v10 = vadd.f32 %v788_v8, %v431_v5 }
 0x10b   : > { %860 = vst [vmem:[%s1794_s6 + $0x18] sm:$0xff] %v802_v11 }
 0x10c   : > { %859 = vst [vmem:[%s1794_s6 + $0x10] sm:$0xff] %v789_v10 }
 0x110   : > { %v803_v15 = vpop.f32.mrf.mxu3 }
 0x111   : > { %v790_v14 = vpop.f32.mrf.mxu2 }
 0x120   : > { %v814_v16 = vpop.f32.mrf.mxu0  ;;  %v827_v18 = vpop.f32.mrf.mxu1 }
 0x121   : > { %v815_v17 = vadd.f32 %v814_v16, %v431_v5  ;;  %v828_v19 = vadd.f32 %v827_v18, %v431_v5 }
 0x123   : > { %861 = vst [vmem:[%s1794_s6 + $0x20] sm:$0xff] %v815_v17 }
 0x124   : > { %862 = vst [vmem:[%s1794_s6 + $0x28] sm:$0xff] %v828_v19 }
 0x127   : > { %v840_v20 = vpop.f32.mrf.mxu2 }
 0x128   : > { %v841_v21 = vadd.f32 %v840_v20, %v431_v5  ;;  %v853_v22 = vpop.f32.mrf.mxu3  ;;  %v816_v23 = vpop.f32.mrf.mxu0 }
 0x129   : > { %v854_v24 = vadd.f32 %v853_v22, %v431_v5  ;;  %v829_v25 = vpop.f32.mrf.mxu1 }
 0x12a   : > { %863 = vst [vmem:[%s1794_s6 + $0x30] sm:$0xff] %v841_v21 }
 0x12b   : > { %864 = vst [vmem:[%s1794_s6 + $0x38] sm:$0xff] %v854_v24 }
 0x12f   : > { %v842_v26 = vpop.f32.mrf.mxu2 }
 0x130   : > { %v855_v27 = vpop.f32.mrf.mxu3 }
 0x131 PF: > { %s13_s18 = sadd.s32 1, %s1418_s18   ;;  %s1829_s12 = smov %s1398_s13 }
 0x132   : > { %p10_p12 = scmp.ge.s32.totalorder %s13_s18, 10   ;;  %s1830_s13 = smov %s1492_s25 }
 0x133   : > { %s1831_s14 = smov %s1410_s16  ;;  %s1832_s15 = smov %s1414_s17 }
 0x134   : > { %s1833_s16 = smov %s1836_s19  ;;  %s1834_s17 = smov %s1840_s20 }
 0x135   :  { %12 = sbr.rel (!%p10_p12) target bundleno = 4 (0x4), region = 93 }

</bundles_post_ra>
